<compile_context>
chip_gen: v7x
topology: tpu7x:2x2x1
jax: 0.10.0
libtpu: 0.0.40
codegen_flags: <defaults>
</compile_context>

<pallas_src>
import functools

import jax
import jax.numpy as jnp
from jax.experimental import pallas as pl
from jax.experimental.pallas import tpu as pltpu


_BN_EPS = 1e-5
# (kh, kw, cin, cout) for conv_bn(3,32,2) then the seven 1x1 "_conv_dw" blocks
# (note: the original _conv_dw ignores its stride argument, mirrored here).
_CONV_DEFS = [
    (3, 3, 3, 32),
    (1, 1, 32, 64),
    (1, 1, 64, 128),
    (1, 1, 128, 128),
    (1, 1, 128, 256),
    (1, 1, 256, 256),
    (1, 1, 256, 512),
    (1, 1, 512, 512),
]


# ----------------------------------------------------------------------------
# Fused Pallas kernel: conv chain + masked global-avg-pool + Linear
# ----------------------------------------------------------------------------
def _fused_forward_kernel(x_ref, *refs, hw, thw, n_chunks, inv_hw):
    """One grid step = one (image b, HW tile t).

    refs = (w0, b0, ..., w7, b7, wfc, bfc, o_ref, acc_ref)
      w_l  bf16 (K_l, N_l)   folded-BN conv weights (VMEM resident)
      b_l  bf16 (1, N_l)     folded-BN bias
      wfc  bf16 (512, cls)   final Linear weight
      bfc  f32  (1, cls)     final Linear bias
      o    f32  (1, cls)     per-image output block (written at last tile)
      acc  f32  (1, 512)     per-image pooled-sum accumulator (VMEM scratch)
    """
    acc_ref = refs[-1]
    o_ref = refs[-2]
    bfc_ref = refs[-3]
    wfc_ref = refs[-4]
    wb = refs[:-4]

    t = pl.program_id(1)

    @pl.when(t == 0)
    def _():
        acc_ref[...] = jnp.zeros_like(acc_ref)

    # Two independent row-chunks per tile: their matmul->epilogue chains have
    # no data dependence, so the scheduler overlaps one chunk's VPU epilogue
    # (bias + ReLU + cast) with the other chunk's MXU matmul.
    rows = thw // n_chunks
    chunks = [x_ref[c * rows:(c + 1) * rows, :] for c in range(n_chunks)]

    for l in range(len(wb) // 2):
        w = wb[2 * l][...]                                 # bf16 (K_l, N_l)
        b = wb[2 * l + 1][...]                             # bf16 (1, N_l)
        ys = [jnp.dot(c, w, preferred_element_type=jnp.float32) for c in chunks]
        # bf16 epilogue (folded-BN bias + ReLU); f32 accumulation stays on MXU.
        chunks = [jnp.maximum(y.astype(jnp.bfloat16) + b, 0.0) for y in ys]

    # Global-average-pool accumulation.  Padded HW rows would contribute
    # relu(bias) != 0 in general, so mask them (skipped statically if HW
    # divides the tile size).
    total = acc_ref[...]
    for c, a in enumerate(chunks):
        a32 = a.astype(jnp.float32)                        # (rows, 512)
        if hw % thw != 0:
            base = t * thw + c * rows
            ridx = jax.lax.broadcasted_iota(jnp.int32, (rows, 1), 0) + base
            a32 = jnp.where(ridx < hw, a32, 0.0)
        total = total + jnp.sum(a32, axis=0, keepdims=True)
    acc_ref[...] = total

    # Finalize: divide by true HW and apply the Linear head for this image.
    @pl.when(t == pl.num_programs(1) - 1)
    def _():
        pooled = (acc_ref[...] * inv_hw).astype(jnp.bfloat16)     # (1, 512)
        y = jnp.dot(pooled, wfc_ref[...], preferred_element_type=jnp.float32)
        o_ref[...] = (y + bfc_ref[...]).astype(o_ref.dtype)


# ----------------------------------------------------------------------------
# Pallas wrapper
# ----------------------------------------------------------------------------
def _pick_thw(hw):
    """Largest power-of-two HW tile <= 1024 (VMEM-safe on v7x) that still
    gives >= 2 tiles per image when possible; sublane-aligned (>= 8)."""
    thw = 1024
    while thw > 8 and hw < 2 * thw:
        thw //= 2
    return max(thw, 8)


def mobilenet_fused_forward(patches, weights, biases, wfc, bfc):
    """patches: (B, HW, K0) bf16 im2col rows of the stem conv.

    Runs stem + seven 1x1 conv/BN/ReLU blocks + global average pool + Linear
    in ONE pallas_call.  Returns (B, classes) f32.
    """
    B, HW, K0 = patches.shape
    thw = _pick_thw(HW)
    HWp = pl.cdiv(HW, thw) * thw
    if HWp != HW:
        patches = jnp.pad(patches, ((0, 0), (0, HWp - HW), (0, 0)))
    n_chunks = 2 if thw >= 16 else 1
    classes = wfc.shape[1]
    c_last = weights[-1].shape[1]

    in_specs = [pl.BlockSpec((None, thw, K0), lambda b, t: (b, t, 0))]
    operands = [patches]
    for w, bias in zip(weights, biases):
        Kl, Nl = w.shape
        # constant index_map => fetched once, VMEM resident across the grid
        in_specs.append(pl.BlockSpec((Kl, Nl), lambda b, t: (0, 0)))
        in_specs.append(pl.BlockSpec((1, Nl), lambda b, t: (0, 0)))
        operands.append(w)
        operands.append(bias.astype(jnp.bfloat16).reshape(1, Nl))
    in_specs.append(pl.BlockSpec((c_last, classes), lambda b, t: (0, 0)))
    in_specs.append(pl.BlockSpec((1, classes), lambda b, t: (0, 0)))
    operands.append(wfc)
    operands.append(bfc.astype(jnp.float32).reshape(1, classes))

    kernel = functools.partial(
        _fused_forward_kernel, hw=HW, thw=thw, n_chunks=n_chunks, inv_hw=1.0 / HW)

    out = pl.pallas_call(
        kernel,
        out_shape=jax.ShapeDtypeStruct((B, 1, classes), jnp.float32),
        grid_spec=pltpu.PrefetchScalarGridSpec(
            num_scalar_prefetch=0,
            grid=(B, HWp // thw),
            in_specs=in_specs,
            out_specs=pl.BlockSpec((None, 1, classes), lambda b, t: (b, 0, 0)),
            scratch_shapes=[pltpu.VMEM((1, c_last), jnp.float32)],
        ),
        compiler_params=pltpu.CompilerParams(
            dimension_semantics=("parallel", "arbitrary"),
            vmem_limit_bytes=48 * 1024 * 1024,   # explicit; safe on v5e/v6e/v7x
        ),
    )(*operands)
    return out.reshape(B, classes)


# ----------------------------------------------------------------------------
# Parameter construction (deterministic, mirrors the PyTorch __init__)
# ----------------------------------------------------------------------------
def init_params(key, classes=2):
    keys = jax.random.split(key, len(_CONV_DEFS) + 2)
    weights, biases = [], []
    for idx, (k, (kh, kw, cin, cout)) in enumerate(
            zip(keys[: len(_CONV_DEFS)], _CONV_DEFS)):
        # PyTorch: m.weight.data.normal_(0, (2.0 / (kh*kw*cout)) ** 0.5)
        std = (2.0 / (kh * kw * cout)) ** 0.5
        w = jax.random.normal(k, (cout, cin, kh, kw), jnp.float32) * std
        # (cout, cin, kh, kw) -> (kh, kw, cin, cout) -> (kh*kw*cin, cout)
        w_mat = jnp.transpose(w, (2, 3, 1, 0)).reshape(kh * kw * cin, cout)
        # BN (eval mode): gamma=1, beta=0, running_mean=0, running_var=1.
        # Fold the BN scale into the weights; only the bias stays in the kernel.
        gamma = jnp.ones((cout,), jnp.float32)
        beta = jnp.zeros((cout,), jnp.float32)
        rmean = jnp.zeros((cout,), jnp.float32)
        rvar = jnp.ones((cout,), jnp.float32)
        scale = gamma / jnp.sqrt(rvar + _BN_EPS)
        bias = beta - rmean * scale
        w_mat = w_mat * scale[None, :]
        if idx == 0:
            # pad stem K: 27 -> 32 (zero rows are inert; matches padded patches)
            w_mat = jnp.pad(w_mat, ((0, 32 - w_mat.shape[0]), (0, 0)))
        weights.append(w_mat.astype(jnp.bfloat16))
        biases.append(bias)                               # f32 (cout,)

    # nn.Linear default init: U(-1/sqrt(fan_in), 1/sqrt(fan_in))
    fan_in = 512
    bound = 1.0 / (fan_in ** 0.5)
    wfc = jax.random.uniform(keys[-2], (classes, fan_in), jnp.float32,
                             -bound, bound)
    bfc = jax.random.uniform(keys[-1], (classes,), jnp.float32, -bound, bound)
    return weights, biases, jnp.transpose(wfc).astype(jnp.bfloat16), bfc


# ----------------------------------------------------------------------------
# Forward pass (im2col glue in XLA, then one fused Pallas kernel)
# ----------------------------------------------------------------------------
def _im2col_stem(x_nchw, k0):
    """NCHW -> bf16 stem im2col rows (B, Ho*Wo, k0) for Conv2d(3,32,3,s=2,p=1)."""
    B, C, H, W = x_nchw.shape
    assert C == 3, "MobileNetV1 stem expects 3 input channels"
    x = jnp.transpose(x_nchw, (0, 2, 3, 1)).astype(jnp.bfloat16)   # NHWC bf16
    xp = jnp.pad(x, ((0, 0), (1, 1), (1, 1), (0, 0)))
    Ho = (H + 2 - 3) // 2 + 1
    Wo = (W + 2 - 3) // 2 + 1
    patches = [xp[:, dy::2, dx::2, :][:, :Ho, :Wo, :]
               for dy in range(3) for dx in range(3)]
    patches = jnp.concatenate(patches, axis=-1)          # (B, Ho, Wo, 27) bf16
    patches = patches.reshape(B, Ho * Wo, 9 * C)
    patches = jnp.pad(patches, ((0, 0), (0, 0), (0, k0 - 9 * C)))  # K 27 -> 32
    return patches


def mobilenet_forward(x_nchw, weights, biases, wfc, bfc):
    patches = _im2col_stem(x_nchw, weights[0].shape[0])
    return mobilenet_fused_forward(patches, weights, biases, wfc, bfc)


# ----------------------------------------------------------------------------
# Pure-JAX f32 reference (same folded weights) for a correctness sanity check
# ----------------------------------------------------------------------------
def reference_forward(x_nchw, weights, biases, wfc, bfc):
    B = x_nchw.shape[0]
    a = _im2col_stem(x_nchw, weights[0].shape[0]).astype(jnp.float32)
    HW = a.shape[1]
    a = a.reshape(B * HW, -1)
    for w, b in zip(weights, biases):
        a = jnp.maximum(a @ w.astype(jnp.float32) + b[None, :], 0.0)
    pooled = a.reshape(B, HW, -1).mean(axis=1)
    return pooled @ wfc.astype(jnp.float32) + bfc[None, :]


# ----------------------------------------------------------------------------
if __name__ == "__main__":
    key = jax.random.PRNGKey(0)
    pkey, xkey = jax.random.split(key)

    weights, biases, wfc, bfc = init_params(pkey, classes=2)

    # small input consistent with the module: 3 input channels required
    x = jax.random.normal(xkey, (2, 3, 16, 16), jnp.float32)

    fwd = jax.jit(mobilenet_forward)
    out = jax.block_until_ready(fwd(x, weights, biases, wfc, bfc))
    assert out.shape == (2, 2) and out.dtype == jnp.float32

    ref = reference_forward(x, weights, biases, wfc, bfc)
    assert bool(jnp.all(jnp.isfinite(out)))
    assert bool(jnp.allclose(out, ref, atol=5e-2, rtol=5e-2)), (out, ref)
    print("KERNEL_OK")
</pallas_src>

<mosaic_0001>
module attributes {stable_mosaic.version = 11 : i64} {
  func.func @_fused_forward_kernel(%arg0: i32, %arg1: i32, %arg2: memref<1x32x32xbf16, #tpu.memory_space<vmem>>, %arg3: memref<32x32xbf16, #tpu.memory_space<vmem>>, %arg4: memref<1x32xbf16, #tpu.memory_space<vmem>>, %arg5: memref<32x64xbf16, #tpu.memory_space<vmem>>, %arg6: memref<1x64xbf16, #tpu.memory_space<vmem>>, %arg7: memref<64x128xbf16, #tpu.memory_space<vmem>>, %arg8: memref<1x128xbf16, #tpu.memory_space<vmem>>, %arg9: memref<128x128xbf16, #tpu.memory_space<vmem>>, %arg10: memref<1x128xbf16, #tpu.memory_space<vmem>>, %arg11: memref<128x256xbf16, #tpu.memory_space<vmem>>, %arg12: memref<1x256xbf16, #tpu.memory_space<vmem>>, %arg13: memref<256x256xbf16, #tpu.memory_space<vmem>>, %arg14: memref<1x256xbf16, #tpu.memory_space<vmem>>, %arg15: memref<256x512xbf16, #tpu.memory_space<vmem>>, %arg16: memref<1x512xbf16, #tpu.memory_space<vmem>>, %arg17: memref<512x512xbf16, #tpu.memory_space<vmem>>, %arg18: memref<1x512xbf16, #tpu.memory_space<vmem>>, %arg19: memref<512x2xbf16, #tpu.memory_space<vmem>>, %arg20: memref<1x2xf32, #tpu.memory_space<vmem>>, %arg21: memref<1x1x2xf32, #tpu.memory_space<vmem>>, %arg22: memref<1x512xf32, #tpu.memory_space<vmem>>) attributes {dimension_semantics = [#tpu.dimension_semantics<parallel>, #tpu.dimension_semantics<arbitrary>], iteration_bounds = array<i64: 2, 2>, scalar_prefetch = 0 : i64, scratch_operands = 1 : i64, tpu.core_type = #tpu.core_type<tc>, window_params = [{transform_indices = @transform_0, window_bounds = array<i64: 1, 32, 32>}, {pipeline_mode = #tpu.pipeline_mode<synchronous>, transform_indices = @transform_1, window_bounds = array<i64: 32, 32>}, {pipeline_mode = #tpu.pipeline_mode<synchronous>, transform_indices = @transform_2, window_bounds = array<i64: 1, 32>}, {pipeline_mode = #tpu.pipeline_mode<synchronous>, transform_indices = @transform_3, window_bounds = array<i64: 32, 64>}, {pipeline_mode = #tpu.pipeline_mode<synchronous>, transform_indices = @transform_4, window_bounds = array<i64: 1, 64>}, {pipeline_mode = #tpu.pipeline_mode<synchronous>, transform_indices = @transform_5, window_bounds = array<i64: 64, 128>}, {pipeline_mode = #tpu.pipeline_mode<synchronous>, transform_indices = @transform_6, window_bounds = array<i64: 1, 128>}, {pipeline_mode = #tpu.pipeline_mode<synchronous>, transform_indices = @transform_7, window_bounds = array<i64: 128, 128>}, {pipeline_mode = #tpu.pipeline_mode<synchronous>, transform_indices = @transform_8, window_bounds = array<i64: 1, 128>}, {pipeline_mode = #tpu.pipeline_mode<synchronous>, transform_indices = @transform_9, window_bounds = array<i64: 128, 256>}, {pipeline_mode = #tpu.pipeline_mode<synchronous>, transform_indices = @transform_10, window_bounds = array<i64: 1, 256>}, {pipeline_mode = #tpu.pipeline_mode<synchronous>, transform_indices = @transform_11, window_bounds = array<i64: 256, 256>}, {pipeline_mode = #tpu.pipeline_mode<synchronous>, transform_indices = @transform_12, window_bounds = array<i64: 1, 256>}, {pipeline_mode = #tpu.pipeline_mode<synchronous>, transform_indices = @transform_13, window_bounds = array<i64: 256, 512>}, {pipeline_mode = #tpu.pipeline_mode<synchronous>, transform_indices = @transform_14, window_bounds = array<i64: 1, 512>}, {pipeline_mode = #tpu.pipeline_mode<synchronous>, transform_indices = @transform_15, window_bounds = array<i64: 512, 512>}, {pipeline_mode = #tpu.pipeline_mode<synchronous>, transform_indices = @transform_16, window_bounds = array<i64: 1, 512>}, {pipeline_mode = #tpu.pipeline_mode<synchronous>, transform_indices = @transform_17, window_bounds = array<i64: 512, 2>}, {pipeline_mode = #tpu.pipeline_mode<synchronous>, transform_indices = @transform_18, window_bounds = array<i64: 1, 2>}, {transform_indices = @transform_19, window_bounds = array<i64: 1, 1, 2>}]} {
    %c0_i32 = arith.constant 0 : i32
    %0 = arith.cmpi eq, %arg1, %c0_i32 : i32
    %1 = arith.extui %0 : i1 to i32
    %c0_i32_0 = arith.constant 0 : i32
    %2 = arith.cmpi ne, %1, %c0_i32_0 : i32
    scf.if %2 {
      %cst_75 = arith.constant 0.000000e+00 : f32
      %132 = vector.broadcast %cst_75 : f32 to vector<1x512xf32>
      %c0_76 = arith.constant 0 : index
      %c0_77 = arith.constant 0 : index
      %133 = vector.load %arg22[%c0_76, %c0_77] : memref<1x512xf32, #tpu.memory_space<vmem>>, vector<1x512xf32>
      tpu.vector_store %arg22[%c0_76, %c0_77], %132 {strides = array<i32>} : memref<1x512xf32, #tpu.memory_space<vmem>>, vector<1x512xf32>,
    } else {
    }
    %c0 = arith.constant 0 : index
    %c0_1 = arith.constant 0 : index
    %c0_2 = arith.constant 0 : index
    %3 = vector.load %arg2[%c0, %c0_1, %c0_2] : memref<1x32x32xbf16, #tpu.memory_space<vmem>>, vector<1x16x32xbf16>
    %4 = vector.shape_cast %3 : vector<1x16x32xbf16> to vector<16x32xbf16>
    %c0_3 = arith.constant 0 : index
    %c16 = arith.constant 16 : index
    %c0_4 = arith.constant 0 : index
    %5 = vector.load %arg2[%c0_3, %c16, %c0_4] : memref<1x32x32xbf16, #tpu.memory_space<vmem>>, vector<1x16x32xbf16>
    %6 = vector.shape_cast %5 : vector<1x16x32xbf16> to vector<16x32xbf16>
    %c0_5 = arith.constant 0 : index
    %c0_6 = arith.constant 0 : index
    %7 = vector.load %arg3[%c0_5, %c0_6] : memref<32x32xbf16, #tpu.memory_space<vmem>>, vector<32x32xbf16>
    %c0_7 = arith.constant 0 : index
    %c0_8 = arith.constant 0 : index
    %8 = vector.load %arg4[%c0_7, %c0_8] : memref<1x32xbf16, #tpu.memory_space<vmem>>, vector<1x32xbf16>
    %cst = arith.constant dense<0.000000e+00> : vector<16x32xf32>
    %9 = tpu.matmul %4, %7, %cst {dimension_numbers = #tpu.dot_dimension_numbers<[1], [0], [0], [1], [0, 0, 1, 1], [], []>} : vector<16x32xbf16>, vector<32x32xbf16>, vector<16x32xf32> -> vector<16x32xf32>
    %cst_9 = arith.constant dense<0.000000e+00> : vector<16x32xf32>
    %10 = tpu.matmul %6, %7, %cst_9 {dimension_numbers = #tpu.dot_dimension_numbers<[1], [0], [0], [1], [0, 0, 1, 1], [], []>} : vector<16x32xbf16>, vector<32x32xbf16>, vector<16x32xf32> -> vector<16x32xf32>
    %11 = arith.truncf %9 : vector<16x32xf32> to vector<16x32xbf16>
    %12 = vector.broadcast %8 : vector<1x32xbf16> to vector<16x32xbf16>
    %13 = arith.addf %11, %12 : vector<16x32xbf16>
    %cst_10 = arith.constant 0.000000e+00 : bf16
    %14 = vector.broadcast %cst_10 : bf16 to vector<16x32xbf16>
    %15 = arith.maximumf %13, %14 : vector<16x32xbf16>
    %16 = arith.truncf %10 : vector<16x32xf32> to vector<16x32xbf16>
    %17 = vector.broadcast %8 : vector<1x32xbf16> to vector<16x32xbf16>
    %18 = arith.addf %16, %17 : vector<16x32xbf16>
    %cst_11 = arith.constant 0.000000e+00 : bf16
    %19 = vector.broadcast %cst_11 : bf16 to vector<16x32xbf16>
    %20 = arith.maximumf %18, %19 : vector<16x32xbf16>
    %c0_12 = arith.constant 0 : index
    %c0_13 = arith.constant 0 : index
    %21 = vector.load %arg5[%c0_12, %c0_13] : memref<32x64xbf16, #tpu.memory_space<vmem>>, vector<32x64xbf16>
    %c0_14 = arith.constant 0 : index
    %c0_15 = arith.constant 0 : index
    %22 = vector.load %arg6[%c0_14, %c0_15] : memref<1x64xbf16, #tpu.memory_space<vmem>>, vector<1x64xbf16>
    %cst_16 = arith.constant dense<0.000000e+00> : vector<16x64xf32>
    %23 = tpu.matmul %15, %21, %cst_16 {dimension_numbers = #tpu.dot_dimension_numbers<[1], [0], [0], [1], [0, 0, 1, 1], [], []>} : vector<16x32xbf16>, vector<32x64xbf16>, vector<16x64xf32> -> vector<16x64xf32>
    %cst_17 = arith.constant dense<0.000000e+00> : vector<16x64xf32>
    %24 = tpu.matmul %20, %21, %cst_17 {dimension_numbers = #tpu.dot_dimension_numbers<[1], [0], [0], [1], [0, 0, 1, 1], [], []>} : vector<16x32xbf16>, vector<32x64xbf16>, vector<16x64xf32> -> vector<16x64xf32>
    %25 = arith.truncf %23 : vector<16x64xf32> to vector<16x64xbf16>
    %26 = vector.broadcast %22 : vector<1x64xbf16> to vector<16x64xbf16>
    %27 = arith.addf %25, %26 : vector<16x64xbf16>
    %cst_18 = arith.constant 0.000000e+00 : bf16
    %28 = vector.broadcast %cst_18 : bf16 to vector<16x64xbf16>
    %29 = arith.maximumf %27, %28 : vector<16x64xbf16>
    %30 = arith.truncf %24 : vector<16x64xf32> to vector<16x64xbf16>
    %31 = vector.broadcast %22 : vector<1x64xbf16> to vector<16x64xbf16>
    %32 = arith.addf %30, %31 : vector<16x64xbf16>
    %cst_19 = arith.constant 0.000000e+00 : bf16
    %33 = vector.broadcast %cst_19 : bf16 to vector<16x64xbf16>
    %34 = arith.maximumf %32, %33 : vector<16x64xbf16>
    %c0_20 = arith.constant 0 : index
    %c0_21 = arith.constant 0 : index
    %35 = vector.load %arg7[%c0_20, %c0_21] : memref<64x128xbf16, #tpu.memory_space<vmem>>, vector<64x128xbf16>
    %c0_22 = arith.constant 0 : index
    %c0_23 = arith.constant 0 : index
    %36 = vector.load %arg8[%c0_22, %c0_23] : memref<1x128xbf16, #tpu.memory_space<vmem>>, vector<1x128xbf16>
    %cst_24 = arith.constant dense<0.000000e+00> : vector<16x128xf32>
    %37 = tpu.matmul %29, %35, %cst_24 {dimension_numbers = #tpu.dot_dimension_numbers<[1], [0], [0], [1], [0, 0, 1, 1], [], []>} : vector<16x64xbf16>, vector<64x128xbf16>, vector<16x128xf32> -> vector<16x128xf32>
    %cst_25 = arith.constant dense<0.000000e+00> : vector<16x128xf32>
    %38 = tpu.matmul %34, %35, %cst_25 {dimension_numbers = #tpu.dot_dimension_numbers<[1], [0], [0], [1], [0, 0, 1, 1], [], []>} : vector<16x64xbf16>, vector<64x128xbf16>, vector<16x128xf32> -> vector<16x128xf32>
    %39 = arith.truncf %37 : vector<16x128xf32> to vector<16x128xbf16>
    %40 = vector.broadcast %36 : vector<1x128xbf16> to vector<16x128xbf16>
    %41 = arith.addf %39, %40 : vector<16x128xbf16>
    %cst_26 = arith.constant 0.000000e+00 : bf16
    %42 = vector.broadcast %cst_26 : bf16 to vector<16x128xbf16>
    %43 = arith.maximumf %41, %42 : vector<16x128xbf16>
    %44 = arith.truncf %38 : vector<16x128xf32> to vector<16x128xbf16>
    %45 = vector.broadcast %36 : vector<1x128xbf16> to vector<16x128xbf16>
    %46 = arith.addf %44, %45 : vector<16x128xbf16>
    %cst_27 = arith.constant 0.000000e+00 : bf16
    %47 = vector.broadcast %cst_27 : bf16 to vector<16x128xbf16>
    %48 = arith.maximumf %46, %47 : vector<16x128xbf16>
    %c0_28 = arith.constant 0 : index
    %c0_29 = arith.constant 0 : index
    %49 = vector.load %arg9[%c0_28, %c0_29] : memref<128x128xbf16, #tpu.memory_space<vmem>>, vector<128x128xbf16>
    %c0_30 = arith.constant 0 : index
    %c0_31 = arith.constant 0 : index
    %50 = vector.load %arg10[%c0_30, %c0_31] : memref<1x128xbf16, #tpu.memory_space<vmem>>, vector<1x128xbf16>
    %cst_32 = arith.constant dense<0.000000e+00> : vector<16x128xf32>
    %51 = tpu.matmul %43, %49, %cst_32 {dimension_numbers = #tpu.dot_dimension_numbers<[1], [0], [0], [1], [0, 0, 1, 1], [], []>} : vector<16x128xbf16>, vector<128x128xbf16>, vector<16x128xf32> -> vector<16x128xf32>
    %cst_33 = arith.constant dense<0.000000e+00> : vector<16x128xf32>
    %52 = tpu.matmul %48, %49, %cst_33 {dimension_numbers = #tpu.dot_dimension_numbers<[1], [0], [0], [1], [0, 0, 1, 1], [], []>} : vector<16x128xbf16>, vector<128x128xbf16>, vector<16x128xf32> -> vector<16x128xf32>
    %53 = arith.truncf %51 : vector<16x128xf32> to vector<16x128xbf16>
    %54 = vector.broadcast %50 : vector<1x128xbf16> to vector<16x128xbf16>
    %55 = arith.addf %53, %54 : vector<16x128xbf16>
    %cst_34 = arith.constant 0.000000e+00 : bf16
    %56 = vector.broadcast %cst_34 : bf16 to vector<16x128xbf16>
    %57 = arith.maximumf %55, %56 : vector<16x128xbf16>
    %58 = arith.truncf %52 : vector<16x128xf32> to vector<16x128xbf16>
    %59 = vector.broadcast %50 : vector<1x128xbf16> to vector<16x128xbf16>
    %60 = arith.addf %58, %59 : vector<16x128xbf16>
    %cst_35 = arith.constant 0.000000e+00 : bf16
    %61 = vector.broadcast %cst_35 : bf16 to vector<16x128xbf16>
    %62 = arith.maximumf %60, %61 : vector<16x128xbf16>
    %c0_36 = arith.constant 0 : index
    %c0_37 = arith.constant 0 : index
    %63 = vector.load %arg11[%c0_36, %c0_37] : memref<128x256xbf16, #tpu.memory_space<vmem>>, vector<128x256xbf16>
    %c0_38 = arith.constant 0 : index
    %c0_39 = arith.constant 0 : index
    %64 = vector.load %arg12[%c0_38, %c0_39] : memref<1x256xbf16, #tpu.memory_space<vmem>>, vector<1x256xbf16>
    %cst_40 = arith.constant dense<0.000000e+00> : vector<16x256xf32>
    %65 = tpu.matmul %57, %63, %cst_40 {dimension_numbers = #tpu.dot_dimension_numbers<[1], [0], [0], [1], [0, 0, 1, 1], [], []>} : vector<16x128xbf16>, vector<128x256xbf16>, vector<16x256xf32> -> vector<16x256xf32>
    %cst_41 = arith.constant dense<0.000000e+00> : vector<16x256xf32>
    %66 = tpu.matmul %62, %63, %cst_41 {dimension_numbers = #tpu.dot_dimension_numbers<[1], [0], [0], [1], [0, 0, 1, 1], [], []>} : vector<16x128xbf16>, vector<128x256xbf16>, vector<16x256xf32> -> vector<16x256xf32>
    %67 = arith.truncf %65 : vector<16x256xf32> to vector<16x256xbf16>
    %68 = vector.broadcast %64 : vector<1x256xbf16> to vector<16x256xbf16>
    %69 = arith.addf %67, %68 : vector<16x256xbf16>
    %cst_42 = arith.constant 0.000000e+00 : bf16
    %70 = vector.broadcast %cst_42 : bf16 to vector<16x256xbf16>
    %71 = arith.maximumf %69, %70 : vector<16x256xbf16>
    %72 = arith.truncf %66 : vector<16x256xf32> to vector<16x256xbf16>
    %73 = vector.broadcast %64 : vector<1x256xbf16> to vector<16x256xbf16>
    %74 = arith.addf %72, %73 : vector<16x256xbf16>
    %cst_43 = arith.constant 0.000000e+00 : bf16
    %75 = vector.broadcast %cst_43 : bf16 to vector<16x256xbf16>
    %76 = arith.maximumf %74, %75 : vector<16x256xbf16>
    %c0_44 = arith.constant 0 : index
    %c0_45 = arith.constant 0 : index
    %77 = vector.load %arg13[%c0_44, %c0_45] : memref<256x256xbf16, #tpu.memory_space<vmem>>, vector<256x256xbf16>
    %c0_46 = arith.constant 0 : index
    %c0_47 = arith.constant 0 : index
    %78 = vector.load %arg14[%c0_46, %c0_47] : memref<1x256xbf16, #tpu.memory_space<vmem>>, vector<1x256xbf16>
    %cst_48 = arith.constant dense<0.000000e+00> : vector<16x256xf32>
    %79 = tpu.matmul %71, %77, %cst_48 {dimension_numbers = #tpu.dot_dimension_numbers<[1], [0], [0], [1], [0, 0, 1, 1], [], []>} : vector<16x256xbf16>, vector<256x256xbf16>, vector<16x256xf32> -> vector<16x256xf32>
    %cst_49 = arith.constant dense<0.000000e+00> : vector<16x256xf32>
    %80 = tpu.matmul %76, %77, %cst_49 {dimension_numbers = #tpu.dot_dimension_numbers<[1], [0], [0], [1], [0, 0, 1, 1], [], []>} : vector<16x256xbf16>, vector<256x256xbf16>, vector<16x256xf32> -> vector<16x256xf32>
    %81 = arith.truncf %79 : vector<16x256xf32> to vector<16x256xbf16>
    %82 = vector.broadcast %78 : vector<1x256xbf16> to vector<16x256xbf16>
    %83 = arith.addf %81, %82 : vector<16x256xbf16>
    %cst_50 = arith.constant 0.000000e+00 : bf16
    %84 = vector.broadcast %cst_50 : bf16 to vector<16x256xbf16>
    %85 = arith.maximumf %83, %84 : vector<16x256xbf16>
    %86 = arith.truncf %80 : vector<16x256xf32> to vector<16x256xbf16>
    %87 = vector.broadcast %78 : vector<1x256xbf16> to vector<16x256xbf16>
    %88 = arith.addf %86, %87 : vector<16x256xbf16>
    %cst_51 = arith.constant 0.000000e+00 : bf16
    %89 = vector.broadcast %cst_51 : bf16 to vector<16x256xbf16>
    %90 = arith.maximumf %88, %89 : vector<16x256xbf16>
    %c0_52 = arith.constant 0 : index
    %c0_53 = arith.constant 0 : index
    %91 = vector.load %arg15[%c0_52, %c0_53] : memref<256x512xbf16, #tpu.memory_space<vmem>>, vector<256x512xbf16>
    %c0_54 = arith.constant 0 : index
    %c0_55 = arith.constant 0 : index
    %92 = vector.load %arg16[%c0_54, %c0_55] : memref<1x512xbf16, #tpu.memory_space<vmem>>, vector<1x512xbf16>
    %cst_56 = arith.constant dense<0.000000e+00> : vector<16x512xf32>
    %93 = tpu.matmul %85, %91, %cst_56 {dimension_numbers = #tpu.dot_dimension_numbers<[1], [0], [0], [1], [0, 0, 1, 1], [], []>} : vector<16x256xbf16>, vector<256x512xbf16>, vector<16x512xf32> -> vector<16x512xf32>
    %cst_57 = arith.constant dense<0.000000e+00> : vector<16x512xf32>
    %94 = tpu.matmul %90, %91, %cst_57 {dimension_numbers = #tpu.dot_dimension_numbers<[1], [0], [0], [1], [0, 0, 1, 1], [], []>} : vector<16x256xbf16>, vector<256x512xbf16>, vector<16x512xf32> -> vector<16x512xf32>
    %95 = arith.truncf %93 : vector<16x512xf32> to vector<16x512xbf16>
    %96 = vector.broadcast %92 : vector<1x512xbf16> to vector<16x512xbf16>
    %97 = arith.addf %95, %96 : vector<16x512xbf16>
    %cst_58 = arith.constant 0.000000e+00 : bf16
    %98 = vector.broadcast %cst_58 : bf16 to vector<16x512xbf16>
    %99 = arith.maximumf %97, %98 : vector<16x512xbf16>
    %100 = arith.truncf %94 : vector<16x512xf32> to vector<16x512xbf16>
    %101 = vector.broadcast %92 : vector<1x512xbf16> to vector<16x512xbf16>
    %102 = arith.addf %100, %101 : vector<16x512xbf16>
    %cst_59 = arith.constant 0.000000e+00 : bf16
    %103 = vector.broadcast %cst_59 : bf16 to vector<16x512xbf16>
    %104 = arith.maximumf %102, %103 : vector<16x512xbf16>
    %c0_60 = arith.constant 0 : index
    %c0_61 = arith.constant 0 : index
    %105 = vector.load %arg17[%c0_60, %c0_61] : memref<512x512xbf16, #tpu.memory_space<vmem>>, vector<512x512xbf16>
    %c0_62 = arith.constant 0 : index
    %c0_63 = arith.constant 0 : index
    %106 = vector.load %arg18[%c0_62, %c0_63] : memref<1x512xbf16, #tpu.memory_space<vmem>>, vector<1x512xbf16>
    %cst_64 = arith.constant dense<0.000000e+00> : vector<16x512xf32>
    %107 = tpu.matmul %99, %105, %cst_64 {dimension_numbers = #tpu.dot_dimension_numbers<[1], [0], [0], [1], [0, 0, 1, 1], [], []>} : vector<16x512xbf16>, vector<512x512xbf16>, vector<16x512xf32> -> vector<16x512xf32>
    %cst_65 = arith.constant dense<0.000000e+00> : vector<16x512xf32>
    %108 = tpu.matmul %104, %105, %cst_65 {dimension_numbers = #tpu.dot_dimension_numbers<[1], [0], [0], [1], [0, 0, 1, 1], [], []>} : vector<16x512xbf16>, vector<512x512xbf16>, vector<16x512xf32> -> vector<16x512xf32>
    %109 = arith.truncf %107 : vector<16x512xf32> to vector<16x512xbf16>
    %110 = vector.broadcast %106 : vector<1x512xbf16> to vector<16x512xbf16>
    %111 = arith.addf %109, %110 : vector<16x512xbf16>
    %cst_66 = arith.constant 0.000000e+00 : bf16
    %112 = vector.broadcast %cst_66 : bf16 to vector<16x512xbf16>
    %113 = arith.maximumf %111, %112 : vector<16x512xbf16>
    %114 = arith.truncf %108 : vector<16x512xf32> to vector<16x512xbf16>
    %115 = vector.broadcast %106 : vector<1x512xbf16> to vector<16x512xbf16>
    %116 = arith.addf %114, %115 : vector<16x512xbf16>
    %cst_67 = arith.constant 0.000000e+00 : bf16
    %117 = vector.broadcast %cst_67 : bf16 to vector<16x512xbf16>
    %118 = arith.maximumf %116, %117 : vector<16x512xbf16>
    %c0_68 = arith.constant 0 : index
    %c0_69 = arith.constant 0 : index
    %119 = vector.load %arg22[%c0_68, %c0_69] : memref<1x512xf32, #tpu.memory_space<vmem>>, vector<1x512xf32>
    %120 = arith.extf %113 : vector<16x512xbf16> to vector<16x512xf32>
    %cst_70 = arith.constant dense<0.000000e+00> : vector<512xf32>
    %121 = vector.multi_reduction <add>, %120, %cst_70 [0] : vector<16x512xf32> to vector<512xf32>
    %122 = vector.shape_cast %121 : vector<512xf32> to vector<1x512xf32>
    %123 = arith.addf %119, %122 : vector<1x512xf32>
    %124 = arith.extf %118 : vector<16x512xbf16> to vector<16x512xf32>
    %cst_71 = arith.constant dense<0.000000e+00> : vector<512xf32>
    %125 = vector.multi_reduction <add>, %124, %cst_71 [0] : vector<16x512xf32> to vector<512xf32>
    %126 = vector.shape_cast %125 : vector<512xf32> to vector<1x512xf32>
    %127 = arith.addf %123, %126 : vector<1x512xf32>
    %c0_72 = arith.constant 0 : index
    %c0_73 = arith.constant 0 : index
    %128 = vector.load %arg22[%c0_72, %c0_73] : memref<1x512xf32, #tpu.memory_space<vmem>>, vector<1x512xf32>
    tpu.vector_store %arg22[%c0_72, %c0_73], %127 {strides = array<i32>} : memref<1x512xf32, #tpu.memory_space<vmem>>, vector<1x512xf32>,
    %c1_i32 = arith.constant 1 : i32
    %129 = arith.cmpi eq, %arg1, %c1_i32 : i32
    %130 = arith.extui %129 : i1 to i32
    %c0_i32_74 = arith.constant 0 : i32
    %131 = arith.cmpi ne, %130, %c0_i32_74 : i32
    scf.if %131 {
      %c0_75 = arith.constant 0 : index
      %c0_76 = arith.constant 0 : index
      %132 = vector.load %arg22[%c0_75, %c0_76] : memref<1x512xf32, #tpu.memory_space<vmem>>, vector<1x512xf32>
      %cst_77 = arith.constant 1.562500e-02 : f32
      %133 = vector.broadcast %cst_77 : f32 to vector<1x512xf32>
      %134 = arith.mulf %132, %133 : vector<1x512xf32>
      %135 = arith.truncf %134 : vector<1x512xf32> to vector<1x512xbf16>
      %c0_78 = arith.constant 0 : index
      %c0_79 = arith.constant 0 : index
      %136 = vector.load %arg19[%c0_78, %c0_79] : memref<512x2xbf16, #tpu.memory_space<vmem>>, vector<512x2xbf16>
      %cst_80 = arith.constant dense<0.000000e+00> : vector<1x2xf32>
      %137 = tpu.matmul %135, %136, %cst_80 {dimension_numbers = #tpu.dot_dimension_numbers<[1], [0], [0], [1], [0, 0, 1, 1], [], []>} : vector<1x512xbf16>, vector<512x2xbf16>, vector<1x2xf32> -> vector<1x2xf32>
      %c0_81 = arith.constant 0 : index
      %c0_82 = arith.constant 0 : index
      %138 = vector.load %arg20[%c0_81, %c0_82] : memref<1x2xf32, #tpu.memory_space<vmem>>, vector<1x2xf32>
      %139 = arith.addf %137, %138 : vector<1x2xf32>
      %c0_83 = arith.constant 0 : index
      %c0_84 = arith.constant 0 : index
      %c0_85 = arith.constant 0 : index
      %140 = vector.load %arg21[%c0_83, %c0_84, %c0_85] : memref<1x1x2xf32, #tpu.memory_space<vmem>>, vector<1x1x2xf32>
      %141 = vector.shape_cast %140 : vector<1x1x2xf32> to vector<1x2xf32>
      %142 = vector.shape_cast %139 : vector<1x2xf32> to vector<1x1x2xf32>
      tpu.vector_store %arg21[%c0_83, %c0_84, %c0_85], %142 {strides = array<i32>} : memref<1x1x2xf32, #tpu.memory_space<vmem>>, vector<1x1x2xf32>,
    } else {
    }
    return
  }
  func.func @transform_0(%arg0: i32, %arg1: i32) -> (i32, i32, i32) {
    %c0_i32 = arith.constant 0 : i32
    %c0_i32_0 = arith.constant 0 : i32
    return %arg0, %arg1, %c0_i32 : i32, i32, i32
  }
  func.func @transform_1(%arg0: i32, %arg1: i32) -> (i32, i32) {
    %c0_i32 = arith.constant 0 : i32
    %c0_i32_0 = arith.constant 0 : i32
    %c0_i32_1 = arith.constant 0 : i32
    return %c0_i32, %c0_i32_0 : i32, i32
  }
  func.func @transform_2(%arg0: i32, %arg1: i32) -> (i32, i32) {
    %c0_i32 = arith.constant 0 : i32
    %c0_i32_0 = arith.constant 0 : i32
    %c0_i32_1 = arith.constant 0 : i32
    return %c0_i32, %c0_i32_0 : i32, i32
  }
  func.func @transform_3(%arg0: i32, %arg1: i32) -> (i32, i32) {
    %c0_i32 = arith.constant 0 : i32
    %c0_i32_0 = arith.constant 0 : i32
    %c0_i32_1 = arith.constant 0 : i32
    return %c0_i32, %c0_i32_0 : i32, i32
  }
  func.func @transform_4(%arg0: i32, %arg1: i32) -> (i32, i32) {
    %c0_i32 = arith.constant 0 : i32
    %c0_i32_0 = arith.constant 0 : i32
    %c0_i32_1 = arith.constant 0 : i32
    return %c0_i32, %c0_i32_0 : i32, i32
  }
  func.func @transform_5(%arg0: i32, %arg1: i32) -> (i32, i32) {
    %c0_i32 = arith.constant 0 : i32
    %c0_i32_0 = arith.constant 0 : i32
    %c0_i32_1 = arith.constant 0 : i32
    return %c0_i32, %c0_i32_0 : i32, i32
  }
  func.func @transform_6(%arg0: i32, %arg1: i32) -> (i32, i32) {
    %c0_i32 = arith.constant 0 : i32
    %c0_i32_0 = arith.constant 0 : i32
    %c0_i32_1 = arith.constant 0 : i32
    return %c0_i32, %c0_i32_0 : i32, i32
  }
  func.func @transform_7(%arg0: i32, %arg1: i32) -> (i32, i32) {
    %c0_i32 = arith.constant 0 : i32
    %c0_i32_0 = arith.constant 0 : i32
    %c0_i32_1 = arith.constant 0 : i32
    return %c0_i32, %c0_i32_0 : i32, i32
  }
  func.func @transform_8(%arg0: i32, %arg1: i32) -> (i32, i32) {
    %c0_i32 = arith.constant 0 : i32
    %c0_i32_0 = arith.constant 0 : i32
    %c0_i32_1 = arith.constant 0 : i32
    return %c0_i32, %c0_i32_0 : i32, i32
  }
  func.func @transform_9(%arg0: i32, %arg1: i32) -> (i32, i32) {
    %c0_i32 = arith.constant 0 : i32
    %c0_i32_0 = arith.constant 0 : i32
    %c0_i32_1 = arith.constant 0 : i32
    return %c0_i32, %c0_i32_0 : i32, i32
  }
  func.func @transform_10(%arg0: i32, %arg1: i32) -> (i32, i32) {
    %c0_i32 = arith.constant 0 : i32
    %c0_i32_0 = arith.constant 0 : i32
    %c0_i32_1 = arith.constant 0 : i32
    return %c0_i32, %c0_i32_0 : i32, i32
  }
  func.func @transform_11(%arg0: i32, %arg1: i32) -> (i32, i32) {
    %c0_i32 = arith.constant 0 : i32
    %c0_i32_0 = arith.constant 0 : i32
    %c0_i32_1 = arith.constant 0 : i32
    return %c0_i32, %c0_i32_0 : i32, i32
  }
  func.func @transform_12(%arg0: i32, %arg1: i32) -> (i32, i32) {
    %c0_i32 = arith.constant 0 : i32
    %c0_i32_0 = arith.constant 0 : i32
    %c0_i32_1 = arith.constant 0 : i32
    return %c0_i32, %c0_i32_0 : i32, i32
  }
  func.func @transform_13(%arg0: i32, %arg1: i32) -> (i32, i32) {
    %c0_i32 = arith.constant 0 : i32
    %c0_i32_0 = arith.constant 0 : i32
    %c0_i32_1 = arith.constant 0 : i32
    return %c0_i32, %c0_i32_0 : i32, i32
  }
  func.func @transform_14(%arg0: i32, %arg1: i32) -> (i32, i32) {
    %c0_i32 = arith.constant 0 : i32
    %c0_i32_0 = arith.constant 0 : i32
    %c0_i32_1 = arith.constant 0 : i32
    return %c0_i32, %c0_i32_0 : i32, i32
  }
  func.func @transform_15(%arg0: i32, %arg1: i32) -> (i32, i32) {
    %c0_i32 = arith.constant 0 : i32
    %c0_i32_0 = arith.constant 0 : i32
    %c0_i32_1 = arith.constant 0 : i32
    return %c0_i32, %c0_i32_0 : i32, i32
  }
  func.func @transform_16(%arg0: i32, %arg1: i32) -> (i32, i32) {
    %c0_i32 = arith.constant 0 : i32
    %c0_i32_0 = arith.constant 0 : i32
    %c0_i32_1 = arith.constant 0 : i32
    return %c0_i32, %c0_i32_0 : i32, i32
  }
  func.func @transform_17(%arg0: i32, %arg1: i32) -> (i32, i32) {
    %c0_i32 = arith.constant 0 : i32
    %c0_i32_0 = arith.constant 0 : i32
    %c0_i32_1 = arith.constant 0 : i32
    return %c0_i32, %c0_i32_0 : i32, i32
  }
  func.func @transform_18(%arg0: i32, %arg1: i32) -> (i32, i32) {
    %c0_i32 = arith.constant 0 : i32
    %c0_i32_0 = arith.constant 0 : i32
    %c0_i32_1 = arith.constant 0 : i32
    return %c0_i32, %c0_i32_0 : i32, i32
  }
  func.func @transform_19(%arg0: i32, %arg1: i32) -> (i32, i32, i32) {
    %c0_i32 = arith.constant 0 : i32
    %c0_i32_0 = arith.constant 0 : i32
    %c0_i32_1 = arith.constant 0 : i32
    return %arg0, %c0_i32, %c0_i32_0 : i32, i32, i32
  }
}

</mosaic_0001>

<bundles_post_ra>
// kernel: mobilenet_forward.1
= control target key start
LH: loop header
LB: loop body
LE: loop exit
PB: predicated region body
PF: predicated region fallthrough
CT: control target
= control target key end

     0   :  { %s7342_s0 = inlined_call_operand.vmem [shape: bf16[2,64,32], index: 0, kind: input, shape index: {}]   ;;  %s7343_s1 = inlined_call_operand.vmem [shape: bf16[32,32], index: 1, kind: input, shape index: {}]   ;;  %s7344_s2 = inlined_call_operand.vmem [shape: bf16[1,32], index: 2, kind: input, shape index: {}]   ;;  %s7345_s3 = inlined_call_operand.vmem [shape: bf16[32,64], index: 3, kind: input, shape index: {}]   ;;  %s7346_s4 = inlined_call_operand.vmem [shape: bf16[1,64], index: 4, kind: input, shape index: {}]   ;;  %s7347_s5 = inlined_call_operand.vmem [shape: bf16[64,128], index: 5, kind: input, shape index: {}]   ;;  %s7348_s6 = inlined_call_operand.vmem [shape: bf16[1,128], index: 6, kind: input, shape index: {}]   ;;  %s7349_s7 = inlined_call_operand.vmem [shape: bf16[128,128], index: 7, kind: input, shape index: {}]   ;;  %s7350_s8 = inlined_call_operand.vmem [shape: bf16[1,128], index: 8, kind: input, shape index: {}]   ;;  %s7351_s9 = inlined_call_operand.vmem [shape: bf16[128,256], index: 9, kind: input, shape index: {}]   ;;  %s7352_s10 = inlined_call_operand.vmem [shape: bf16[1,256], index: 10, kind: input, shape index: {}]   ;;  %s7353_s11 = inlined_call_operand.vmem [shape: bf16[256,256], index: 11, kind: input, shape index: {}]   ;;  %s7354_s12 = inlined_call_operand.vmem [shape: bf16[1,256], index: 12, kind: input, shape index: {}]   ;;  %s7355_s13 = inlined_call_operand.vmem [shape: bf16[256,512], index: 13, kind: input, shape index: {}]   ;;  %s7356_s14 = inlined_call_operand.vmem [shape: bf16[1,512], index: 14, kind: input, shape index: {}]   ;;  %s7357_s15 = inlined_call_operand.vmem [shape: bf16[512,512], index: 15, kind: input, shape index: {}]   ;;  %s7358_s16 = inlined_call_operand.vmem [shape: bf16[1,512], index: 16, kind: input, shape index: {}]   ;;  %s7359_s17 = inlined_call_operand.vmem [shape: bf16[512,2], index: 17, kind: input, shape index: {}]   ;;  %s7360_s18 = inlined_call_operand.vmem [shape: f32[1,2], index: 18, kind: input, shape index: {}]   ;;  %s7361_s19 = inlined_call_operand.hbm [shape: f32[2,1,2], index: 19, kind: output, shape index: {}]  }
   0x1   :  { %7491 = sst [smem:[#allocation104_spill]] %s7342_s0 }
   0x2   :  { %7492 = sst [smem:[#allocation105_spill]] %s7343_s1 }
   0x3   :  { %7493 = sst [smem:[#allocation106_spill]] %s7344_s2 }
   0x4   :  { %7494 = sst [smem:[#allocation107_spill]] %s7345_s3 }
   0x5   :  { %7495 = sst [smem:[#allocation108_spill]] %s7346_s4 }
   0x6   :  { %7496 = sst [smem:[#allocation109_spill]] %s7347_s5 }
   0x7   :  { %7497 = sst [smem:[#allocation110_spill]] %s7360_s18 }
   0x8   :  { %7498 = sst [smem:[#allocation111_spill]] %s7361_s19 }
   0x9   :  { %24 = vsyncpa [#allocation4], 0 }
   0xa   :  { %26 = vsyncpa [#allocation4 + $0x1], 0  ;;  %s5358_s0 = smov 0   ;;  %s5360_s30 = smov 0  }
   0xb   :  { %s5362_s20 = smov 0   ;;  %s5364_s21 = smov 0  }
   0xc   :  { %s5366_s1 = smov 0   ;;  %s5368_s22 = smov 0  }
   0xd   :  { %s5370_s2 = smov 0   ;;  %s5372_s23 = smov 0  }
   0xe LB: > { %7499 = sst [smem:[#allocation6_spill]] %s5222_s0  ;;  %s4161_s24 = sadd.s32 4294967295, %s5250_s23   ;;  %s5250_s23 = sphi %s5372_s23, %s32_s23   ;;  %s5246_s2 = sphi %s5370_s2, %s7754_s2   ;;  %s5242_s22 = sphi %s5368_s22, %s7753_s22   ;;  %s5238_s1 = sphi %s5366_s1, %s7757_s1   ;;  %s5234_s21 = sphi %s5364_s21, %s7751_s21   ;;  %s5230_s20 = sphi %s5362_s20, %s7750_s20   ;;  %s5226_s30 = sphi %s5360_s30, %s7756_s30   ;;  %s5222_s0 = sphi %s5358_s0, %s7755_s0  }
   0xf   : > { %7500 = sst [smem:[#allocation7_spill]] %s5230_s20  ;;  %s4162_s25 = sadd.s32 4294967294, %s5250_s23  }
  0x10   : > { %7501 = sst [smem:[#allocation8_spill]] %s5242_s22  ;;  %s41_s3 = sadd.s32 1, %s5242_s22 }
  0x11   : > { %7502 = sst [smem:[#allocation9_spill]] %s5246_s2  ;;  %p42_p0 = scmp.ge.s32.totalorder %s41_s3, 2 }
  0x12   : > { %7503 = sst [smem:[#allocation10_spill]] %s5250_s23  ;;  %s44_s26 = sadd.s32 1, %s5246_s2 }
  0x13   : > { %p467_p1 = scmp.ne.s32.totalorder %s5230_s20, %s5226_s30  ;;  %p468_p2 = scmp.eq.s32.totalorder %s4161_s24, 3 }
  0x14   : > { %s7759_s3 = smov (%p42_p0, %s41_s3), 0  ;;  %s7761_s26 = smov (!%p42_p0, %s44_s26), %s5246_s2 }
  0x15   : > { %7504 = sst [smem:[#allocation11_spill]] %s7759_s3  ;;  %p5407_p3 = por %p468_p2, %p467_p1 }
  0x16   : > { %p473_p4 = scmp.ne.s32.totalorder %s5226_s30, %s5222_s0  ;;  %p46_p5 = scmp.ge.s32.totalorder %s7761_s26, 2 }
  0x17   : > { %s7505_s27 = scalar_select %p5407_p3, 1, 0 }
  0x18   : > { %p474_p6 = scmp.eq.s32.totalorder %s4162_s25, 3  ;;  %p4165_p7 = scmp.ge.s32.totalorder %s5250_s23, 1 }
  0x19   : > { %7506 = sst [smem:[#allocation12_spill]] %s7505_s27  ;;  %p559_p8 = scmp.lt.s32.totalorder %s5250_s23, 5 }
  0x1a   : > { %s7763_s26 = smov (%p46_p5, %s7761_s26), 0  ;;  %p5417_p9 = por %p474_p6, %p473_p4 }
  0x1b   : > { %7507 = sst [smem:[#allocation13_spill]] %s7763_s26  ;;  %p560_p10 = pnand %p4165_p7, %p559_p8 }
  0x1c   : > { %s7508_s28 = scalar_select %p5417_p9, 1, 0 }
  0x1d   : > { %s454_s29 = ssub.s32 %s5246_s2, %s7763_s26  ;;  %s457_s24 = sadd.s32 1, %s5230_s20 }
  0x1e   : > { %7509 = sst [smem:[#allocation14_spill]] %s7508_s28  ;;  %p455_p11 = scmp.eq.s32.totalorder %s454_s29, 0 }
  0x1f   : > { %563 = sbr.rel (%p560_p10) target bundleno = 2323 (0x913), region = 96 }
  0x20   : > { %s5425_s3 = scalar_select %p455_p11, %s5230_s20, %s457_s24  }
  0x22   : > { %7510 = sst [smem:[#allocation15_spill]] %s5425_s3 }
  0x26   : > { %s616_s25 = sand.u32 1, %s5226_s30   ;;  %s4166_s22 = sshll.u32 %s5234_s21, 2 }
  0x27   : > { %p619_p12 = scmp.lt.s32.totalorder %s5238_s1, 1  ;;  %p621_p13 = scmp.lt.s32.totalorder %s4166_s22, 7 }
  0x28   : > { %s7511_s29 = sld [smem:[#allocation104_spill]]  ;;  %s5436_s3 = scalar_lea.vmem [#allocation3], %s616_s25 }
  0x29   : > { %s620_s0 = scalar_select %p619_p12, %s5238_s1, 1 }
  0x2a   : > { %s7765_s22 = smov (!%p621_p13, %s4166_s22), 7  ;;  %p4169_p0 = scmp.ne.s32.totalorder %s5234_s21, 0 }
  0x2b   : > { %s4167_s23 = sshll.u32 %s620_s0, 3  ;;  %v633_v0 = vlaneseq (!%p4169_p0)  ;;  %v5252_v1 = vmov (!%p4169_p0), 0.0  }
  0x2c   : > { %s624_s28 = sadd.s32 %s4167_s23, %s7765_s22  ;;  %632 = sbr.rel (%p4169_p0) target bundleno = 51 (0x33), region = 100 }
  0x2d   : > { %s4168_s19 = sshll.u32 %s624_s28, 2  ;;  %vm635_vm0 = vcmp.lt.s32.totalorder (!%p4169_p0), %v633_v0, 512 }
  0x2e   : > { %s626_s24 = scalar_lea.vmem %s7511_s29, %s4168_s19  ;;  %637 = vst.msk [vmem:[#allocation2] sm:$0xf] (!%p4169_p0), %vm635_vm0, %v5252_v1 }
  0x33 PF: > { %s7512_s0 = sld [smem:[#allocation105_spill]]  ;;  %v5253_v3 = vmov 0.0   ;;  %vm5254_vm1 = vmmov 0   ;;  %v4748_v5 = vld [vmem:[%s626_s24] sm:$0xff]   ;;  %vm664_vm2 = vcmask 261120   ;;  %v4749_v6 = vld [vmem:[%s626_s24 + $0x8] sm:$0xff]   ;;  %v7375_v9 = vlaneseq }
  0x34   : > { %4558 = vmatprep.subr.bf16.mxu0 %v5253_v3  ;;  %4566 = vmatprep.subr.bf16.mxu1 %v5253_v3  ;;  %s7514_s23 = sld [smem:[#allocation107_spill]]  ;;  %s7519_s5 = sld [smem:[#allocation109_spill]]  ;;  %v7376_v28 = vmov 0   ;;  %vm922_vm3 = vcmask 523264   ;;  %v4756_v49 = vld [vmem:[%s7349_s7] sm:$0xff]   ;;  %v4757_v52 = vld [vmem:[%s7349_s7 + $0x8] sm:$0xff]  }
  0x35   : > { %4562 = vmatprep.mubr.msk.bf16.mxu0 %vm5254_vm1, %v5253_v3  ;;  %4570 = vmatprep.mubr.msk.bf16.mxu1 %vm5254_vm1, %v5253_v3  ;;  %v5472_v10 = vshrl.u32 %v7375_v9, 7  ;;  %s7520_s4 = sld [smem:[#allocation108_spill]]  ;;  %v4758_v53 = vld [vmem:[%s7349_s7 + $0x10] sm:$0xff]   ;;  %v4759_v54 = vld [vmem:[%s7349_s7 + $0x18] sm:$0xff]   ;;  %v4760_v55 = vld [vmem:[%s7349_s7 + $0x20] sm:$0xff]   ;;  %p4438_p1 = scmp.ne.s32.totalorder %s5234_s21, 1 }
  0x36   : > { %v4761_v56 = vld [vmem:[%s7349_s7 + $0x28] sm:$0xff]   ;;  %v4762_v57 = vld [vmem:[%s7349_s7 + $0x30] sm:$0xff]   ;;  %v4763_v58 = vld [vmem:[%s7349_s7 + $0x38] sm:$0xff]   ;;  %s7742_s24 = sld [smem:[#allocation110_spill]] (!%p4438_p1)  ;;  %vm4074_vm5 = vcmask (!%p4438_p1), 8192  }
  0x37   : > { %7516 = vst [vmem:[#allocation16_spill] sm:$0xff] %v5472_v10  ;;  %v5478_v13 = vsub.s32 0, %v5472_v10  ;;  %v4766_v59 = vld [vmem:[%s7351_s9 + $0x4] ss:$8 sps:$4 sm:$0xff]   ;;  %v897_v60 = vld [vmem:[%s7348_s6] sm:$0x1] }
  0x38   : > { %v1013_v61 = vpack.i.b16 %v897_v60, %v897_v60  ;;  %v4803_v60 = vld [vmem:[%s7353_s11 + $0x50] ss:$8 sps:$4 sm:$0xff]  }
  0x39   : > { %s7513_s18 = smov %s7512_s0  ;;  %v4746_v2 = vld [vmem:[%s7512_s0] sm:$0xff]   ;;  %s7517_s0 = sld [smem:[#allocation106_spill]]  ;;  %7518 = vst [vmem:[#allocation17_spill] sm:$0xff] %v5478_v13  ;;  %v6083_v9 = vld [vmem:[%s7355_s13 + $0x1c8] ss:$16 sps:$4 sm:$0xff]  }
  0x3a   : > { %4559 = vmatpush3.bf16.msra.mxu0 %v4746_v2  ;;  %v4747_v4 = vld [vmem:[%s7513_s18 + $0x8] sm:$0xff]   ;;  %4567 = vmatpush3.bf16.msra.mxu1 %v4746_v2  ;;  %s7515_s26 = smov %s7514_s23  ;;  %v4750_v7 = vld [vmem:[%s7514_s23] sm:$0xff]   ;;  %v4754_v32 = vld [vmem:[%s7519_s5 + $0x10] sm:$0xff]   ;;  %v1018_v0 = vrot.slane %v1013_v61, %v5478_v13  ;;  %7538 = vst [vmem:[#allocation35_spill] sm:$0xff] %v6083_v9 }
  0x3b   : > { %4560 = vmatprep.subr.bf16.mxu0 %v5253_v3  ;;  %4568 = vmatprep.subr.bf16.mxu1 %v5253_v3  ;;  %v4751_v8 = vld [vmem:[%s7515_s26 + $0x8] sm:$0xff]   ;;  %v4752_v27 = vld [vmem:[%s7519_s5] sm:$0xff]   ;;  %v4755_v33 = vld [vmem:[%s7519_s5 + $0x18] sm:$0xff]  }
  0x3c   : > { %v4753_v31 = vld [vmem:[%s7519_s5 + $0x8] sm:$0xff]   ;;  %v775_v34 = vld [vmem:[%s7520_s4] sm:$0x1] }
  0x3d   : > { %v878_v35 = vpack.i.b16 %v775_v34, %v775_v34  ;;  %v4808_v61 = vld [vmem:[%s7353_s11 + $0x64] ss:$8 sps:$4 sm:$0xff]  }
  0x3e   : > { %4561 = vmatpush3.bf16.msra.mxu0 %v4747_v4  ;;  %4569 = vmatpush3.bf16.msra.mxu1 %v4747_v4 }
  0x3f   : > { %4574 = vmatprep.subr.bf16.mxu0 %v5253_v3  ;;  %4582 = vmatprep.subr.bf16.mxu1 %v5253_v3  ;;  %v646_v11 = vld [vmem:[%s7517_s0] sm:$0x1]  ;;  %v883_v38 = vrot.slane %v878_v35, %v5478_v13 }
  0x40   : > { %v760_v12 = vpack.i.b16 %v646_v11, %v646_v11 }
  0x41   : > { %4563 = vmatmul.mubr.msk.bf16.vlgmr.msra.gmra.mrb[0].mxu0 %vm664_vm2, %v4748_v5  ;;  %4571 = vmatmul.mubr.msk.bf16.vlgmr.msra.gmra.mrb[0].mxu1 %vm664_vm2, %v4749_v6 }
  0x42   : > { %4578 = vmatprep.mubr.msk.bf16.mxu0 %vm5254_vm1, %v5253_v3  ;;  %4586 = vmatprep.mubr.msk.bf16.mxu1 %vm5254_vm1, %v5253_v3  ;;  %v765_v16 = vrot.slane %v760_v12, %v5478_v13 }
  0x43   : > { %4575 = vmatpush3.bf16.msra.mxu0 %v4750_v7  ;;  %4583 = vmatpush3.bf16.msra.mxu1 %v4750_v7 }
  0x44   : > { %4576 = vmatprep.subr.bf16.mxu0 %v5253_v3  ;;  %4584 = vmatprep.subr.bf16.mxu1 %v5253_v3 }
  0x47   : > { %4577 = vmatpush3.bf16.msra.mxu0 %v4751_v8  ;;  %4585 = vmatpush3.bf16.msra.mxu1 %v4751_v8 }
  0x48   : > { %4590 = vmatprep.subr.bf16.mxu0 %v5253_v3  ;;  %4602 = vmatprep.subr.bf16.mxu1 %v5253_v3 }
 0x114   : > { %v702_v14 = vpop.f32.mrb[0].mxu0  ;;  %v751_v17 = vpop.f32.mrb[0].mxu1 }
 0x115   : > { %v4564_v15 = vpop.f32.mrb[1].mxu0  ;;  %v4572_v19 = vpop.f32.mrb[1].mxu1 }
 0x116   : > { %v705_v18 = vpop.f32.mrb[2].mxu0  ;;  %v754_v22 = vpop.f32.mrb[2].mxu1  ;;  %v4772_v19 = vld [vmem:[%s7351_s9 + $0x24] ss:$8 sps:$4 sm:$0xff]  }
 0x117   : > { %v758_v20 = vpack.c.bf16 %v705_v18, %v702_v14  ;;  %v4565_v21 = vpop.f32.mrb[3].mxu0  ;;  %v768_v23 = vpack.c.bf16 %v754_v22, %v751_v17  ;;  %v4573_v24 = vpop.f32.mrb[3].mxu1  ;;  %v4764_v14 = vld [vmem:[%s7351_s9] ss:$8 sps:$4 sm:$0xff]   ;;  %v4767_v18 = vld [vmem:[%s7351_s9 + $0x10] ss:$8 sps:$4 sm:$0xff]  }
 0x118   : > { %v4775_v21 = vld [vmem:[%s7351_s9 + $0x34] ss:$8 sps:$4 sm:$0xff]   ;;  %v4773_v22 = vld [vmem:[%s7351_s9 + $0x30] ss:$8 sps:$4 sm:$0xff]   ;;  %v4776_v24 = vld [vmem:[%s7351_s9 + $0x40] ss:$8 sps:$4 sm:$0xff]  }
 0x119   : > { %v766_v25 = vadd.bf16 %v765_v16, %v758_v20  ;;  %v769_v26 = vadd.bf16 %v768_v23, %v765_v16  ;;  %v4769_v16 = vld [vmem:[%s7351_s9 + $0x14] ss:$8 sps:$4 sm:$0xff]   ;;  %v4770_v20 = vld [vmem:[%s7351_s9 + $0x20] ss:$8 sps:$4 sm:$0xff]   ;;  %v4778_v23 = vld [vmem:[%s7351_s9 + $0x44] ss:$8 sps:$4 sm:$0xff]  }
 0x11b   : > { %v767_v29 = vmax.bf16 %v7376_v28, %v766_v25  ;;  %v770_v30 = vmax.bf16 %v7376_v28, %v769_v26  ;;  %v4781_v25 = vld [vmem:[%s7351_s9 + $0x54] ss:$8 sps:$4 sm:$0xff]   ;;  %v4779_v26 = vld [vmem:[%s7351_s9 + $0x50] ss:$8 sps:$4 sm:$0xff]  }
 0x11d   : > { %4579 = vmatmul.mubr.msk.bf16.vlgmr.msra.gmra.mrb[4].mxu0 %vm664_vm2, %v767_v29  ;;  %4587 = vmatmul.mubr.msk.bf16.vlgmr.msra.gmra.mrb[4].mxu1 %vm664_vm2, %v770_v30  ;;  %v4782_v29 = vld [vmem:[%s7351_s9 + $0x60] ss:$8 sps:$4 sm:$0xff]   ;;  %v4787_v30 = vld [vmem:[%s7351_s9 + $0x74] ss:$8 sps:$4 sm:$0xff]  }
 0x11e   : > { %4591 = vmatpush3.bf16.msra.mxu0 %v4752_v27  ;;  %4598 = vmatprep.mubr.msk.bf16.mxu0 %vm5254_vm1, %v5253_v3 }
 0x11f   : > { %4592 = vmatprep.subr.bf16.mxu0 %v5253_v3  ;;  %4603 = vmatpush3.bf16.msra.mxu1 %v4752_v27  ;;  %v4784_v27 = vld [vmem:[%s7351_s9 + $0x64] ss:$8 sps:$4 sm:$0xff]  }
 0x120   : > { %4610 = vmatprep.mubr.msk.bf16.mxu1 %vm5254_vm1, %v5253_v3  ;;  %4604 = vmatprep.subr.bf16.mxu1 %v5253_v3 }
 0x122   : > { %4593 = vmatpush3.bf16.msra.mxu0 %v4753_v31 }
 0x123   : > { %4594 = vmatprep.subr.bf16.mxu0 %v5253_v3  ;;  %4605 = vmatpush3.bf16.msra.mxu1 %v4753_v31  ;;  %v4785_v31 = vld [vmem:[%s7351_s9 + $0x70] ss:$8 sps:$4 sm:$0xff]  }
 0x124   : > { %4606 = vmatprep.subr.bf16.mxu1 %v5253_v3 }
 0x126   : > { %4595 = vmatpush3.bf16.msra.mxu0 %v4754_v32 }
 0x127   : > { %4607 = vmatpush3.bf16.msra.mxu1 %v4754_v32  ;;  %4596 = vmatprep.subr.bf16.mxu0 %v5253_v3  ;;  %v4790_v32 = vld [vmem:[%s7353_s11 + $0x4] ss:$8 sps:$4 sm:$0xff]  }
 0x128   : > { %4608 = vmatprep.subr.bf16.mxu1 %v5253_v3 }
 0x12a   : > { %4597 = vmatpush3.bf16.msra.mxu0 %v4755_v33 }
 0x12b   : > { %4609 = vmatpush3.bf16.msra.mxu1 %v4755_v33  ;;  %4614 = vmatprep.subr.bf16.mxu0 %v5253_v3  ;;  %v1040_v33 = vld [vmem:[%s7350_s8] sm:$0x1] }
 0x12c   : > { %4634 = vmatprep.subr.bf16.mxu1 %v5253_v3  ;;  %v1173_v34 = vpack.i.b16 %v1040_v33, %v1040_v33 }
 0x1f0   : > { %v825_v36 = vpop.f32.mrb[4].mxu0  ;;  %v869_v39 = vpop.f32.mrb[4].mxu1 }
 0x1f1   : > { %v4580_v37 = vpop.f32.mrb[5].mxu0  ;;  %v4588_v41 = vpop.f32.mrb[5].mxu1 }
 0x1f2   : > { %v828_v40 = vpop.f32.mrb[6].mxu0  ;;  %v872_v44 = vpop.f32.mrb[6].mxu1  ;;  %v1178_v37 = vrot.slane %v1173_v34, %v5478_v13 }
 0x1f3   : > { %v876_v42 = vpack.c.bf16 %v828_v40, %v825_v36  ;;  %v4581_v43 = vpop.f32.mrb[7].mxu0  ;;  %v886_v45 = vpack.c.bf16 %v872_v44, %v869_v39  ;;  %v4589_v46 = vpop.f32.mrb[7].mxu1 }
 0x1f5   : > { %v884_v47 = vadd.bf16 %v883_v38, %v876_v42  ;;  %v887_v48 = vadd.bf16 %v886_v45, %v883_v38 }
 0x1f7   : > { %v885_v50 = vmax.bf16 %v7376_v28, %v884_v47  ;;  %v888_v51 = vmax.bf16 %v7376_v28, %v887_v48  ;;  %v4788_v48 = vld [vmem:[%s7353_s11] ss:$8 sps:$4 sm:$0xff]  }
 0x1f9   : > { %4599 = vmatmul.mubr.msk.bf16.vlgmr.msra.gmra.mrb[8].mxu0 %vm922_vm3, %v885_v50  ;;  %4611 = vmatmul.mubr.msk.bf16.vlgmr.msra.gmra.mrb[8].mxu1 %vm922_vm3, %v888_v51  ;;  %v4793_v50 = vld [vmem:[%s7353_s11 + $0x14] ss:$8 sps:$4 sm:$0xff]  }
 0x1fa   : > { %4615 = vmatpush3.bf16.msra.mxu0 %v4756_v49  ;;  %4630 = vmatprep.mubr.msk.bf16.mxu0 %vm5254_vm1, %v5253_v3 }
 0x1fb   : > { %4616 = vmatprep.subr.bf16.mxu0 %v5253_v3  ;;  %4635 = vmatpush3.bf16.msra.mxu1 %v4756_v49 }
 0x1fc   : > { %4650 = vmatprep.mubr.msk.bf16.mxu1 %vm5254_vm1, %v5253_v3  ;;  %4636 = vmatprep.subr.bf16.mxu1 %v5253_v3 }
 0x1fe   : > { %4617 = vmatpush3.bf16.msra.mxu0 %v4757_v52 }
 0x1ff   : > { %4618 = vmatprep.subr.bf16.mxu0 %v5253_v3  ;;  %4637 = vmatpush3.bf16.msra.mxu1 %v4757_v52  ;;  %v4791_v52 = vld [vmem:[%s7353_s11 + $0x10] ss:$8 sps:$4 sm:$0xff]  }
 0x200   : > { %4638 = vmatprep.subr.bf16.mxu1 %v5253_v3 }
 0x202   : > { %4619 = vmatpush3.bf16.msra.mxu0 %v4758_v53 }
 0x203   : > { %4620 = vmatprep.subr.bf16.mxu0 %v5253_v3  ;;  %4639 = vmatpush3.bf16.msra.mxu1 %v4758_v53  ;;  %v4796_v53 = vld [vmem:[%s7353_s11 + $0x24] ss:$8 sps:$4 sm:$0xff]  }
 0x204   : > { %4640 = vmatprep.subr.bf16.mxu1 %v5253_v3 }
 0x206   : > { %4621 = vmatpush3.bf16.msra.mxu0 %v4759_v54 }
 0x207   : > { %4622 = vmatprep.subr.bf16.mxu0 %v5253_v3  ;;  %4641 = vmatpush3.bf16.msra.mxu1 %v4759_v54  ;;  %v4794_v54 = vld [vmem:[%s7353_s11 + $0x20] ss:$8 sps:$4 sm:$0xff]  }
 0x208   : > { %4642 = vmatprep.subr.bf16.mxu1 %v5253_v3 }
 0x20a   : > { %4623 = vmatpush3.bf16.msra.mxu0 %v4760_v55 }
 0x20b   : > { %4624 = vmatprep.subr.bf16.mxu0 %v5253_v3  ;;  %4643 = vmatpush3.bf16.msra.mxu1 %v4760_v55  ;;  %v4799_v55 = vld [vmem:[%s7353_s11 + $0x34] ss:$8 sps:$4 sm:$0xff]  }
 0x20c   : > { %4644 = vmatprep.subr.bf16.mxu1 %v5253_v3 }
 0x20e   : > { %4625 = vmatpush3.bf16.msra.mxu0 %v4761_v56 }
 0x20f   : > { %4626 = vmatprep.subr.bf16.mxu0 %v5253_v3  ;;  %4645 = vmatpush3.bf16.msra.mxu1 %v4761_v56  ;;  %v4797_v56 = vld [vmem:[%s7353_s11 + $0x30] ss:$8 sps:$4 sm:$0xff]  }
 0x210   : > { %4646 = vmatprep.subr.bf16.mxu1 %v5253_v3 }
 0x212   : > { %4627 = vmatpush3.bf16.msra.mxu0 %v4762_v57 }
 0x213   : > { %4647 = vmatpush3.bf16.msra.mxu1 %v4762_v57  ;;  %4628 = vmatprep.subr.bf16.mxu0 %v5253_v3  ;;  %v4802_v57 = vld [vmem:[%s7353_s11 + $0x44] ss:$8 sps:$4 sm:$0xff]  }
 0x214   : > { %4648 = vmatprep.subr.bf16.mxu1 %v5253_v3 }
 0x216   : > { %4629 = vmatpush3.bf16.msra.mxu0 %v4763_v58 }
 0x217   : > { %4649 = vmatpush3.bf16.msra.mxu1 %v4763_v58  ;;  %1281 = vmatprep.subr.bf16.mxu0 %v4766_v59  ;;  %v4800_v58 = vld [vmem:[%s7353_s11 + $0x40] ss:$8 sps:$4 sm:$0xff]  }
 0x218   : > { %1324 = vmatprep.subr.bf16.mxu1 %v4766_v59  ;;  %v4805_v59 = vld [vmem:[%s7353_s11 + $0x54] ss:$8 sps:$4 sm:$0xff]  }
 0x2cc   : > { %v960_v62 = vpop.f32.mrb[8].mxu0  ;;  %v1004_v1 = vpop.f32.mrb[8].mxu1 }
 0x2cd   : > { %v4600_v63 = vpop.f32.mrb[9].mxu0  ;;  %v4612_v3 = vpop.f32.mrb[9].mxu1 }
 0x2ce   : > { %v963_v2 = vpop.f32.mrb[10].mxu0  ;;  %v1007_v6 = vpop.f32.mrb[10].mxu1  ;;  %v4811_v63 = vld [vmem:[%s7353_s11 + $0x74] ss:$8 sps:$4 sm:$0xff]  }
 0x2cf   : > { %v1011_v4 = vpack.c.bf16 %v963_v2, %v960_v62  ;;  %v4601_v5 = vpop.f32.mrb[11].mxu0  ;;  %v1021_v7 = vpack.c.bf16 %v1007_v6, %v1004_v1  ;;  %v4613_v8 = vpop.f32.mrb[11].mxu1  ;;  %v4806_v62 = vld [vmem:[%s7353_s11 + $0x60] ss:$8 sps:$4 sm:$0xff]   ;;  %v4814_v1 = vld [vmem:[%s7353_s11 + $0x84] ss:$8 sps:$4 sm:$0xff]  }
 0x2d0   : > { %v4812_v2 = vld [vmem:[%s7353_s11 + $0x80] ss:$8 sps:$4 sm:$0xff]   ;;  %v4817_v3 = vld [vmem:[%s7353_s11 + $0x94] ss:$8 sps:$4 sm:$0xff]   ;;  %v4820_v5 = vld [vmem:[%s7353_s11 + $0xa4] ss:$8 sps:$4 sm:$0xff]  }
 0x2d1   : > { %v1019_v11 = vadd.bf16 %v1018_v0, %v1011_v4  ;;  %v1022_v12 = vadd.bf16 %v1021_v7, %v1018_v0  ;;  %v4809_v0 = vld [vmem:[%s7353_s11 + $0x70] ss:$8 sps:$4 sm:$0xff]   ;;  %v4818_v6 = vld [vmem:[%s7353_s11 + $0xa0] ss:$8 sps:$4 sm:$0xff]   ;;  %v4823_v7 = vld [vmem:[%s7353_s11 + $0xb4] ss:$8 sps:$4 sm:$0xff]  }
 0x2d2   : > { %v4815_v4 = vld [vmem:[%s7353_s11 + $0x90] ss:$8 sps:$4 sm:$0xff]  }
 0x2d3   : > { %v1020_v15 = vmax.bf16 %v7376_v28, %v1019_v11  ;;  %v1023_v17 = vmax.bf16 %v7376_v28, %v1022_v12  ;;  %v4821_v8 = vld [vmem:[%s7353_s11 + $0xb0] ss:$8 sps:$4 sm:$0xff]   ;;  %v4826_v11 = vld [vmem:[%s7353_s11 + $0xc4] ss:$8 sps:$4 sm:$0xff]   ;;  %v4824_v12 = vld [vmem:[%s7353_s11 + $0xc0] ss:$8 sps:$4 sm:$0xff]  }
 0x2d5   : > { %4631 = vmatmul.mubr.bf16.vlgmr.msra.gmra.mrb[12].mxu0 %v1020_v15  ;;  %4651 = vmatmul.mubr.bf16.vlgmr.msra.gmra.mrb[12].mxu1 %v1023_v17  ;;  %v4827_v15 = vld [vmem:[%s7353_s11 + $0xd0] ss:$8 sps:$4 sm:$0xff]   ;;  %v4830_v17 = vld [vmem:[%s7353_s11 + $0xe0] ss:$8 sps:$4 sm:$0xff]  }
 0x2d6   : > { %1282 = vmatpush1.bf16.msra.mxu0 %v4764_v14  ;;  %1313 = vmatprep.mubr.bf16.mxu0 %v7376_v28 }
 0x2d7   : > { %1283 = vmatprep.subr.bf16.mxu0 %v4769_v16  ;;  %1325 = vmatpush1.bf16.msra.mxu1 %v4764_v14  ;;  %v4829_v14 = vld [vmem:[%s7353_s11 + $0xd4] ss:$8 sps:$4 sm:$0xff]  }
 0x2d8   : > { %1356 = vmatprep.mubr.bf16.mxu1 %v7376_v28  ;;  %1326 = vmatprep.subr.bf16.mxu1 %v4769_v16  ;;  %v4832_v16 = vld [vmem:[%s7353_s11 + $0xe4] ss:$8 sps:$4 sm:$0xff]  }
 0x2da   : > { %1284 = vmatpush1.bf16.msra.mxu0 %v4767_v18 }
 0x2db   : > { %1285 = vmatprep.subr.bf16.mxu0 %v4772_v19  ;;  %1327 = vmatpush1.bf16.msra.mxu1 %v4767_v18  ;;  %v4835_v18 = vld [vmem:[%s7353_s11 + $0xf4] ss:$8 sps:$4 sm:$0xff]  }
 0x2dc   : > { %1328 = vmatprep.subr.bf16.mxu1 %v4772_v19  ;;  %v4833_v19 = vld [vmem:[%s7353_s11 + $0xf0] ss:$8 sps:$4 sm:$0xff]  }
 0x2de   : > { %1286 = vmatpush1.bf16.msra.mxu0 %v4770_v20 }
 0x2df   : > { %1287 = vmatprep.subr.bf16.mxu0 %v4775_v21  ;;  %1329 = vmatpush1.bf16.msra.mxu1 %v4770_v20  ;;  %v5718_v20 = vld [vmem:[%s7355_s13 + $0x4] ss:$16 sps:$4 sm:$0xff]  }
 0x2e0   : > { %1330 = vmatprep.subr.bf16.mxu1 %v4775_v21  ;;  %v5723_v21 = vld [vmem:[%s7355_s13 + $0xc] ss:$16 sps:$4 sm:$0xff]  }
 0x2e2   : > { %1288 = vmatpush1.bf16.msra.mxu0 %v4773_v22 }
 0x2e3   : > { %1289 = vmatprep.subr.bf16.mxu0 %v4778_v23  ;;  %1331 = vmatpush1.bf16.msra.mxu1 %v4773_v22  ;;  %v5256_v22 = vmov 1966171168  }
 0x2e4   : > { %1332 = vmatprep.subr.bf16.mxu1 %v4778_v23  ;;  %v1379_v23 = vunpack.c.l.s4 %v5256_v22  ;;  %v5897_v22 = vld [vmem:[%s7355_s13 + $0xe4] ss:$16 sps:$4 sm:$0xff]  }
 0x2e6   : > { %1290 = vmatpush1.bf16.msra.mxu0 %v4776_v24 }
 0x2e7   : > { %1291 = vmatprep.subr.bf16.mxu0 %v4781_v25  ;;  %1333 = vmatpush1.bf16.msra.mxu1 %v4776_v24  ;;  %v1380_v24 = vunpack.c.0.s8 %v1379_v23  ;;  %v5903_v23 = vld [vmem:[%s7355_s13 + $0xec] ss:$16 sps:$4 sm:$0xff]  }
 0x2e8   : > { %1334 = vmatprep.subr.bf16.mxu1 %v4781_v25  ;;  %v4210_v25 = vld.sshfl [vmem:[%s7352_s10] sm:$0x11 pattern:$0x75316420] }
 0x2ea   : > { %1292 = vmatpush1.bf16.msra.mxu0 %v4779_v26 }
 0x2eb   : > { %1335 = vmatpush1.bf16.msra.mxu1 %v4779_v26  ;;  %1293 = vmatprep.subr.bf16.mxu0 %v4784_v27  ;;  %v5731_v26 = vsub.s32 %v1380_v24, %v5472_v10  ;;  %v5909_v24 = vld [vmem:[%s7355_s13 + $0xe0] ss:$16 sps:$4 sm:$0xff]   ;;  %v6097_v10 = vld [vmem:[%s7355_s13 + $0x1ec] ss:$16 sps:$4 sm:$0xff]  }
 0x2ec   : > { %1336 = vmatprep.subr.bf16.mxu1 %v4784_v27  ;;  %v1377_v27 = vcombine.high %v4210_v25, %v4210_v25  ;;  %7540 = vst [vmem:[#allocation37_spill] sm:$0xff] %v6097_v10 }
 0x2ed   : > { %7521 = vst [vmem:[#allocation18_spill] sm:$0xff] %v5731_v26 }
 0x2ee   : > { %1294 = vmatpush1.bf16.msra.mxu0 %v4782_v29 }
 0x2ef   : > { %1337 = vmatpush1.bf16.msra.mxu1 %v4782_v29  ;;  %1295 = vmatprep.subr.bf16.mxu0 %v4787_v30  ;;  %v1384_v29 = vrot.slane %v4210_v25, %v5731_v26  ;;  %v5916_v25 = vld [vmem:[%s7355_s13 + $0xe8] ss:$16 sps:$4 sm:$0xff]  }
 0x2f0   : > { %1338 = vmatprep.subr.bf16.mxu1 %v4787_v30  ;;  %v1391_v30 = vrot.slane %v1377_v27, %v5731_v26  ;;  %v5921_v27 = vld [vmem:[%s7355_s13 + $0x104] ss:$16 sps:$4 sm:$0xff]  }
 0x2f2   : > { %1296 = vmatpush1.bf16.msra.mxu0 %v4785_v31 }
 0x2f3   : > { %1339 = vmatpush1.bf16.msra.mxu1 %v4785_v31  ;;  %1609 = vmatprep.subr.bf16.mxu0 %v4790_v32  ;;  %v1393_v31 = vpack.i.b16 %v1384_v29, %v1384_v29  ;;  %v5927_v29 = vld [vmem:[%s7355_s13 + $0x10c] ss:$16 sps:$4 sm:$0xff]  }
 0x2f4   : > { %1652 = vmatprep.subr.bf16.mxu1 %v4790_v32  ;;  %v1400_v32 = vpack.i.b16 %v1391_v30, %v1391_v30  ;;  %v5933_v30 = vld [vmem:[%s7355_s13 + $0x100] ss:$16 sps:$4 sm:$0xff]  }
 0x3a8   : > { %v1123_v35 = vpop.f32.mrb[12].mxu0  ;;  %v1164_v38 = vpop.f32.mrb[12].mxu1 }
 0x3a9   : > { %v4632_v36 = vpop.f32.mrb[13].mxu0  ;;  %v4652_v40 = vpop.f32.mrb[13].mxu1 }
 0x3aa   : > { %v1126_v39 = vpop.f32.mrb[14].mxu0  ;;  %v1167_v43 = vpop.f32.mrb[14].mxu1 }
 0x3ab   : > { %v1171_v41 = vpack.c.bf16 %v1126_v39, %v1123_v35  ;;  %v4633_v42 = vpop.f32.mrb[15].mxu0  ;;  %v1181_v44 = vpack.c.bf16 %v1167_v43, %v1164_v38  ;;  %v4653_v45 = vpop.f32.mrb[15].mxu1  ;;  %v1398_v35 = vrot.slane %v1393_v31, %v5478_v13  ;;  %v1405_v38 = vrot.slane %v1400_v32, %v5478_v13  ;;  %v5940_v31 = vld [vmem:[%s7355_s13 + $0x108] ss:$16 sps:$4 sm:$0xff]   ;;  %v5945_v32 = vld [vmem:[%s7355_s13 + $0x124] ss:$16 sps:$4 sm:$0xff]  }
 0x3ad   : > { %v1179_v46 = vadd.bf16 %v1178_v37, %v1171_v41  ;;  %v1182_v47 = vadd.bf16 %v1181_v44, %v1178_v37 }
 0x3af   : > { %v1180_v49 = vmax.bf16 %v7376_v28, %v1179_v46  ;;  %v1183_v51 = vmax.bf16 %v7376_v28, %v1182_v47 }
 0x3b1   : > { %1314 = vmatmul.mubr.bf16.vlgmr.msra.gmra.mrb[16].mxu0 %v1180_v49  ;;  %1357 = vmatmul.mubr.bf16.vlgmr.msra.gmra.mrb[16].mxu1 %v1183_v51 }
 0x3b2   : > { %1610 = vmatpush1.bf16.msra.mxu0 %v4788_v48  ;;  %1653 = vmatpush1.bf16.msra.mxu1 %v4788_v48 }
 0x3b3   : > { %1611 = vmatprep.subr.bf16.mxu0 %v4793_v50  ;;  %1654 = vmatprep.subr.bf16.mxu1 %v4793_v50 }
 0x3b6   : > { %1612 = vmatpush1.bf16.msra.mxu0 %v4791_v52  ;;  %1655 = vmatpush1.bf16.msra.mxu1 %v4791_v52 }
 0x3b7   : > { %1613 = vmatprep.subr.bf16.mxu0 %v4796_v53  ;;  %1656 = vmatprep.subr.bf16.mxu1 %v4796_v53  ;;  %v5742_v53 = vld [vmem:[%s7355_s13] ss:$16 sps:$4 sm:$0xff]  }
 0x3ba   : > { %1614 = vmatpush1.bf16.msra.mxu0 %v4794_v54  ;;  %1657 = vmatpush1.bf16.msra.mxu1 %v4794_v54 }
 0x3bb   : > { %1615 = vmatprep.subr.bf16.mxu0 %v4799_v55  ;;  %1658 = vmatprep.subr.bf16.mxu1 %v4799_v55 }
 0x3be   : > { %1616 = vmatpush1.bf16.msra.mxu0 %v4797_v56  ;;  %1659 = vmatpush1.bf16.msra.mxu1 %v4797_v56  ;;  %v5749_v56 = vld [vmem:[%s7355_s13 + $0x8] ss:$16 sps:$4 sm:$0xff]  }
 0x3bf   : > { %1617 = vmatprep.subr.bf16.mxu0 %v4802_v57  ;;  %1660 = vmatprep.subr.bf16.mxu1 %v4802_v57  ;;  %v5754_v57 = vld [vmem:[%s7355_s13 + $0x24] ss:$16 sps:$4 sm:$0xff]  }
 0x3c2   : > { %1618 = vmatpush1.bf16.msra.mxu0 %v4800_v58  ;;  %1661 = vmatpush1.bf16.msra.mxu1 %v4800_v58  ;;  %v5759_v58 = vld [vmem:[%s7355_s13 + $0x2c] ss:$16 sps:$4 sm:$0xff]  }
 0x3c3   : > { %1619 = vmatprep.subr.bf16.mxu0 %v4805_v59  ;;  %1662 = vmatprep.subr.bf16.mxu1 %v4805_v59  ;;  %v5765_v59 = vld [vmem:[%s7355_s13 + $0x20] ss:$16 sps:$4 sm:$0xff]  }
 0x3c6   : > { %1620 = vmatpush1.bf16.msra.mxu0 %v4803_v60  ;;  %1663 = vmatpush1.bf16.msra.mxu1 %v4803_v60  ;;  %v5772_v60 = vld [vmem:[%s7355_s13 + $0x28] ss:$16 sps:$4 sm:$0xff]  }
 0x3c7   : > { %1621 = vmatprep.subr.bf16.mxu0 %v4808_v61  ;;  %1664 = vmatprep.subr.bf16.mxu1 %v4808_v61  ;;  %v5777_v61 = vld [vmem:[%s7355_s13 + $0x44] ss:$16 sps:$4 sm:$0xff]  }
 0x3ca   : > { %1622 = vmatpush1.bf16.msra.mxu0 %v4806_v62  ;;  %1665 = vmatpush1.bf16.msra.mxu1 %v4806_v62  ;;  %v5783_v62 = vld [vmem:[%s7355_s13 + $0x4c] ss:$16 sps:$4 sm:$0xff]  }
 0x3cb   : > { %1623 = vmatprep.subr.bf16.mxu0 %v4811_v63  ;;  %1666 = vmatprep.subr.bf16.mxu1 %v4811_v63  ;;  %v5789_v63 = vld [vmem:[%s7355_s13 + $0x40] ss:$16 sps:$4 sm:$0xff]  }
 0x3ce   : > { %1624 = vmatpush1.bf16.msra.mxu0 %v4809_v0  ;;  %1667 = vmatpush1.bf16.msra.mxu1 %v4809_v0  ;;  %v5796_v0 = vld [vmem:[%s7355_s13 + $0x48] ss:$16 sps:$4 sm:$0xff]  }
 0x3cf   : > { %1625 = vmatprep.subr.bf16.mxu0 %v4814_v1  ;;  %1668 = vmatprep.subr.bf16.mxu1 %v4814_v1  ;;  %v5801_v1 = vld [vmem:[%s7355_s13 + $0x64] ss:$16 sps:$4 sm:$0xff]  }
 0x3d2   : > { %1626 = vmatpush1.bf16.msra.mxu0 %v4812_v2  ;;  %1669 = vmatpush1.bf16.msra.mxu1 %v4812_v2  ;;  %v5807_v2 = vld [vmem:[%s7355_s13 + $0x6c] ss:$16 sps:$4 sm:$0xff]  }
 0x3d3   : > { %1627 = vmatprep.subr.bf16.mxu0 %v4817_v3  ;;  %1670 = vmatprep.subr.bf16.mxu1 %v4817_v3  ;;  %v5813_v3 = vld [vmem:[%s7355_s13 + $0x60] ss:$16 sps:$4 sm:$0xff]  }
 0x3d6   : > { %1628 = vmatpush1.bf16.msra.mxu0 %v4815_v4  ;;  %1671 = vmatpush1.bf16.msra.mxu1 %v4815_v4  ;;  %v5820_v4 = vld [vmem:[%s7355_s13 + $0x68] ss:$16 sps:$4 sm:$0xff]  }
 0x3d7   : > { %1629 = vmatprep.subr.bf16.mxu0 %v4820_v5  ;;  %1672 = vmatprep.subr.bf16.mxu1 %v4820_v5  ;;  %v5825_v5 = vld [vmem:[%s7355_s13 + $0x84] ss:$16 sps:$4 sm:$0xff]  }
 0x3da   : > { %1630 = vmatpush1.bf16.msra.mxu0 %v4818_v6  ;;  %1673 = vmatpush1.bf16.msra.mxu1 %v4818_v6  ;;  %v5831_v6 = vld [vmem:[%s7355_s13 + $0x8c] ss:$16 sps:$4 sm:$0xff]  }
 0x3db   : > { %1631 = vmatprep.subr.bf16.mxu0 %v4823_v7  ;;  %1674 = vmatprep.subr.bf16.mxu1 %v4823_v7  ;;  %v5837_v7 = vld [vmem:[%s7355_s13 + $0x80] ss:$16 sps:$4 sm:$0xff]  }
 0x3de   : > { %1632 = vmatpush1.bf16.msra.mxu0 %v4821_v8  ;;  %1675 = vmatpush1.bf16.msra.mxu1 %v4821_v8  ;;  %v5844_v8 = vld [vmem:[%s7355_s13 + $0x88] ss:$16 sps:$4 sm:$0xff]  }
 0x3df   : > { %1633 = vmatprep.subr.bf16.mxu0 %v4826_v11  ;;  %1676 = vmatprep.subr.bf16.mxu1 %v4826_v11  ;;  %v5849_v11 = vld [vmem:[%s7355_s13 + $0xa4] ss:$16 sps:$4 sm:$0xff]  }
 0x3e2   : > { %1634 = vmatpush1.bf16.msra.mxu0 %v4824_v12  ;;  %1677 = vmatpush1.bf16.msra.mxu1 %v4824_v12  ;;  %v5855_v12 = vld [vmem:[%s7355_s13 + $0xac] ss:$16 sps:$4 sm:$0xff]  }
 0x3e3   : > { %1635 = vmatprep.subr.bf16.mxu0 %v4829_v14  ;;  %1678 = vmatprep.subr.bf16.mxu1 %v4829_v14  ;;  %v5861_v14 = vld [vmem:[%s7355_s13 + $0xa0] ss:$16 sps:$4 sm:$0xff]  }
 0x3e6   : > { %1636 = vmatpush1.bf16.msra.mxu0 %v4827_v15  ;;  %1679 = vmatpush1.bf16.msra.mxu1 %v4827_v15  ;;  %v5868_v15 = vld [vmem:[%s7355_s13 + $0xa8] ss:$16 sps:$4 sm:$0xff]  }
 0x3e7   : > { %1637 = vmatprep.subr.bf16.mxu0 %v4832_v16  ;;  %1680 = vmatprep.subr.bf16.mxu1 %v4832_v16  ;;  %v5873_v16 = vld [vmem:[%s7355_s13 + $0xc4] ss:$16 sps:$4 sm:$0xff]  }
 0x3ea   : > { %1638 = vmatpush1.bf16.msra.mxu0 %v4830_v17  ;;  %1681 = vmatpush1.bf16.msra.mxu1 %v4830_v17  ;;  %v5879_v17 = vld [vmem:[%s7355_s13 + $0xcc] ss:$16 sps:$4 sm:$0xff]  }
 0x3eb   : > { %1639 = vmatprep.subr.bf16.mxu0 %v4835_v18  ;;  %1682 = vmatprep.subr.bf16.mxu1 %v4835_v18  ;;  %v5885_v18 = vld [vmem:[%s7355_s13 + $0xc0] ss:$16 sps:$4 sm:$0xff]  }
 0x3ee   : > { %1640 = vmatpush1.bf16.msra.mxu0 %v4833_v19  ;;  %1683 = vmatpush1.bf16.msra.mxu1 %v4833_v19  ;;  %v5892_v19 = vld [vmem:[%s7355_s13 + $0xc8] ss:$16 sps:$4 sm:$0xff]  }
 0x3ef   : > { %2129 = vmatprep.subr.bf16.mxu0 %v5718_v20  ;;  %2172 = vmatprep.subr.bf16.mxu1 %v5723_v21 }
 0x484   : > { %v1315_v33 = vpop.f32.mrb[16].mxu0  ;;  %v1358_v36 = vpop.f32.mrb[16].mxu1 }
 0x485   : > { %v1317_v34 = vpop.f32.mrb[17].mxu0  ;;  %v1360_v39 = vpop.f32.mrb[17].mxu1 }
 0x486   : > { %v1319_v37 = vpop.f32.mrb[18].mxu0  ;;  %v1362_v42 = vpop.f32.mrb[18].mxu1 }
 0x487   : > { %v1367_v40 = vpack.c.bf16 %v1319_v37, %v1315_v33  ;;  %v1321_v41 = vpop.f32.mrb[19].mxu0  ;;  %v1410_v44 = vpack.c.bf16 %v1362_v42, %v1358_v36  ;;  %v1364_v45 = vpop.f32.mrb[19].mxu1  ;;  %v5951_v33 = vld [vmem:[%s7355_s13 + $0x12c] ss:$16 sps:$4 sm:$0xff]   ;;  %v5969_v36 = vld [vmem:[%s7355_s13 + $0x144] ss:$16 sps:$4 sm:$0xff]  }
 0x488   : > { %v1368_v43 = vpack.c.bf16 %v1321_v41, %v1317_v34  ;;  %v1411_v47 = vpack.c.bf16 %v1364_v45, %v1360_v39  ;;  %v5957_v34 = vld [vmem:[%s7355_s13 + $0x120] ss:$16 sps:$4 sm:$0xff]   ;;  %v5975_v37 = vld [vmem:[%s7355_s13 + $0x14c] ss:$16 sps:$4 sm:$0xff]   ;;  %v5988_v39 = vld [vmem:[%s7355_s13 + $0x148] ss:$16 sps:$4 sm:$0xff]  }
 0x489   : > { %v1406_v46 = vadd.bf16 %v1398_v35, %v1367_v40  ;;  %v1412_v49 = vadd.bf16 %v1410_v44, %v1398_v35  ;;  %v5964_v35 = vld [vmem:[%s7355_s13 + $0x128] ss:$16 sps:$4 sm:$0xff]   ;;  %7522 = vst [vmem:[#allocation19_spill] sm:$0xff] %v5988_v39  ;;  %v5993_v40 = vld [vmem:[%s7355_s13 + $0x164] ss:$16 sps:$4 sm:$0xff]  }
 0x48a   : > { %v1407_v48 = vadd.bf16 %v1405_v38, %v1368_v43  ;;  %v1413_v50 = vadd.bf16 %v1411_v47, %v1405_v38  ;;  %v5981_v38 = vld [vmem:[%s7355_s13 + $0x140] ss:$16 sps:$4 sm:$0xff]   ;;  %7523 = vst [vmem:[#allocation20_spill] sm:$0xff] %v5993_v40  ;;  %v5999_v41 = vld [vmem:[%s7355_s13 + $0x16c] ss:$16 sps:$4 sm:$0xff]  }
 0x48b   : > { %v1414_v52 = vmax.bf16 %v7376_v28, %v1412_v49  ;;  %v1408_v54 = vmax.bf16 %v7376_v28, %v1406_v46  ;;  %7524 = vst [vmem:[#allocation21_spill] sm:$0xff] %v5999_v41  ;;  %v6005_v42 = vld [vmem:[%s7355_s13 + $0x160] ss:$16 sps:$4 sm:$0xff]   ;;  %v6012_v43 = vld [vmem:[%s7355_s13 + $0x168] ss:$16 sps:$4 sm:$0xff]  }
 0x48c   : > { %v1409_v51 = vmax.bf16 %v7376_v28, %v1407_v48  ;;  %v1415_v55 = vmax.bf16 %v7376_v28, %v1413_v50  ;;  %7525 = vst [vmem:[#allocation22_spill] sm:$0xff] %v6005_v42  ;;  %7526 = vst [vmem:[#allocation23_spill] sm:$0xff] %v6012_v43  ;;  %v6017_v44 = vld [vmem:[%s7355_s13 + $0x184] ss:$16 sps:$4 sm:$0xff]   ;;  %v6023_v45 = vld [vmem:[%s7355_s13 + $0x18c] ss:$16 sps:$4 sm:$0xff]  }
 0x48d   : > { %7527 = vst [vmem:[#allocation24_spill] sm:$0xff] %v6017_v44  ;;  %7528 = vst [vmem:[#allocation25_spill] sm:$0xff] %v6023_v45  ;;  %v6029_v46 = vld [vmem:[%s7355_s13 + $0x180] ss:$16 sps:$4 sm:$0xff]   ;;  %v6036_v47 = vld [vmem:[%s7355_s13 + $0x188] ss:$16 sps:$4 sm:$0xff]  }
 0x48e   : > { %1641 = vmatprep.mubr.bf16.mxu0 %v1409_v51  ;;  %1684 = vmatprep.mubr.bf16.mxu1 %v1415_v55  ;;  %7529 = vst [vmem:[#allocation26_spill] sm:$0xff] %v6029_v46  ;;  %7530 = vst [vmem:[#allocation27_spill] sm:$0xff] %v6036_v47  ;;  %v6041_v48 = vld [vmem:[%s7355_s13 + $0x1a4] ss:$16 sps:$4 sm:$0xff]   ;;  %v6047_v49 = vld [vmem:[%s7355_s13 + $0x1ac] ss:$16 sps:$4 sm:$0xff]  }
 0x48f   : > { %1642 = vmatmul.mubr.bf16.vlgmr.msra.gmra.mrb[20].mxu0 %v1408_v54  ;;  %1685 = vmatmul.mubr.bf16.vlgmr.msra.gmra.mrb[20].mxu1 %v1414_v52  ;;  %7531 = vst [vmem:[#allocation28_spill] sm:$0xff] %v6041_v48  ;;  %7532 = vst [vmem:[#allocation29_spill] sm:$0xff] %v6047_v49  ;;  %v6053_v50 = vld [vmem:[%s7355_s13 + $0x1a0] ss:$16 sps:$4 sm:$0xff]   ;;  %v6060_v51 = vld [vmem:[%s7355_s13 + $0x1a8] ss:$16 sps:$4 sm:$0xff]  }
 0x490   : > { %2130 = vmatpush1.bf16.msra.mxu0 %v5742_v53  ;;  %2173 = vmatpush1.bf16.msra.mxu1 %v5749_v56  ;;  %7533 = vst [vmem:[#allocation30_spill] sm:$0xff] %v6053_v50  ;;  %7534 = vst [vmem:[#allocation31_spill] sm:$0xff] %v6060_v51  ;;  %v6068_v52 = vld [vmem:[%s7355_s13 + $0x1c4] ss:$16 sps:$4 sm:$0xff]   ;;  %v6073_v54 = vld [vmem:[%s7355_s13 + $0x1cc] ss:$16 sps:$4 sm:$0xff]  }
 0x491   : > { %2131 = vmatprep.subr.bf16.mxu0 %v5754_v57  ;;  %2174 = vmatprep.subr.bf16.mxu1 %v5759_v58  ;;  %7535 = vst [vmem:[#allocation32_spill] sm:$0xff] %v6068_v52  ;;  %7536 = vst [vmem:[#allocation33_spill] sm:$0xff] %v6073_v54  ;;  %v6078_v55 = vld [vmem:[%s7355_s13 + $0x1c0] ss:$16 sps:$4 sm:$0xff]   ;;  %v6092_v28 = vld [vmem:[%s7355_s13 + $0x1e4] ss:$16 sps:$4 sm:$0xff]  }
 0x492   : > { %7537 = vst [vmem:[#allocation34_spill] sm:$0xff] %v6078_v55  ;;  %7539 = vst [vmem:[#allocation36_spill] sm:$0xff] %v6092_v28 }
 0x494   : > { %2132 = vmatpush1.bf16.msra.mxu0 %v5765_v59  ;;  %2175 = vmatpush1.bf16.msra.mxu1 %v5772_v60 }
 0x495   : > { %2133 = vmatprep.subr.bf16.mxu0 %v5777_v61  ;;  %2176 = vmatprep.subr.bf16.mxu1 %v5783_v62 }
 0x498   : > { %2134 = vmatpush1.bf16.msra.mxu0 %v5789_v63  ;;  %2177 = vmatpush1.bf16.msra.mxu1 %v5796_v0 }
 0x499   : > { %2135 = vmatprep.subr.bf16.mxu0 %v5801_v1  ;;  %2178 = vmatprep.subr.bf16.mxu1 %v5807_v2 }
 0x49c   : > { %2136 = vmatpush1.bf16.msra.mxu0 %v5813_v3  ;;  %2179 = vmatpush1.bf16.msra.mxu1 %v5820_v4 }
 0x49d   : > { %2137 = vmatprep.subr.bf16.mxu0 %v5825_v5  ;;  %2180 = vmatprep.subr.bf16.mxu1 %v5831_v6 }
 0x4a0   : > { %2138 = vmatpush1.bf16.msra.mxu0 %v5837_v7  ;;  %2181 = vmatpush1.bf16.msra.mxu1 %v5844_v8 }
 0x4a1   : > { %2139 = vmatprep.subr.bf16.mxu0 %v5849_v11  ;;  %2182 = vmatprep.subr.bf16.mxu1 %v5855_v12 }
 0x4a4   : > { %2140 = vmatpush1.bf16.msra.mxu0 %v5861_v14  ;;  %2183 = vmatpush1.bf16.msra.mxu1 %v5868_v15 }
 0x4a5   : > { %2141 = vmatprep.subr.bf16.mxu0 %v5873_v16  ;;  %2184 = vmatprep.subr.bf16.mxu1 %v5879_v17 }
 0x4a8   : > { %2142 = vmatpush1.bf16.msra.mxu0 %v5885_v18  ;;  %2185 = vmatpush1.bf16.msra.mxu1 %v5892_v19 }
 0x4a9   : > { %2143 = vmatprep.subr.bf16.mxu0 %v5897_v22  ;;  %2186 = vmatprep.subr.bf16.mxu1 %v5903_v23 }
 0x4ac   : > { %2144 = vmatpush1.bf16.msra.mxu0 %v5909_v24  ;;  %2187 = vmatpush1.bf16.msra.mxu1 %v5916_v25 }
 0x4ad   : > { %2145 = vmatprep.subr.bf16.mxu0 %v5921_v27  ;;  %2188 = vmatprep.subr.bf16.mxu1 %v5927_v29 }
 0x4b0   : > { %2146 = vmatpush1.bf16.msra.mxu0 %v5933_v30  ;;  %2189 = vmatpush1.bf16.msra.mxu1 %v5940_v31 }
 0x4b1   : > { %2147 = vmatprep.subr.bf16.mxu0 %v5945_v32  ;;  %2190 = vmatprep.subr.bf16.mxu1 %v5951_v33 }
 0x4b4   : > { %2148 = vmatpush1.bf16.msra.mxu0 %v5957_v34  ;;  %2191 = vmatpush1.bf16.msra.mxu1 %v5964_v35 }
 0x4b5   : > { %2149 = vmatprep.subr.bf16.mxu0 %v5969_v36  ;;  %2192 = vmatprep.subr.bf16.mxu1 %v5975_v37 }
 0x4b8   : > { %2150 = vmatpush1.bf16.msra.mxu0 %v5981_v38  ;;  %2193 = vmatpush1.bf16.msra.mxu1 %v5988_v39 }
 0x4b9   : > { %2151 = vmatprep.subr.bf16.mxu0 %v5993_v40  ;;  %2194 = vmatprep.subr.bf16.mxu1 %v5999_v41 }
 0x4bc   : > { %2152 = vmatpush1.bf16.msra.mxu0 %v6005_v42  ;;  %2195 = vmatpush1.bf16.msra.mxu1 %v6012_v43 }
 0x4bd   : > { %2153 = vmatprep.subr.bf16.mxu0 %v6017_v44  ;;  %2196 = vmatprep.subr.bf16.mxu1 %v6023_v45 }
 0x4c0   : > { %2154 = vmatpush1.bf16.msra.mxu0 %v6029_v46  ;;  %2197 = vmatpush1.bf16.msra.mxu1 %v6036_v47 }
 0x4c1   : > { %2155 = vmatprep.subr.bf16.mxu0 %v6041_v48  ;;  %2198 = vmatprep.subr.bf16.mxu1 %v6047_v49 }
 0x4c4   : > { %2156 = vmatpush1.bf16.msra.mxu0 %v6053_v50  ;;  %2199 = vmatpush1.bf16.msra.mxu1 %v6060_v51 }
 0x4c5   : > { %2157 = vmatprep.subr.bf16.mxu0 %v6068_v52  ;;  %2200 = vmatprep.subr.bf16.mxu1 %v6073_v54  ;;  %v6102_v52 = vld [vmem:[%s7355_s13 + $0x1e0] ss:$16 sps:$4 sm:$0xff]  }
 0x4c6   : > { %7541 = vst [vmem:[#allocation38_spill] sm:$0xff] %v6102_v52 }
 0x4c8   : > { %2158 = vmatpush1.bf16.msra.mxu0 %v6078_v55  ;;  %2201 = vmatpush1.bf16.msra.mxu1 %v6083_v9  ;;  %v6107_v55 = vld [vmem:[%s7355_s13 + $0x1e8] ss:$16 sps:$4 sm:$0xff]   ;;  %v4243_v9 = vld.sshfl [vmem:[%s7354_s12] sm:$0x11 pattern:$0x75316420] }
 0x4c9   : > { %7542 = vst [vmem:[#allocation39_spill] sm:$0xff] %v6107_v55  ;;  %2159 = vmatprep.subr.bf16.mxu0 %v6092_v28  ;;  %2202 = vmatprep.subr.bf16.mxu1 %v6097_v10  ;;  %v1705_v54 = vcombine.high %v4243_v9, %v4243_v9  ;;  %v1712_v51 = vrot.slane %v4243_v9, %v5731_v26 }
 0x4cb   : > { %v1719_v50 = vrot.slane %v1705_v54, %v5731_v26  ;;  %v1721_v28 = vpack.i.b16 %v1712_v51, %v1712_v51  ;;  %v7543_v26 = vmov 0  }
 0x4cc   : > { %2160 = vmatpush1.bf16.msra.mxu0 %v6102_v52  ;;  %2203 = vmatpush1.bf16.msra.mxu1 %v6107_v55 }
 0x4cd   : > { %2215 = vmatprep.subr.bf16.mxu0 %v5718_v20  ;;  %2258 = vmatprep.subr.bf16.mxu1 %v5723_v21  ;;  %v1728_v49 = vpack.i.b16 %v1719_v50, %v1719_v50  ;;  %v1726_v52 = vrot.slane %v1721_v28, %v5478_v13 }
 0x4cf   : > { %v1733_v20 = vrot.slane %v1728_v49, %v5478_v13 }
 0x562   : > { %v1643_v10 = vpop.f32.mrb[20].mxu0  ;;  %v1686_v55 = vpop.f32.mrb[20].mxu1 }
 0x563   : > { %v1645_v48 = vpop.f32.mrb[21].mxu0  ;;  %v1688_v21 = vpop.f32.mrb[21].mxu1 }
 0x564   : > { %v1647_v47 = vpop.f32.mrb[22].mxu0  ;;  %v1690_v44 = vpop.f32.mrb[22].mxu1 }
 0x565   : > { %v1695_v46 = vpack.c.bf16 %v1647_v47, %v1643_v10  ;;  %v1649_v45 = vpop.f32.mrb[23].mxu0  ;;  %v1738_v42 = vpack.c.bf16 %v1690_v44, %v1686_v55  ;;  %v1692_v41 = vpop.f32.mrb[23].mxu1  ;;  %v7544_v10 = vld [vmem:[#allocation19_spill] sm:$0xff]  ;;  %v6377_v55 = vld [vmem:[%s7357_s15 + $0xe8] ss:$16 sps:$4 sm:$0xff]  }
 0x566   : > { %v1696_v43 = vpack.c.bf16 %v1649_v45, %v1645_v48  ;;  %v1739_v40 = vpack.c.bf16 %v1692_v41, %v1688_v21  ;;  %v6324_v41 = vld [vmem:[%s7357_s15 + $0xa0] ss:$16 sps:$4 sm:$0xff]   ;;  %v6341_v44 = vld [vmem:[%s7357_s15 + $0xcc] ss:$16 sps:$4 sm:$0xff]   ;;  %v6360_v47 = vld [vmem:[%s7357_s15 + $0xe4] ss:$16 sps:$4 sm:$0xff]  }
 0x567   : > { %v1734_v9 = vadd.bf16 %v1726_v52, %v1695_v46  ;;  %v6122_v51 = vadd.bf16 %v1738_v42, %v1726_v52  ;;  %v6329_v42 = vld [vmem:[%s7357_s15 + $0xa8] ss:$16 sps:$4 sm:$0xff]   ;;  %v6348_v45 = vld [vmem:[%s7357_s15 + $0xc0] ss:$16 sps:$4 sm:$0xff]   ;;  %v6365_v48 = vld [vmem:[%s7357_s15 + $0xec] ss:$16 sps:$4 sm:$0xff]  }
 0x568   : > { %v1735_v54 = vadd.bf16 %v1733_v20, %v1696_v43  ;;  %v1741_v50 = vadd.bf16 %v1739_v40, %v1733_v20  ;;  %v6317_v40 = vld [vmem:[%s7357_s15 + $0xac] ss:$16 sps:$4 sm:$0xff]   ;;  %v6336_v43 = vld [vmem:[%s7357_s15 + $0xc4] ss:$16 sps:$4 sm:$0xff]   ;;  %v6353_v46 = vld [vmem:[%s7357_s15 + $0xc8] ss:$16 sps:$4 sm:$0xff]  }
 0x569   : > { %v1736_v28 = vmax.bf16 %v7543_v26, %v1734_v9  ;;  %v6372_v52 = vld [vmem:[%s7357_s15 + $0xe0] ss:$16 sps:$4 sm:$0xff]   ;;  %v6384_v20 = vld [vmem:[%s7357_s15 + $0x104] ss:$16 sps:$4 sm:$0xff]   ;;  %v6389_v21 = vld [vmem:[%s7357_s15 + $0x10c] ss:$16 sps:$4 sm:$0xff]  }
 0x56a   : > { %v1737_v39 = vmax.bf16 %v7543_v26, %v1735_v54  ;;  %v1743_v49 = vmax.bf16 %v7543_v26, %v1741_v50  ;;  %v6396_v9 = vld [vmem:[%s7357_s15 + $0x100] ss:$16 sps:$4 sm:$0xff]   ;;  %v6401_v54 = vld [vmem:[%s7357_s15 + $0x108] ss:$16 sps:$4 sm:$0xff]   ;;  %v6413_v50 = vld [vmem:[%s7357_s15 + $0x12c] ss:$16 sps:$4 sm:$0xff]  }
 0x56c   : > { %2161 = vmatprep.mubr.bf16.mxu0 %v1737_v39  ;;  %2204 = vmatprep.mubr.bf16.mxu1 %v1737_v39  ;;  %v6312_v39 = vld [vmem:[%s7357_s15 + $0xa4] ss:$16 sps:$4 sm:$0xff]  }
 0x56d   : > { %2162 = vmatmul.mubr.bf16.vlgmr.msra.gmra.mrb[24].mxu0 %v1736_v28  ;;  %2205 = vmatmul.mubr.bf16.vlgmr.msra.gmra.mrb[24].mxu1 %v1736_v28  ;;  %v6420_v28 = vld [vmem:[%s7357_s15 + $0x120] ss:$16 sps:$4 sm:$0xff]  }
 0x56e   : > { %2216 = vmatpush1.bf16.msra.mxu0 %v5742_v53  ;;  %2259 = vmatpush1.bf16.msra.mxu1 %v5749_v56  ;;  %v7545_v53 = vld [vmem:[#allocation20_spill] sm:$0xff]  ;;  %v7546_v56 = vld [vmem:[#allocation21_spill] sm:$0xff] }
 0x56f   : > { %2217 = vmatprep.subr.bf16.mxu0 %v5754_v57  ;;  %2260 = vmatprep.subr.bf16.mxu1 %v5759_v58  ;;  %v7547_v57 = vld [vmem:[#allocation22_spill] sm:$0xff]  ;;  %v7548_v58 = vld [vmem:[#allocation23_spill] sm:$0xff] }
 0x570   : > { %2247 = vmatprep.mubr.bf16.mxu0 %v1743_v49  ;;  %2290 = vmatprep.mubr.bf16.mxu1 %v1743_v49  ;;  %v6425_v49 = vld [vmem:[%s7357_s15 + $0x128] ss:$16 sps:$4 sm:$0xff]  }
 0x571   : > { %7565 = vst [vmem:[#allocation19_spill] sm:$0xff] %v6425_v49 }
 0x572   : > { %2218 = vmatpush1.bf16.msra.mxu0 %v5765_v59  ;;  %2261 = vmatpush1.bf16.msra.mxu1 %v5772_v60  ;;  %v7549_v59 = vld [vmem:[#allocation24_spill] sm:$0xff]  ;;  %v7550_v60 = vld [vmem:[#allocation25_spill] sm:$0xff] }
 0x573   : > { %2219 = vmatprep.subr.bf16.mxu0 %v5777_v61  ;;  %2262 = vmatprep.subr.bf16.mxu1 %v5783_v62  ;;  %v7551_v61 = vld [vmem:[#allocation26_spill] sm:$0xff]  ;;  %v7552_v62 = vld [vmem:[#allocation27_spill] sm:$0xff] }
 0x576   : > { %2220 = vmatpush1.bf16.msra.mxu0 %v5789_v63  ;;  %2263 = vmatpush1.bf16.msra.mxu1 %v5796_v0  ;;  %v7553_v63 = vld [vmem:[#allocation28_spill] sm:$0xff]  ;;  %v7554_v0 = vld [vmem:[#allocation29_spill] sm:$0xff] }
 0x577   : > { %2221 = vmatprep.subr.bf16.mxu0 %v5801_v1  ;;  %2264 = vmatprep.subr.bf16.mxu1 %v5807_v2  ;;  %v7555_v1 = vld [vmem:[#allocation30_spill] sm:$0xff]  ;;  %v7556_v2 = vld [vmem:[#allocation31_spill] sm:$0xff] }
 0x57a   : > { %2222 = vmatpush1.bf16.msra.mxu0 %v5813_v3  ;;  %2265 = vmatpush1.bf16.msra.mxu1 %v5820_v4  ;;  %v7557_v3 = vld [vmem:[#allocation32_spill] sm:$0xff]  ;;  %v7558_v4 = vld [vmem:[#allocation33_spill] sm:$0xff] }
 0x57b   : > { %2223 = vmatprep.subr.bf16.mxu0 %v5825_v5  ;;  %2266 = vmatprep.subr.bf16.mxu1 %v5831_v6  ;;  %v7559_v5 = vld [vmem:[#allocation34_spill] sm:$0xff]  ;;  %v7560_v6 = vld [vmem:[#allocation35_spill] sm:$0xff] }
 0x57e   : > { %2224 = vmatpush1.bf16.msra.mxu0 %v5837_v7  ;;  %2267 = vmatpush1.bf16.msra.mxu1 %v5844_v8  ;;  %v7561_v7 = vld [vmem:[#allocation36_spill] sm:$0xff]  ;;  %v7562_v8 = vld [vmem:[#allocation37_spill] sm:$0xff] }
 0x57f   : > { %2225 = vmatprep.subr.bf16.mxu0 %v5849_v11  ;;  %2268 = vmatprep.subr.bf16.mxu1 %v5855_v12  ;;  %v6190_v11 = vld [vmem:[%s7357_s15 + $0x4] ss:$16 sps:$4 sm:$0xff]   ;;  %v6195_v12 = vld [vmem:[%s7357_s15 + $0xc] ss:$16 sps:$4 sm:$0xff]  }
 0x582   : > { %2226 = vmatpush1.bf16.msra.mxu0 %v5861_v14  ;;  %2269 = vmatpush1.bf16.msra.mxu1 %v5868_v15  ;;  %v1742_v14 = vmax.bf16 %v7543_v26, %v6122_v51  ;;  %v7563_v15 = vld [vmem:[#allocation38_spill] sm:$0xff] }
 0x583   : > { %2227 = vmatprep.subr.bf16.mxu0 %v5873_v16  ;;  %2270 = vmatprep.subr.bf16.mxu1 %v5879_v17  ;;  %v7564_v16 = vld [vmem:[#allocation39_spill] sm:$0xff] }
 0x584   : > { %v6204_v17 = vld [vmem:[%s7357_s15] ss:$16 sps:$4 sm:$0xff]   ;;  %v6408_v51 = vld [vmem:[%s7357_s15 + $0x124] ss:$16 sps:$4 sm:$0xff]  }
 0x586   : > { %2228 = vmatpush1.bf16.msra.mxu0 %v5885_v18  ;;  %2271 = vmatpush1.bf16.msra.mxu1 %v5892_v19  ;;  %v6209_v18 = vld [vmem:[%s7357_s15 + $0x8] ss:$16 sps:$4 sm:$0xff]   ;;  %v6216_v19 = vld [vmem:[%s7357_s15 + $0x24] ss:$16 sps:$4 sm:$0xff]  }
 0x587   : > { %2229 = vmatprep.subr.bf16.mxu0 %v5897_v22  ;;  %2272 = vmatprep.subr.bf16.mxu1 %v5903_v23  ;;  %v6221_v22 = vld [vmem:[%s7357_s15 + $0x2c] ss:$16 sps:$4 sm:$0xff]   ;;  %v6228_v23 = vld [vmem:[%s7357_s15 + $0x20] ss:$16 sps:$4 sm:$0xff]  }
 0x58a   : > { %2230 = vmatpush1.bf16.msra.mxu0 %v5909_v24  ;;  %2273 = vmatpush1.bf16.msra.mxu1 %v5916_v25  ;;  %v6233_v24 = vld [vmem:[%s7357_s15 + $0x28] ss:$16 sps:$4 sm:$0xff]   ;;  %v6240_v25 = vld [vmem:[%s7357_s15 + $0x44] ss:$16 sps:$4 sm:$0xff]  }
 0x58b   : > { %2231 = vmatprep.subr.bf16.mxu0 %v5921_v27  ;;  %2274 = vmatprep.subr.bf16.mxu1 %v5927_v29  ;;  %v6245_v27 = vld [vmem:[%s7357_s15 + $0x4c] ss:$16 sps:$4 sm:$0xff]   ;;  %v6252_v29 = vld [vmem:[%s7357_s15 + $0x40] ss:$16 sps:$4 sm:$0xff]  }
 0x58e   : > { %2232 = vmatpush1.bf16.msra.mxu0 %v5933_v30  ;;  %2275 = vmatpush1.bf16.msra.mxu1 %v5940_v31  ;;  %v6257_v30 = vld [vmem:[%s7357_s15 + $0x48] ss:$16 sps:$4 sm:$0xff]   ;;  %v6264_v31 = vld [vmem:[%s7357_s15 + $0x64] ss:$16 sps:$4 sm:$0xff]  }
 0x58f   : > { %2233 = vmatprep.subr.bf16.mxu0 %v5945_v32  ;;  %2276 = vmatprep.subr.bf16.mxu1 %v5951_v33  ;;  %v6269_v32 = vld [vmem:[%s7357_s15 + $0x6c] ss:$16 sps:$4 sm:$0xff]   ;;  %v6276_v33 = vld [vmem:[%s7357_s15 + $0x60] ss:$16 sps:$4 sm:$0xff]  }
 0x592   : > { %2234 = vmatpush1.bf16.msra.mxu0 %v5957_v34  ;;  %2277 = vmatpush1.bf16.msra.mxu1 %v5964_v35  ;;  %v6281_v34 = vld [vmem:[%s7357_s15 + $0x68] ss:$16 sps:$4 sm:$0xff]   ;;  %v6288_v35 = vld [vmem:[%s7357_s15 + $0x84] ss:$16 sps:$4 sm:$0xff]  }
 0x593   : > { %2235 = vmatprep.subr.bf16.mxu0 %v5969_v36  ;;  %2278 = vmatprep.subr.bf16.mxu1 %v5975_v37  ;;  %v6293_v36 = vld [vmem:[%s7357_s15 + $0x8c] ss:$16 sps:$4 sm:$0xff]   ;;  %v6300_v37 = vld [vmem:[%s7357_s15 + $0x80] ss:$16 sps:$4 sm:$0xff]  }
 0x596   : > { %2236 = vmatpush1.bf16.msra.mxu0 %v5981_v38  ;;  %2279 = vmatpush1.bf16.msra.mxu1 %v7544_v10  ;;  %v6305_v38 = vld [vmem:[%s7357_s15 + $0x88] ss:$16 sps:$4 sm:$0xff]   ;;  %v6432_v10 = vld [vmem:[%s7357_s15 + $0x144] ss:$16 sps:$4 sm:$0xff]  }
 0x597   : > { %2237 = vmatprep.subr.bf16.mxu0 %v7545_v53  ;;  %2280 = vmatprep.subr.bf16.mxu1 %v7546_v56  ;;  %7566 = vst [vmem:[#allocation20_spill] sm:$0xff] %v6432_v10  ;;  %v6437_v53 = vld [vmem:[%s7357_s15 + $0x14c] ss:$16 sps:$4 sm:$0xff]   ;;  %v6444_v56 = vld [vmem:[%s7357_s15 + $0x140] ss:$16 sps:$4 sm:$0xff]  }
 0x598   : > { %7567 = vst [vmem:[#allocation21_spill] sm:$0xff] %v6437_v53  ;;  %7568 = vst [vmem:[#allocation22_spill] sm:$0xff] %v6444_v56 }
 0x59a   : > { %2238 = vmatpush1.bf16.msra.mxu0 %v7547_v57  ;;  %2281 = vmatpush1.bf16.msra.mxu1 %v7548_v58  ;;  %v6449_v57 = vld [vmem:[%s7357_s15 + $0x148] ss:$16 sps:$4 sm:$0xff]   ;;  %v6456_v58 = vld [vmem:[%s7357_s15 + $0x164] ss:$16 sps:$4 sm:$0xff]  }
 0x59b   : > { %2239 = vmatprep.subr.bf16.mxu0 %v7549_v59  ;;  %2282 = vmatprep.subr.bf16.mxu1 %v7550_v60  ;;  %7569 = vst [vmem:[#allocation23_spill] sm:$0xff] %v6449_v57  ;;  %7570 = vst [vmem:[#allocation24_spill] sm:$0xff] %v6456_v58  ;;  %v6461_v59 = vld [vmem:[%s7357_s15 + $0x16c] ss:$16 sps:$4 sm:$0xff]   ;;  %v6468_v60 = vld [vmem:[%s7357_s15 + $0x160] ss:$16 sps:$4 sm:$0xff]  }
 0x59c   : > { %7571 = vst [vmem:[#allocation25_spill] sm:$0xff] %v6461_v59  ;;  %7572 = vst [vmem:[#allocation26_spill] sm:$0xff] %v6468_v60 }
 0x59e   : > { %2240 = vmatpush1.bf16.msra.mxu0 %v7551_v61  ;;  %2283 = vmatpush1.bf16.msra.mxu1 %v7552_v62  ;;  %v6473_v61 = vld [vmem:[%s7357_s15 + $0x168] ss:$16 sps:$4 sm:$0xff]   ;;  %v6480_v62 = vld [vmem:[%s7357_s15 + $0x184] ss:$16 sps:$4 sm:$0xff]  }
 0x59f   : > { %2241 = vmatprep.subr.bf16.mxu0 %v7553_v63  ;;  %2284 = vmatprep.subr.bf16.mxu1 %v7554_v0  ;;  %7573 = vst [vmem:[#allocation27_spill] sm:$0xff] %v6473_v61  ;;  %7574 = vst [vmem:[#allocation28_spill] sm:$0xff] %v6480_v62  ;;  %v6485_v63 = vld [vmem:[%s7357_s15 + $0x18c] ss:$16 sps:$4 sm:$0xff]   ;;  %v6492_v0 = vld [vmem:[%s7357_s15 + $0x180] ss:$16 sps:$4 sm:$0xff]  }
 0x5a0   : > { %7575 = vst [vmem:[#allocation29_spill] sm:$0xff] %v6485_v63  ;;  %7576 = vst [vmem:[#allocation30_spill] sm:$0xff] %v6492_v0 }
 0x5a2   : > { %2242 = vmatpush1.bf16.msra.mxu0 %v7555_v1  ;;  %2285 = vmatpush1.bf16.msra.mxu1 %v7556_v2  ;;  %v6497_v1 = vld [vmem:[%s7357_s15 + $0x188] ss:$16 sps:$4 sm:$0xff]   ;;  %v6504_v2 = vld [vmem:[%s7357_s15 + $0x1a4] ss:$16 sps:$4 sm:$0xff]  }
 0x5a3   : > { %2243 = vmatprep.subr.bf16.mxu0 %v7557_v3  ;;  %2286 = vmatprep.subr.bf16.mxu1 %v7558_v4  ;;  %7577 = vst [vmem:[#allocation31_spill] sm:$0xff] %v6497_v1  ;;  %7578 = vst [vmem:[#allocation32_spill] sm:$0xff] %v6504_v2  ;;  %v6509_v3 = vld [vmem:[%s7357_s15 + $0x1ac] ss:$16 sps:$4 sm:$0xff]   ;;  %v6516_v4 = vld [vmem:[%s7357_s15 + $0x1a0] ss:$16 sps:$4 sm:$0xff]  }
 0x5a4   : > { %7579 = vst [vmem:[#allocation33_spill] sm:$0xff] %v6509_v3  ;;  %7580 = vst [vmem:[#allocation34_spill] sm:$0xff] %v6516_v4 }
 0x5a6   : > { %2244 = vmatpush1.bf16.msra.mxu0 %v7559_v5  ;;  %2287 = vmatpush1.bf16.msra.mxu1 %v7560_v6  ;;  %v6521_v5 = vld [vmem:[%s7357_s15 + $0x1a8] ss:$16 sps:$4 sm:$0xff]   ;;  %v6528_v6 = vld [vmem:[%s7357_s15 + $0x1c4] ss:$16 sps:$4 sm:$0xff]  }
 0x5a7   : > { %2245 = vmatprep.subr.bf16.mxu0 %v7561_v7  ;;  %2288 = vmatprep.subr.bf16.mxu1 %v7562_v8  ;;  %7581 = vst [vmem:[#allocation35_spill] sm:$0xff] %v6521_v5  ;;  %7582 = vst [vmem:[#allocation36_spill] sm:$0xff] %v6528_v6  ;;  %v6533_v7 = vld [vmem:[%s7357_s15 + $0x1cc] ss:$16 sps:$4 sm:$0xff]   ;;  %v6540_v8 = vld [vmem:[%s7357_s15 + $0x1c0] ss:$16 sps:$4 sm:$0xff]  }
 0x5a8   : > { %7583 = vst [vmem:[#allocation37_spill] sm:$0xff] %v6533_v7  ;;  %7584 = vst [vmem:[#allocation38_spill] sm:$0xff] %v6540_v8 }
 0x5aa   : > { %2246 = vmatpush1.bf16.msra.mxu0 %v7563_v15  ;;  %2289 = vmatpush1.bf16.msra.mxu1 %v7564_v16  ;;  %v6552_v15 = vld [vmem:[%s7357_s15 + $0x1e4] ss:$16 sps:$4 sm:$0xff]   ;;  %v6557_v16 = vld [vmem:[%s7357_s15 + $0x1ec] ss:$16 sps:$4 sm:$0xff]  }
 0x5ab   : > { %3147 = vmatprep.subr.bf16.mxu0 %v6190_v11  ;;  %3233 = vmatprep.subr.bf16.mxu1 %v6195_v12  ;;  %7586 = vst [vmem:[#allocation40_spill] sm:$0xff] %v6552_v15  ;;  %7587 = vst [vmem:[#allocation41_spill] sm:$0xff] %v6557_v16 }
 0x5ad   : > { %2248 = vmatmul.mubr.bf16.vlgmr.msra.gmra.mrb[28].mxu0 %v1742_v14  ;;  %2291 = vmatmul.mubr.bf16.vlgmr.msra.gmra.mrb[28].mxu1 %v1742_v14  ;;  %v6545_v14 = vld [vmem:[%s7357_s15 + $0x1c8] ss:$16 sps:$4 sm:$0xff]  }
 0x5ae   : > { %3148 = vmatpush1.bf16.msra.mxu0 %v6204_v17  ;;  %3234 = vmatpush1.bf16.msra.mxu1 %v6209_v18  ;;  %7585 = vst [vmem:[#allocation39_spill] sm:$0xff] %v6545_v14 }
 0x5af   : > { %3149 = vmatprep.subr.bf16.mxu0 %v6216_v19  ;;  %3235 = vmatprep.subr.bf16.mxu1 %v6221_v22 }
 0x5b2   : > { %3150 = vmatpush1.bf16.msra.mxu0 %v6228_v23  ;;  %3236 = vmatpush1.bf16.msra.mxu1 %v6233_v24 }
 0x5b3   : > { %3151 = vmatprep.subr.bf16.mxu0 %v6240_v25  ;;  %3237 = vmatprep.subr.bf16.mxu1 %v6245_v27 }
 0x5b6   : > { %3152 = vmatpush1.bf16.msra.mxu0 %v6252_v29  ;;  %3238 = vmatpush1.bf16.msra.mxu1 %v6257_v30 }
 0x5b7   : > { %3153 = vmatprep.subr.bf16.mxu0 %v6264_v31  ;;  %3239 = vmatprep.subr.bf16.mxu1 %v6269_v32 }
 0x5ba   : > { %3154 = vmatpush1.bf16.msra.mxu0 %v6276_v33  ;;  %3240 = vmatpush1.bf16.msra.mxu1 %v6281_v34 }
 0x5bb   : > { %3155 = vmatprep.subr.bf16.mxu0 %v6288_v35  ;;  %3241 = vmatprep.subr.bf16.mxu1 %v6293_v36 }
 0x5be   : > { %3156 = vmatpush1.bf16.msra.mxu0 %v6300_v37  ;;  %3242 = vmatpush1.bf16.msra.mxu1 %v6305_v38 }
 0x5bf   : > { %3157 = vmatprep.subr.bf16.mxu0 %v6312_v39  ;;  %3243 = vmatprep.subr.bf16.mxu1 %v6317_v40 }
 0x5c2   : > { %3158 = vmatpush1.bf16.msra.mxu0 %v6324_v41  ;;  %3244 = vmatpush1.bf16.msra.mxu1 %v6329_v42 }
 0x5c3   : > { %3159 = vmatprep.subr.bf16.mxu0 %v6336_v43  ;;  %3245 = vmatprep.subr.bf16.mxu1 %v6341_v44 }
 0x5c6   : > { %3160 = vmatpush1.bf16.msra.mxu0 %v6348_v45  ;;  %3246 = vmatpush1.bf16.msra.mxu1 %v6353_v46 }
 0x5c7   : > { %3161 = vmatprep.subr.bf16.mxu0 %v6360_v47  ;;  %3247 = vmatprep.subr.bf16.mxu1 %v6365_v48 }
 0x5ca   : > { %3162 = vmatpush1.bf16.msra.mxu0 %v6372_v52  ;;  %3248 = vmatpush1.bf16.msra.mxu1 %v6377_v55 }
 0x5cb   : > { %3163 = vmatprep.subr.bf16.mxu0 %v6384_v20  ;;  %3249 = vmatprep.subr.bf16.mxu1 %v6389_v21 }
 0x5ce   : > { %3164 = vmatpush1.bf16.msra.mxu0 %v6396_v9  ;;  %3250 = vmatpush1.bf16.msra.mxu1 %v6401_v54 }
 0x5cf   : > { %3165 = vmatprep.subr.bf16.mxu0 %v6408_v51  ;;  %3251 = vmatprep.subr.bf16.mxu1 %v6413_v50 }
 0x5d2   : > { %3166 = vmatpush1.bf16.msra.mxu0 %v6420_v28  ;;  %3252 = vmatpush1.bf16.msra.mxu1 %v6425_v49 }
 0x5d3   : > { %3167 = vmatprep.subr.bf16.mxu0 %v6432_v10  ;;  %3253 = vmatprep.subr.bf16.mxu1 %v6437_v53 }
 0x5d6   : > { %3168 = vmatpush1.bf16.msra.mxu0 %v6444_v56  ;;  %3254 = vmatpush1.bf16.msra.mxu1 %v6449_v57 }
 0x5d7   : > { %3169 = vmatprep.subr.bf16.mxu0 %v6456_v58  ;;  %3255 = vmatprep.subr.bf16.mxu1 %v6461_v59 }
 0x5da   : > { %3170 = vmatpush1.bf16.msra.mxu0 %v6468_v60  ;;  %3256 = vmatpush1.bf16.msra.mxu1 %v6473_v61 }
 0x5db   : > { %3171 = vmatprep.subr.bf16.mxu0 %v6480_v62  ;;  %3257 = vmatprep.subr.bf16.mxu1 %v6485_v63 }
 0x5de   : > { %3172 = vmatpush1.bf16.msra.mxu0 %v6492_v0  ;;  %3258 = vmatpush1.bf16.msra.mxu1 %v6497_v1 }
 0x5df   : > { %3173 = vmatprep.subr.bf16.mxu0 %v6504_v2  ;;  %3259 = vmatprep.subr.bf16.mxu1 %v6509_v3 }
 0x5e2   : > { %3174 = vmatpush1.bf16.msra.mxu0 %v6516_v4  ;;  %3260 = vmatpush1.bf16.msra.mxu1 %v6521_v5  ;;  %v7592_v5 = vld [vmem:[#allocation18_spill] sm:$0xff] }
 0x5e3   : > { %3175 = vmatprep.subr.bf16.mxu0 %v6528_v6  ;;  %3261 = vmatprep.subr.bf16.mxu1 %v6533_v7  ;;  %v6564_v6 = vld [vmem:[%s7357_s15 + $0x1e0] ss:$16 sps:$4 sm:$0xff]   ;;  %v6569_v7 = vld [vmem:[%s7357_s15 + $0x1e8] ss:$16 sps:$4 sm:$0xff]  }
 0x5e4   : > { %7588 = vst [vmem:[#allocation42_spill] sm:$0xff] %v6564_v6  ;;  %7589 = vst [vmem:[#allocation43_spill] sm:$0xff] %v6569_v7 }
 0x5e6   : > { %3176 = vmatpush1.bf16.msra.mxu0 %v6540_v8  ;;  %3262 = vmatpush1.bf16.msra.mxu1 %v6545_v14  ;;  %v6576_v8 = vld [vmem:[%s7357_s15 + $0x204] ss:$16 sps:$4 sm:$0xff]   ;;  %v6581_v14 = vld [vmem:[%s7357_s15 + $0x20c] ss:$16 sps:$4 sm:$0xff]  }
 0x5e7   : > { %3177 = vmatprep.subr.bf16.mxu0 %v6552_v15  ;;  %3263 = vmatprep.subr.bf16.mxu1 %v6557_v16  ;;  %7590 = vst [vmem:[#allocation44_spill] sm:$0xff] %v6576_v8  ;;  %7591 = vst [vmem:[#allocation45_spill] sm:$0xff] %v6581_v14  ;;  %v4308_v16 = vld.sshfl [vmem:[%s7356_s14] sm:$0x33 pattern:$0x75316420] }
 0x5e8   : > { %v2313_v15 = vcombine.high %v4308_v16, %v4308_v16  ;;  %v6592_v3 = vrot.slane %v4308_v16, %v7592_v5 }
 0x5ea   : > { %3178 = vmatpush1.bf16.msra.mxu0 %v6564_v6  ;;  %3264 = vmatpush1.bf16.msra.mxu1 %v6569_v7  ;;  %v2327_v4 = vrot.slane %v2313_v15, %v7592_v5  ;;  %v2331_v6 = vpack.i.b16 %v6592_v3, %v6592_v3  ;;  %v6702_v5 = vld [vmem:[%s7357_s15 + $0x284] ss:$16 sps:$4 sm:$0xff]  }
 0x5eb   : > { %3190 = vmatprep.subr.bf16.mxu0 %v6576_v8  ;;  %3276 = vmatprep.subr.bf16.mxu1 %v6581_v14  ;;  %7607 = vst [vmem:[#allocation60_spill] sm:$0xff] %v6702_v5 }
 0x5ec   : > { %v2329_v2 = vcombine.high %v2327_v4, %v2327_v4  ;;  %v2338_v1 = vpack.i.b16 %v2327_v4, %v2327_v4  ;;  %v6599_v62 = vrot.slane %v2331_v6, %v5478_v13 }
 0x5ee   : > { %v2352_v7 = vpack.i.b16 %v2329_v2, %v2329_v2  ;;  %v6604_v15 = vrot.slane %v2338_v1, %v5478_v13 }
 0x5f0   : > { %v6609_v59 = vrot.slane %v2352_v7, %v5478_v13  ;;  %v6642_v7 = vld [vmem:[%s7357_s15 + $0x220] ss:$16 sps:$4 sm:$0xff]  }
 0x5f1   : > { %7597 = vst [vmem:[#allocation50_spill] sm:$0xff] %v6642_v7 }
 0x640   : > { %v2163_v0 = vpop.f32.mrb[24].mxu0  ;;  %v6596_v8 = vpop.f32.mrb[24].mxu1 }
 0x641   : > { %v2165_v14 = vpop.f32.mrb[25].mxu0  ;;  %v2208_v63 = vpop.f32.mrb[25].mxu1 }
 0x642   : > { %v2167_v61 = vpop.f32.mrb[26].mxu0  ;;  %v6601_v60 = vpop.f32.mrb[26].mxu1 }
 0x643   : > { %v2301_v16 = vpack.c.bf16 %v2167_v61, %v2163_v0  ;;  %v2169_v4 = vpop.f32.mrb[27].mxu0  ;;  %v2212_v2 = vpop.f32.mrb[27].mxu1  ;;  %v6618_v61 = vld [vmem:[%s7357_s15 + $0x200] ss:$16 sps:$4 sm:$0xff]   ;;  %v6623_v0 = vld [vmem:[%s7357_s15 + $0x208] ss:$16 sps:$4 sm:$0xff]  }
 0x644   : > { %v2302_v58 = vpack.c.bf16 %v2169_v4, %v2165_v14  ;;  %v2304_v57 = vpack.c.bf16 %v2212_v2, %v2208_v63  ;;  %7593 = vst [vmem:[#allocation46_spill] sm:$0xff] %v6618_v61  ;;  %7594 = vst [vmem:[#allocation47_spill] sm:$0xff] %v6623_v0  ;;  %v6647_v14 = vld [vmem:[%s7357_s15 + $0x228] ss:$16 sps:$4 sm:$0xff]   ;;  %v6666_v4 = vld [vmem:[%s7357_s15 + $0x240] ss:$16 sps:$4 sm:$0xff]  }
 0x645   : > { %v2358_v6 = vadd.bf16 %v6599_v62, %v2301_v16  ;;  %7598 = vst [vmem:[#allocation51_spill] sm:$0xff] %v6647_v14  ;;  %v6657_v16 = vld [vmem:[%s7357_s15 + $0x24c] ss:$16 sps:$4 sm:$0xff]   ;;  %7601 = vst [vmem:[#allocation54_spill] sm:$0xff] %v6666_v4  ;;  %v6671_v2 = vld [vmem:[%s7357_s15 + $0x248] ss:$16 sps:$4 sm:$0xff]  }
 0x646   : > { %v2359_v56 = vadd.bf16 %v6604_v15, %v2302_v58  ;;  %v2361_v53 = vadd.bf16 %v6609_v59, %v2304_v57  ;;  %v6629_v57 = vld [vmem:[%s7357_s15 + $0x224] ss:$16 sps:$4 sm:$0xff]   ;;  %7600 = vst [vmem:[#allocation53_spill] sm:$0xff] %v6657_v16  ;;  %7602 = vst [vmem:[#allocation55_spill] sm:$0xff] %v6671_v2 }
 0x647   : > { %v2362_v63 = vmax.bf16 %v7543_v26, %v2358_v6  ;;  %7595 = vst [vmem:[#allocation48_spill] sm:$0xff] %v6629_v57  ;;  %v6678_v6 = vld [vmem:[%s7357_s15 + $0x264] ss:$16 sps:$4 sm:$0xff]  }
 0x648   : > { %v2363_v1 = vmax.bf16 %v7543_v26, %v2359_v56  ;;  %v6634_v56 = vld [vmem:[%s7357_s15 + $0x22c] ss:$16 sps:$4 sm:$0xff]   ;;  %v2365_v58 = vmax.bf16 %v7543_v26, %v2361_v53  ;;  %v6652_v53 = vld [vmem:[%s7357_s15 + $0x244] ss:$16 sps:$4 sm:$0xff]   ;;  %7603 = vst [vmem:[#allocation56_spill] sm:$0xff] %v6678_v6 }
 0x649   : > { %7596 = vst [vmem:[#allocation49_spill] sm:$0xff] %v6634_v56  ;;  %7599 = vst [vmem:[#allocation52_spill] sm:$0xff] %v6652_v53 }
 0x64a   : > { %3179 = vmatprep.mubr.bf16.mxu0 %v2363_v1  ;;  %3265 = vmatprep.mubr.bf16.mxu1 %v2363_v1  ;;  %v6683_v1 = vld [vmem:[%s7357_s15 + $0x26c] ss:$16 sps:$4 sm:$0xff]  }
 0x64b   : > { %3180 = vmatmul.mubr.bf16.vlgmr.msra.gmra.mrb[32].mxu0 %v2362_v63  ;;  %3266 = vmatmul.mubr.bf16.vlgmr.msra.gmra.mrb[32].mxu1 %v2362_v63  ;;  %7604 = vst [vmem:[#allocation57_spill] sm:$0xff] %v6683_v1  ;;  %v6690_v63 = vld [vmem:[%s7357_s15 + $0x260] ss:$16 sps:$4 sm:$0xff]  }
 0x64c   : > { %3191 = vmatpush1.bf16.msra.mxu0 %v6618_v61  ;;  %3277 = vmatpush1.bf16.msra.mxu1 %v6623_v0  ;;  %7605 = vst [vmem:[#allocation58_spill] sm:$0xff] %v6690_v63  ;;  %v6986_v61 = vld [vmem:[%s7357_s15 + $0x3e8] ss:$16 sps:$4 sm:$0xff]  }
 0x64d   : > { %3222 = vmatprep.mubr.bf16.mxu0 %v2365_v58  ;;  %3308 = vmatprep.mubr.bf16.mxu1 %v2365_v58  ;;  %v6695_v58 = vld [vmem:[%s7357_s15 + $0x268] ss:$16 sps:$4 sm:$0xff]  }
 0x64e   : > { %3192 = vmatprep.subr.bf16.mxu0 %v6629_v57  ;;  %3278 = vmatprep.subr.bf16.mxu1 %v6634_v56  ;;  %7606 = vst [vmem:[#allocation59_spill] sm:$0xff] %v6695_v58 }
 0x650   : > { %3193 = vmatpush1.bf16.msra.mxu0 %v6642_v7  ;;  %3279 = vmatpush1.bf16.msra.mxu1 %v6647_v14 }
 0x651   : > { %3194 = vmatprep.subr.bf16.mxu0 %v6652_v53  ;;  %3280 = vmatprep.subr.bf16.mxu1 %v6657_v16 }
 0x654   : > { %3195 = vmatpush1.bf16.msra.mxu0 %v6666_v4  ;;  %3281 = vmatpush1.bf16.msra.mxu1 %v6671_v2  ;;  %v6707_v2 = vld [vmem:[%s7357_s15 + $0x28c] ss:$16 sps:$4 sm:$0xff]   ;;  %v2328_v4 = vcombine.high %v6592_v3, %v6592_v3  ;;  %v6932_v3 = vld [vmem:[%s7357_s15 + $0x3a0] ss:$16 sps:$4 sm:$0xff]  }
 0x655   : > { %3196 = vmatprep.subr.bf16.mxu0 %v6678_v6  ;;  %3282 = vmatprep.subr.bf16.mxu1 %v6683_v1  ;;  %7608 = vst [vmem:[#allocation61_spill] sm:$0xff] %v6707_v2  ;;  %v6714_v6 = vld [vmem:[%s7357_s15 + $0x280] ss:$16 sps:$4 sm:$0xff]   ;;  %v6719_v1 = vld [vmem:[%s7357_s15 + $0x288] ss:$16 sps:$4 sm:$0xff]   ;;  %7645 = vst [vmem:[#allocation98_spill] sm:$0xff] %v6932_v3 }
 0x656   : > { %7609 = vst [vmem:[#allocation62_spill] sm:$0xff] %v6714_v6  ;;  %7610 = vst [vmem:[#allocation63_spill] sm:$0xff] %v6719_v1 }
 0x658   : > { %3197 = vmatpush1.bf16.msra.mxu0 %v6690_v63  ;;  %3283 = vmatpush1.bf16.msra.mxu1 %v6695_v58  ;;  %v6726_v63 = vld [vmem:[%s7357_s15 + $0x2a4] ss:$16 sps:$4 sm:$0xff]   ;;  %v6731_v58 = vld [vmem:[%s7357_s15 + $0x2ac] ss:$16 sps:$4 sm:$0xff]  }
 0x659   : > { %3198 = vmatprep.subr.bf16.mxu0 %v6702_v5  ;;  %3284 = vmatprep.subr.bf16.mxu1 %v6707_v2  ;;  %7611 = vst [vmem:[#allocation64_spill] sm:$0xff] %v6726_v63  ;;  %7612 = vst [vmem:[#allocation65_spill] sm:$0xff] %v6731_v58  ;;  %v6738_v5 = vld [vmem:[%s7357_s15 + $0x2a0] ss:$16 sps:$4 sm:$0xff]   ;;  %v6743_v2 = vld [vmem:[%s7357_s15 + $0x2a8] ss:$16 sps:$4 sm:$0xff]  }
 0x65a   : > { %7613 = vst [vmem:[#allocation66_spill] sm:$0xff] %v6738_v5  ;;  %7614 = vst [vmem:[#allocation67_spill] sm:$0xff] %v6743_v2 }
 0x65c   : > { %3199 = vmatpush1.bf16.msra.mxu0 %v6714_v6  ;;  %3285 = vmatpush1.bf16.msra.mxu1 %v6719_v1  ;;  %v6750_v6 = vld [vmem:[%s7357_s15 + $0x2c4] ss:$16 sps:$4 sm:$0xff]   ;;  %v6755_v1 = vld [vmem:[%s7357_s15 + $0x2cc] ss:$16 sps:$4 sm:$0xff]  }
 0x65d   : > { %3200 = vmatprep.subr.bf16.mxu0 %v6726_v63  ;;  %3286 = vmatprep.subr.bf16.mxu1 %v6731_v58  ;;  %7615 = vst [vmem:[#allocation68_spill] sm:$0xff] %v6750_v6  ;;  %7616 = vst [vmem:[#allocation69_spill] sm:$0xff] %v6755_v1  ;;  %v6762_v63 = vld [vmem:[%s7357_s15 + $0x2c0] ss:$16 sps:$4 sm:$0xff]   ;;  %v6767_v58 = vld [vmem:[%s7357_s15 + $0x2c8] ss:$16 sps:$4 sm:$0xff]  }
 0x65e   : > { %7617 = vst [vmem:[#allocation70_spill] sm:$0xff] %v6762_v63  ;;  %7618 = vst [vmem:[#allocation71_spill] sm:$0xff] %v6767_v58 }
 0x660   : > { %3201 = vmatpush1.bf16.msra.mxu0 %v6738_v5  ;;  %3287 = vmatpush1.bf16.msra.mxu1 %v6743_v2  ;;  %v6774_v5 = vld [vmem:[%s7357_s15 + $0x2e4] ss:$16 sps:$4 sm:$0xff]   ;;  %v6779_v2 = vld [vmem:[%s7357_s15 + $0x2ec] ss:$16 sps:$4 sm:$0xff]  }
 0x661   : > { %3202 = vmatprep.subr.bf16.mxu0 %v6750_v6  ;;  %3288 = vmatprep.subr.bf16.mxu1 %v6755_v1  ;;  %7619 = vst [vmem:[#allocation72_spill] sm:$0xff] %v6774_v5  ;;  %7620 = vst [vmem:[#allocation73_spill] sm:$0xff] %v6779_v2  ;;  %v6786_v6 = vld [vmem:[%s7357_s15 + $0x2e0] ss:$16 sps:$4 sm:$0xff]   ;;  %v6791_v1 = vld [vmem:[%s7357_s15 + $0x2e8] ss:$16 sps:$4 sm:$0xff]  }
 0x662   : > { %7621 = vst [vmem:[#allocation74_spill] sm:$0xff] %v6786_v6  ;;  %7622 = vst [vmem:[#allocation75_spill] sm:$0xff] %v6791_v1 }
 0x664   : > { %3203 = vmatpush1.bf16.msra.mxu0 %v6762_v63  ;;  %3289 = vmatpush1.bf16.msra.mxu1 %v6767_v58  ;;  %v6798_v63 = vld [vmem:[%s7357_s15 + $0x304] ss:$16 sps:$4 sm:$0xff]   ;;  %v6803_v58 = vld [vmem:[%s7357_s15 + $0x30c] ss:$16 sps:$4 sm:$0xff]  }
 0x665   : > { %3204 = vmatprep.subr.bf16.mxu0 %v6774_v5  ;;  %3290 = vmatprep.subr.bf16.mxu1 %v6779_v2  ;;  %7623 = vst [vmem:[#allocation76_spill] sm:$0xff] %v6798_v63  ;;  %7624 = vst [vmem:[#allocation77_spill] sm:$0xff] %v6803_v58  ;;  %v6810_v5 = vld [vmem:[%s7357_s15 + $0x300] ss:$16 sps:$4 sm:$0xff]   ;;  %v6815_v2 = vld [vmem:[%s7357_s15 + $0x308] ss:$16 sps:$4 sm:$0xff]  }
 0x666   : > { %7625 = vst [vmem:[#allocation78_spill] sm:$0xff] %v6810_v5  ;;  %7626 = vst [vmem:[#allocation79_spill] sm:$0xff] %v6815_v2 }
 0x668   : > { %3205 = vmatpush1.bf16.msra.mxu0 %v6786_v6  ;;  %3291 = vmatpush1.bf16.msra.mxu1 %v6791_v1  ;;  %v6822_v6 = vld [vmem:[%s7357_s15 + $0x324] ss:$16 sps:$4 sm:$0xff]   ;;  %v6827_v1 = vld [vmem:[%s7357_s15 + $0x32c] ss:$16 sps:$4 sm:$0xff]  }
 0x669   : > { %3206 = vmatprep.subr.bf16.mxu0 %v6798_v63  ;;  %3292 = vmatprep.subr.bf16.mxu1 %v6803_v58  ;;  %7627 = vst [vmem:[#allocation80_spill] sm:$0xff] %v6822_v6  ;;  %7628 = vst [vmem:[#allocation81_spill] sm:$0xff] %v6827_v1  ;;  %v6834_v63 = vld [vmem:[%s7357_s15 + $0x320] ss:$16 sps:$4 sm:$0xff]   ;;  %v6839_v58 = vld [vmem:[%s7357_s15 + $0x328] ss:$16 sps:$4 sm:$0xff]  }
 0x66a   : > { %7629 = vst [vmem:[#allocation82_spill] sm:$0xff] %v6834_v63  ;;  %7630 = vst [vmem:[#allocation83_spill] sm:$0xff] %v6839_v58 }
 0x66c   : > { %3207 = vmatpush1.bf16.msra.mxu0 %v6810_v5  ;;  %3293 = vmatpush1.bf16.msra.mxu1 %v6815_v2  ;;  %v6846_v5 = vld [vmem:[%s7357_s15 + $0x344] ss:$16 sps:$4 sm:$0xff]   ;;  %v6851_v2 = vld [vmem:[%s7357_s15 + $0x34c] ss:$16 sps:$4 sm:$0xff]  }
 0x66d   : > { %3208 = vmatprep.subr.bf16.mxu0 %v6822_v6  ;;  %3294 = vmatprep.subr.bf16.mxu1 %v6827_v1  ;;  %7631 = vst [vmem:[#allocation84_spill] sm:$0xff] %v6846_v5  ;;  %7632 = vst [vmem:[#allocation85_spill] sm:$0xff] %v6851_v2  ;;  %v6858_v6 = vld [vmem:[%s7357_s15 + $0x340] ss:$16 sps:$4 sm:$0xff]   ;;  %v6863_v1 = vld [vmem:[%s7357_s15 + $0x348] ss:$16 sps:$4 sm:$0xff]  }
 0x66e   : > { %7633 = vst [vmem:[#allocation86_spill] sm:$0xff] %v6858_v6  ;;  %7634 = vst [vmem:[#allocation87_spill] sm:$0xff] %v6863_v1 }
 0x670   : > { %3209 = vmatpush1.bf16.msra.mxu0 %v6834_v63  ;;  %3295 = vmatpush1.bf16.msra.mxu1 %v6839_v58  ;;  %v6870_v63 = vld [vmem:[%s7357_s15 + $0x364] ss:$16 sps:$4 sm:$0xff]   ;;  %v6875_v58 = vld [vmem:[%s7357_s15 + $0x36c] ss:$16 sps:$4 sm:$0xff]  }
 0x671   : > { %3210 = vmatprep.subr.bf16.mxu0 %v6846_v5  ;;  %3296 = vmatprep.subr.bf16.mxu1 %v6851_v2  ;;  %7635 = vst [vmem:[#allocation88_spill] sm:$0xff] %v6870_v63  ;;  %7636 = vst [vmem:[#allocation89_spill] sm:$0xff] %v6875_v58  ;;  %v6882_v5 = vld [vmem:[%s7357_s15 + $0x360] ss:$16 sps:$4 sm:$0xff]   ;;  %v6887_v2 = vld [vmem:[%s7357_s15 + $0x368] ss:$16 sps:$4 sm:$0xff]  }
 0x672   : > { %7637 = vst [vmem:[#allocation90_spill] sm:$0xff] %v6882_v5  ;;  %7638 = vst [vmem:[#allocation91_spill] sm:$0xff] %v6887_v2 }
 0x674   : > { %3211 = vmatpush1.bf16.msra.mxu0 %v6858_v6  ;;  %3297 = vmatpush1.bf16.msra.mxu1 %v6863_v1  ;;  %v6894_v6 = vld [vmem:[%s7357_s15 + $0x384] ss:$16 sps:$4 sm:$0xff]   ;;  %v6899_v1 = vld [vmem:[%s7357_s15 + $0x38c] ss:$16 sps:$4 sm:$0xff]  }
 0x675   : > { %3212 = vmatprep.subr.bf16.mxu0 %v6870_v63  ;;  %3298 = vmatprep.subr.bf16.mxu1 %v6875_v58  ;;  %7639 = vst [vmem:[#allocation92_spill] sm:$0xff] %v6894_v6  ;;  %7640 = vst [vmem:[#allocation93_spill] sm:$0xff] %v6899_v1  ;;  %v6906_v63 = vld [vmem:[%s7357_s15 + $0x380] ss:$16 sps:$4 sm:$0xff]   ;;  %v6911_v58 = vld [vmem:[%s7357_s15 + $0x388] ss:$16 sps:$4 sm:$0xff]  }
 0x676   : > { %7641 = vst [vmem:[#allocation94_spill] sm:$0xff] %v6906_v63  ;;  %7642 = vst [vmem:[#allocation95_spill] sm:$0xff] %v6911_v58 }
 0x678   : > { %3213 = vmatpush1.bf16.msra.mxu0 %v6882_v5  ;;  %3299 = vmatpush1.bf16.msra.mxu1 %v6887_v2  ;;  %v6920_v2 = vld [vmem:[%s7357_s15 + $0x3a4] ss:$16 sps:$4 sm:$0xff]   ;;  %v6925_v5 = vld [vmem:[%s7357_s15 + $0x3ac] ss:$16 sps:$4 sm:$0xff]  }
 0x679   : > { %3214 = vmatprep.subr.bf16.mxu0 %v6894_v6  ;;  %3300 = vmatprep.subr.bf16.mxu1 %v6899_v1  ;;  %7643 = vst [vmem:[#allocation96_spill] sm:$0xff] %v6920_v2  ;;  %7644 = vst [vmem:[#allocation97_spill] sm:$0xff] %v6925_v5  ;;  %v6937_v1 = vld [vmem:[%s7357_s15 + $0x3a8] ss:$16 sps:$4 sm:$0xff]   ;;  %v2345_v6 = vpack.i.b16 %v2328_v4, %v2328_v4  ;;  %v6956_v4 = vld [vmem:[%s7357_s15 + $0x3c0] ss:$16 sps:$4 sm:$0xff]  }
 0x67a   : > { %7646 = vst [vmem:[#allocation99_spill] sm:$0xff] %v6937_v1  ;;  %7649 = vst [vmem:[#allocation102_spill] sm:$0xff] %v6956_v4 }
 0x67b   : > { %v2350_v53 = vrot.slane %v2345_v6, %v5478_v13 }
 0x67c   : > { %3215 = vmatpush1.bf16.msra.mxu0 %v6906_v63  ;;  %3301 = vmatpush1.bf16.msra.mxu1 %v6911_v58  ;;  %v6944_v63 = vld [vmem:[%s7357_s15 + $0x3c4] ss:$16 sps:$4 sm:$0xff]   ;;  %v6949_v58 = vld [vmem:[%s7357_s15 + $0x3cc] ss:$16 sps:$4 sm:$0xff]  }
 0x67d   : > { %3216 = vmatprep.subr.bf16.mxu0 %v6920_v2  ;;  %3302 = vmatprep.subr.bf16.mxu1 %v6925_v5  ;;  %7647 = vst [vmem:[#allocation100_spill] sm:$0xff] %v6944_v63  ;;  %7648 = vst [vmem:[#allocation101_spill] sm:$0xff] %v6949_v58  ;;  %v6961_v5 = vld [vmem:[%s7357_s15 + $0x3c8] ss:$16 sps:$4 sm:$0xff]  }
 0x67e   : > { %7650 = vst [vmem:[#allocation103_spill] sm:$0xff] %v6961_v5 }
 0x680   : > { %3217 = vmatpush1.bf16.msra.mxu0 %v6932_v3  ;;  %3303 = vmatpush1.bf16.msra.mxu1 %v6937_v1  ;;  %v2249_v2 = vpop.f32.mrb[28].mxu0  ;;  %v2292_v16 = vpop.f32.mrb[28].mxu1  ;;  %v6969_v1 = vld [vmem:[%s7357_s15 + $0x3e4] ss:$16 sps:$4 sm:$0xff]   ;;  %v6974_v3 = vld [vmem:[%s7357_s15 + $0x3ec] ss:$16 sps:$4 sm:$0xff]  }
 0x681   : > { %3218 = vmatprep.subr.bf16.mxu0 %v6944_v63  ;;  %3304 = vmatprep.subr.bf16.mxu1 %v6949_v58  ;;  %v2251_v14 = vpop.f32.mrb[29].mxu0  ;;  %v2294_v7 = vpop.f32.mrb[29].mxu1  ;;  %v6981_v58 = vld [vmem:[%s7357_s15 + $0x3e0] ss:$16 sps:$4 sm:$0xff]  }
 0x682   : > { %v2253_v56 = vpop.f32.mrb[30].mxu0  ;;  %v2296_v57 = vpop.f32.mrb[30].mxu1 }
 0x683   : > { %v2366_v0 = vpack.c.bf16 %v2253_v56, %v2249_v2  ;;  %v2368_v6 = vpack.c.bf16 %v2296_v57, %v2292_v16  ;;  %v2255_v13 = vpop.f32.mrb[31].mxu0  ;;  %v2298_v63 = vpop.f32.mrb[31].mxu1  ;;  %v7651_v57 = vpack.c.bf16 %v6601_v60, %v6596_v8  ;;  %v7694_v8 = vld [vmem:[#allocation61_spill] sm:$0xff] }
 0x684   : > { %3219 = vmatpush1.bf16.msra.mxu0 %v6956_v4  ;;  %3305 = vmatpush1.bf16.msra.mxu1 %v6961_v5  ;;  %v2367_v10 = vpack.c.bf16 %v2255_v13, %v2251_v14  ;;  %v2369_v49 = vpack.c.bf16 %v2298_v63, %v2294_v7  ;;  %v7697_v7 = vld [vmem:[#allocation64_spill] sm:$0xff]  ;;  %v7698_v14 = vld [vmem:[#allocation65_spill] sm:$0xff]  ;;  %v7700_v63 = vld [vmem:[#allocation67_spill] sm:$0xff] }
 0x685   : > { %v2360_v56 = vadd.bf16 %v2350_v53, %v7651_v57  ;;  %3220 = vmatprep.subr.bf16.mxu0 %v6969_v1  ;;  %3306 = vmatprep.subr.bf16.mxu1 %v6974_v3  ;;  %v6994_v16 = vadd.bf16 %v2366_v0, %v6599_v62  ;;  %v6996_v2 = vadd.bf16 %v2368_v6, %v2350_v53  ;;  %v7692_v62 = vld [vmem:[#allocation59_spill] sm:$0xff]  ;;  %v7699_v53 = vld [vmem:[#allocation66_spill] sm:$0xff]  ;;  %v7702_v6 = vld [vmem:[#allocation69_spill] sm:$0xff] }
 0x686   : > { %v2371_v5 = vadd.bf16 %v2367_v10, %v6604_v15  ;;  %v7000_v4 = vadd.bf16 %v2369_v49, %v6609_v59  ;;  %v7689_v49 = vld [vmem:[#allocation56_spill] sm:$0xff]  ;;  %v7690_v10 = vld [vmem:[#allocation57_spill] sm:$0xff]  ;;  %v7691_v59 = vld [vmem:[#allocation58_spill] sm:$0xff] }
 0x687   : > { %v2364_v13 = vmax.bf16 %v7543_v26, %v2360_v56  ;;  %v7695_v15 = vld [vmem:[#allocation62_spill] sm:$0xff]  ;;  %v7696_v0 = vld [vmem:[#allocation63_spill] sm:$0xff] }
 0x688   : > { %3221 = vmatpush1.bf16.msra.mxu0 %v6981_v58  ;;  %3307 = vmatpush1.bf16.msra.mxu1 %v6986_v61  ;;  %v2375_v60 = vmax.bf16 %v7543_v26, %v2371_v5  ;;  %v7693_v5 = vld [vmem:[#allocation60_spill] sm:$0xff]  ;;  %v7703_v57 = vld [vmem:[#allocation70_spill] sm:$0xff]  ;;  %v7704_v56 = vld [vmem:[#allocation71_spill] sm:$0xff] }
 0x689   : > { %3319 = vmatprep.subr.bf16.mxu0 %v6190_v11  ;;  %3405 = vmatprep.subr.bf16.mxu1 %v6195_v12  ;;  %v7652_v11 = vld [vmem:[#allocation19_spill] sm:$0xff]  ;;  %v7653_v12 = vld [vmem:[#allocation20_spill] sm:$0xff] }
 0x68b   : > { %3223 = vmatmul.mubr.bf16.vlgmr.msra.gmra.mrb[32].mxu0 %v2364_v13  ;;  %3309 = vmatmul.mubr.bf16.vlgmr.msra.gmra.mrb[32].mxu1 %v2364_v13  ;;  %v7706_v13 = vld [vmem:[#allocation73_spill] sm:$0xff] }
 0x68c   : > { %3320 = vmatpush1.bf16.msra.mxu0 %v6204_v17  ;;  %3406 = vmatpush1.bf16.msra.mxu1 %v6209_v18  ;;  %v7654_v17 = vld [vmem:[#allocation21_spill] sm:$0xff]  ;;  %v7655_v18 = vld [vmem:[#allocation22_spill] sm:$0xff] }
 0x68d   : > { %3321 = vmatprep.subr.bf16.mxu0 %v6216_v19  ;;  %3407 = vmatprep.subr.bf16.mxu1 %v6221_v22  ;;  %v7656_v19 = vld [vmem:[#allocation23_spill] sm:$0xff]  ;;  %v7657_v22 = vld [vmem:[#allocation24_spill] sm:$0xff] }
 0x68e   : > { %3351 = vmatprep.mubr.bf16.mxu0 %v2375_v60  ;;  %3437 = vmatprep.mubr.bf16.mxu1 %v2375_v60  ;;  %v7707_v60 = vld [vmem:[#allocation74_spill] sm:$0xff] }
 0x690   : > { %3322 = vmatpush1.bf16.msra.mxu0 %v6228_v23  ;;  %3408 = vmatpush1.bf16.msra.mxu1 %v6233_v24  ;;  %v7658_v23 = vld [vmem:[#allocation25_spill] sm:$0xff]  ;;  %v7659_v24 = vld [vmem:[#allocation26_spill] sm:$0xff] }
 0x691   : > { %3323 = vmatprep.subr.bf16.mxu0 %v6240_v25  ;;  %3409 = vmatprep.subr.bf16.mxu1 %v6245_v27  ;;  %v7660_v25 = vld [vmem:[#allocation27_spill] sm:$0xff]  ;;  %v7661_v27 = vld [vmem:[#allocation28_spill] sm:$0xff] }
 0x694   : > { %3324 = vmatpush1.bf16.msra.mxu0 %v6252_v29  ;;  %3410 = vmatpush1.bf16.msra.mxu1 %v6257_v30  ;;  %v7662_v29 = vld [vmem:[#allocation29_spill] sm:$0xff]  ;;  %v7663_v30 = vld [vmem:[#allocation30_spill] sm:$0xff] }
 0x695   : > { %3325 = vmatprep.subr.bf16.mxu0 %v6264_v31  ;;  %3411 = vmatprep.subr.bf16.mxu1 %v6269_v32  ;;  %v7664_v31 = vld [vmem:[#allocation31_spill] sm:$0xff]  ;;  %v7665_v32 = vld [vmem:[#allocation32_spill] sm:$0xff] }
 0x698   : > { %3326 = vmatpush1.bf16.msra.mxu0 %v6276_v33  ;;  %3412 = vmatpush1.bf16.msra.mxu1 %v6281_v34  ;;  %v7666_v33 = vld [vmem:[#allocation33_spill] sm:$0xff]  ;;  %v7667_v34 = vld [vmem:[#allocation34_spill] sm:$0xff] }
 0x699   : > { %3327 = vmatprep.subr.bf16.mxu0 %v6288_v35  ;;  %3413 = vmatprep.subr.bf16.mxu1 %v6293_v36  ;;  %v7668_v35 = vld [vmem:[#allocation35_spill] sm:$0xff]  ;;  %v7669_v36 = vld [vmem:[#allocation36_spill] sm:$0xff] }
 0x69c   : > { %3328 = vmatpush1.bf16.msra.mxu0 %v6300_v37  ;;  %3414 = vmatpush1.bf16.msra.mxu1 %v6305_v38  ;;  %v7670_v37 = vld [vmem:[#allocation37_spill] sm:$0xff]  ;;  %v7671_v38 = vld [vmem:[#allocation38_spill] sm:$0xff] }
 0x69d   : > { %3329 = vmatprep.subr.bf16.mxu0 %v6312_v39  ;;  %3415 = vmatprep.subr.bf16.mxu1 %v6317_v40  ;;  %v7672_v39 = vld [vmem:[#allocation39_spill] sm:$0xff]  ;;  %v7673_v40 = vld [vmem:[#allocation40_spill] sm:$0xff] }
 0x6a0   : > { %3330 = vmatpush1.bf16.msra.mxu0 %v6324_v41  ;;  %3416 = vmatpush1.bf16.msra.mxu1 %v6329_v42  ;;  %v7674_v41 = vld [vmem:[#allocation41_spill] sm:$0xff]  ;;  %v7675_v42 = vld [vmem:[#allocation42_spill] sm:$0xff] }
 0x6a1   : > { %3331 = vmatprep.subr.bf16.mxu0 %v6336_v43  ;;  %3417 = vmatprep.subr.bf16.mxu1 %v6341_v44  ;;  %v7676_v43 = vld [vmem:[#allocation43_spill] sm:$0xff]  ;;  %v2374_v44 = vmax.bf16 %v7543_v26, %v6994_v16  ;;  %v7705_v16 = vld [vmem:[#allocation72_spill] sm:$0xff] }
 0x6a4   : > { %3332 = vmatpush1.bf16.msra.mxu0 %v6348_v45  ;;  %3418 = vmatpush1.bf16.msra.mxu1 %v6353_v46  ;;  %v7677_v45 = vld [vmem:[#allocation44_spill] sm:$0xff]  ;;  %v7678_v46 = vld [vmem:[#allocation45_spill] sm:$0xff] }
 0x6a5   : > { %3333 = vmatprep.subr.bf16.mxu0 %v6360_v47  ;;  %3419 = vmatprep.subr.bf16.mxu1 %v6365_v48  ;;  %v2377_v47 = vmax.bf16 %v7543_v26, %v7000_v4  ;;  %v7679_v48 = vld [vmem:[#allocation46_spill] sm:$0xff]  ;;  %v7701_v4 = vld [vmem:[#allocation68_spill] sm:$0xff] }
 0x6a8   : > { %3334 = vmatpush1.bf16.msra.mxu0 %v6372_v52  ;;  %3420 = vmatpush1.bf16.msra.mxu1 %v6377_v55  ;;  %v7680_v52 = vld [vmem:[#allocation47_spill] sm:$0xff]  ;;  %v7681_v55 = vld [vmem:[#allocation48_spill] sm:$0xff] }
 0x6a9   : > { %3335 = vmatprep.subr.bf16.mxu0 %v6384_v20  ;;  %3421 = vmatprep.subr.bf16.mxu1 %v6389_v21  ;;  %v7682_v20 = vld [vmem:[#allocation49_spill] sm:$0xff]  ;;  %v7683_v21 = vld [vmem:[#allocation50_spill] sm:$0xff] }
 0x6ac   : > { %3336 = vmatpush1.bf16.msra.mxu0 %v6396_v9  ;;  %3422 = vmatpush1.bf16.msra.mxu1 %v6401_v54  ;;  %v7684_v9 = vld [vmem:[#allocation51_spill] sm:$0xff]  ;;  %v7685_v54 = vld [vmem:[#allocation52_spill] sm:$0xff] }
 0x6ad   : > { %3337 = vmatprep.subr.bf16.mxu0 %v6408_v51  ;;  %3423 = vmatprep.subr.bf16.mxu1 %v6413_v50  ;;  %v7686_v51 = vld [vmem:[#allocation53_spill] sm:$0xff]  ;;  %v7687_v50 = vld [vmem:[#allocation54_spill] sm:$0xff] }
 0x6b0   : > { %3338 = vmatpush1.bf16.msra.mxu0 %v6420_v28  ;;  %3424 = vmatpush1.bf16.msra.mxu1 %v7652_v11  ;;  %v7688_v28 = vld [vmem:[#allocation55_spill] sm:$0xff] }
 0x6b1   : > { %3339 = vmatprep.subr.bf16.mxu0 %v7653_v12  ;;  %3425 = vmatprep.subr.bf16.mxu1 %v7654_v17  ;;  %v7708_v11 = vld [vmem:[#allocation75_spill] sm:$0xff]  ;;  %v7709_v12 = vld [vmem:[#allocation76_spill] sm:$0xff]  ;;  %v7710_v17 = vld [vmem:[#allocation77_spill] sm:$0xff] }
 0x6b4   : > { %3340 = vmatpush1.bf16.msra.mxu0 %v7655_v18  ;;  %3426 = vmatpush1.bf16.msra.mxu1 %v7656_v19  ;;  %v7711_v18 = vld [vmem:[#allocation78_spill] sm:$0xff]  ;;  %v7712_v19 = vld [vmem:[#allocation79_spill] sm:$0xff] }
 0x6b5   : > { %3341 = vmatprep.subr.bf16.mxu0 %v7657_v22  ;;  %3427 = vmatprep.subr.bf16.mxu1 %v7658_v23  ;;  %v7713_v22 = vld [vmem:[#allocation80_spill] sm:$0xff]  ;;  %v7714_v23 = vld [vmem:[#allocation81_spill] sm:$0xff] }
 0x6b8   : > { %3342 = vmatpush1.bf16.msra.mxu0 %v7659_v24  ;;  %3428 = vmatpush1.bf16.msra.mxu1 %v7660_v25  ;;  %v7715_v24 = vld [vmem:[#allocation82_spill] sm:$0xff]  ;;  %v7716_v25 = vld [vmem:[#allocation83_spill] sm:$0xff] }
 0x6b9   : > { %3343 = vmatprep.subr.bf16.mxu0 %v7661_v27  ;;  %3429 = vmatprep.subr.bf16.mxu1 %v7662_v29  ;;  %v7717_v27 = vld [vmem:[#allocation84_spill] sm:$0xff]  ;;  %v7718_v29 = vld [vmem:[#allocation85_spill] sm:$0xff] }
 0x6bc   : > { %3344 = vmatpush1.bf16.msra.mxu0 %v7663_v30  ;;  %3430 = vmatpush1.bf16.msra.mxu1 %v7664_v31  ;;  %v7719_v30 = vld [vmem:[#allocation86_spill] sm:$0xff]  ;;  %v7720_v31 = vld [vmem:[#allocation87_spill] sm:$0xff] }
 0x6bd   : > { %3345 = vmatprep.subr.bf16.mxu0 %v7665_v32  ;;  %3431 = vmatprep.subr.bf16.mxu1 %v7666_v33  ;;  %v7721_v32 = vld [vmem:[#allocation88_spill] sm:$0xff]  ;;  %v7722_v33 = vld [vmem:[#allocation89_spill] sm:$0xff] }
 0x6c0   : > { %3346 = vmatpush1.bf16.msra.mxu0 %v7667_v34  ;;  %3432 = vmatpush1.bf16.msra.mxu1 %v7668_v35  ;;  %v7723_v34 = vld [vmem:[#allocation90_spill] sm:$0xff]  ;;  %v7724_v35 = vld [vmem:[#allocation91_spill] sm:$0xff] }
 0x6c1   : > { %3347 = vmatprep.subr.bf16.mxu0 %v7669_v36  ;;  %3433 = vmatprep.subr.bf16.mxu1 %v7670_v37  ;;  %v7725_v36 = vld [vmem:[#allocation92_spill] sm:$0xff]  ;;  %v7726_v37 = vld [vmem:[#allocation93_spill] sm:$0xff] }
 0x6c4   : > { %3348 = vmatpush1.bf16.msra.mxu0 %v7671_v38  ;;  %3434 = vmatpush1.bf16.msra.mxu1 %v7672_v39  ;;  %v7727_v38 = vld [vmem:[#allocation94_spill] sm:$0xff]  ;;  %v7728_v39 = vld [vmem:[#allocation95_spill] sm:$0xff] }
 0x6c5   : > { %3349 = vmatprep.subr.bf16.mxu0 %v7673_v40  ;;  %3435 = vmatprep.subr.bf16.mxu1 %v7674_v41  ;;  %v7729_v40 = vld [vmem:[#allocation96_spill] sm:$0xff]  ;;  %v7730_v41 = vld [vmem:[#allocation97_spill] sm:$0xff] }
 0x6c8   : > { %3350 = vmatpush1.bf16.msra.mxu0 %v7675_v42  ;;  %3436 = vmatpush1.bf16.msra.mxu1 %v7676_v43  ;;  %v7731_v42 = vld [vmem:[#allocation98_spill] sm:$0xff]  ;;  %v7732_v43 = vld [vmem:[#allocation99_spill] sm:$0xff] }
 0x6c9   : > { %3362 = vmatprep.subr.bf16.mxu0 %v7677_v45  ;;  %3448 = vmatprep.subr.bf16.mxu1 %v7678_v46  ;;  %v7734_v45 = vld [vmem:[#allocation101_spill] sm:$0xff]  ;;  %v7735_v46 = vld [vmem:[#allocation102_spill] sm:$0xff] }
 0x6cb   : > { %3352 = vmatmul.mubr.bf16.vlgmr.msra.gmra.mrb[36].mxu0 %v2374_v44  ;;  %3438 = vmatmul.mubr.bf16.vlgmr.msra.gmra.mrb[36].mxu1 %v2374_v44  ;;  %v7733_v44 = vld [vmem:[#allocation100_spill] sm:$0xff] }
 0x6cc   : > { %3363 = vmatpush1.bf16.msra.mxu0 %v7679_v48  ;;  %3394 = vmatprep.mubr.bf16.mxu0 %v2377_v47  ;;  %v2376_v48 = vmax.bf16 %v7543_v26, %v6996_v2 }
 0x6cd   : > { %3449 = vmatpush1.bf16.msra.mxu1 %v7680_v52  ;;  %3480 = vmatprep.mubr.bf16.mxu1 %v2377_v47  ;;  %v7736_v47 = vld [vmem:[#allocation103_spill] sm:$0xff] }
 0x6ce   : > { %3364 = vmatprep.subr.bf16.mxu0 %v7681_v55  ;;  %3450 = vmatprep.subr.bf16.mxu1 %v7682_v20  ;;  %v4437_v52 = vld.sshfl [vmem:[%s7358_s16] sm:$0x33 pattern:$0x75316420]  ;;  %v7737_v20 = vld [vmem:[#allocation18_spill] sm:$0xff] }
 0x6cf   : > { %v3503_v55 = vcombine.high %v4437_v52, %v4437_v52 }
 0x6d0   : > { %3365 = vmatpush1.bf16.msra.mxu0 %v7683_v21  ;;  %v3510_v21 = vrot.slane %v4437_v52, %v7737_v20 }
 0x6d1   : > { %3451 = vmatpush1.bf16.msra.mxu1 %v7684_v9  ;;  %3366 = vmatprep.subr.bf16.mxu0 %v7685_v54 }
 0x6d2   : > { %3452 = vmatprep.subr.bf16.mxu1 %v7686_v51  ;;  %v3518_v9 = vcombine.high %v3510_v21, %v3510_v21  ;;  %v3521_v54 = vpack.i.b16 %v3510_v21, %v3510_v21 }
 0x6d4   : > { %3367 = vmatpush1.bf16.msra.mxu0 %v7687_v50 }
 0x6d5   : > { %3453 = vmatpush1.bf16.msra.mxu1 %v7688_v28  ;;  %3368 = vmatprep.subr.bf16.mxu0 %v7689_v49 }
 0x6d6   : > { %3454 = vmatprep.subr.bf16.mxu1 %v7690_v10  ;;  %v7738_v10 = vld [vmem:[#allocation17_spill] sm:$0xff] }
 0x6d8   : > { %3369 = vmatpush1.bf16.msra.mxu0 %v7691_v59  ;;  %v7146_v59 = vrot.slane %v3521_v54, %v7738_v10 }
 0x6d9   : > { %3455 = vmatpush1.bf16.msra.mxu1 %v7692_v62  ;;  %3370 = vmatprep.subr.bf16.mxu0 %v7693_v5 }
 0x6da   : > { %3456 = vmatprep.subr.bf16.mxu1 %v7694_v8 }
 0x6dc   : > { %3371 = vmatpush1.bf16.msra.mxu0 %v7695_v15 }
 0x6dd   : > { %3457 = vmatpush1.bf16.msra.mxu1 %v7696_v0  ;;  %3372 = vmatprep.subr.bf16.mxu0 %v7697_v7 }
 0x6de   : > { %3458 = vmatprep.subr.bf16.mxu1 %v7698_v14 }
 0x6e0   : > { %3373 = vmatpush1.bf16.msra.mxu0 %v7699_v53 }
 0x6e1   : > { %3459 = vmatpush1.bf16.msra.mxu1 %v7700_v63  ;;  %3374 = vmatprep.subr.bf16.mxu0 %v7701_v4 }
 0x6e2   : > { %3460 = vmatprep.subr.bf16.mxu1 %v7702_v6 }
 0x6e4   : > { %3375 = vmatpush1.bf16.msra.mxu0 %v7703_v57 }
 0x6e5   : > { %3461 = vmatpush1.bf16.msra.mxu1 %v7704_v56  ;;  %3376 = vmatprep.subr.bf16.mxu0 %v7705_v16 }
 0x6e6   : > { %3462 = vmatprep.subr.bf16.mxu1 %v7706_v13 }
 0x6e8   : > { %3377 = vmatpush1.bf16.msra.mxu0 %v7707_v60 }
 0x6e9   : > { %3463 = vmatpush1.bf16.msra.mxu1 %v7708_v11  ;;  %3378 = vmatprep.subr.bf16.mxu0 %v7709_v12 }
 0x6ea   : > { %3464 = vmatprep.subr.bf16.mxu1 %v7710_v17 }
 0x6ec   : > { %3379 = vmatpush1.bf16.msra.mxu0 %v7711_v18 }
 0x6ed   : > { %3465 = vmatpush1.bf16.msra.mxu1 %v7712_v19  ;;  %3380 = vmatprep.subr.bf16.mxu0 %v7713_v22 }
 0x6ee   : > { %3466 = vmatprep.subr.bf16.mxu1 %v7714_v23 }
 0x6f0   : > { %3381 = vmatpush1.bf16.msra.mxu0 %v7715_v24 }
 0x6f1   : > { %3467 = vmatpush1.bf16.msra.mxu1 %v7716_v25  ;;  %3382 = vmatprep.subr.bf16.mxu0 %v7717_v27 }
 0x6f2   : > { %3468 = vmatprep.subr.bf16.mxu1 %v7718_v29 }
 0x6f4   : > { %3383 = vmatpush1.bf16.msra.mxu0 %v7719_v30 }
 0x6f5   : > { %3469 = vmatpush1.bf16.msra.mxu1 %v7720_v31  ;;  %3384 = vmatprep.subr.bf16.mxu0 %v7721_v32 }
 0x6f6   : > { %3470 = vmatprep.subr.bf16.mxu1 %v7722_v33 }
 0x6f8   : > { %3385 = vmatpush1.bf16.msra.mxu0 %v7723_v34 }
 0x6f9   : > { %3471 = vmatpush1.bf16.msra.mxu1 %v7724_v35  ;;  %3386 = vmatprep.subr.bf16.mxu0 %v7725_v36 }
 0x6fa   : > { %3472 = vmatprep.subr.bf16.mxu1 %v7726_v37 }
 0x6fc   : > { %3387 = vmatpush1.bf16.msra.mxu0 %v7727_v38 }
 0x6fd   : > { %3473 = vmatpush1.bf16.msra.mxu1 %v7728_v39  ;;  %3388 = vmatprep.subr.bf16.mxu0 %v7729_v40 }
 0x6fe   : > { %3474 = vmatprep.subr.bf16.mxu1 %v7730_v41 }
 0x700   : > { %3389 = vmatpush1.bf16.msra.mxu0 %v7731_v42 }
 0x701   : > { %3475 = vmatpush1.bf16.msra.mxu1 %v7732_v43  ;;  %3390 = vmatprep.subr.bf16.mxu0 %v7733_v44 }
 0x702   : > { %3476 = vmatprep.subr.bf16.mxu1 %v7734_v45 }
 0x704   : > { %3391 = vmatpush1.bf16.msra.mxu0 %v7735_v46 }
 0x705   : > { %3477 = vmatpush1.bf16.msra.mxu1 %v7736_v47  ;;  %3392 = vmatprep.subr.bf16.mxu0 %v6969_v1  ;;  %v3517_v1 = vrot.slane %v3503_v55, %v7737_v20 }
 0x706   : > { %3478 = vmatprep.subr.bf16.mxu1 %v6974_v3 }
 0x707   : > { %v3519_v3 = vcombine.high %v3517_v1, %v3517_v1  ;;  %v3528_v51 = vpack.i.b16 %v3517_v1, %v3517_v1 }
 0x708   : > { %3393 = vmatpush1.bf16.msra.mxu0 %v6981_v58  ;;  %v3535_v58 = vpack.i.b16 %v3518_v9, %v3518_v9 }
 0x709   : > { %3479 = vmatpush1.bf16.msra.mxu1 %v6986_v61  ;;  %v3542_v50 = vpack.i.b16 %v3519_v3, %v3519_v3  ;;  %v7152_v15 = vrot.slane %v3528_v51, %v7738_v10 }
 0x70a   : > { %v7149_v62 = vrot.slane %v3535_v58, %v7738_v10 }
 0x70b   : > { %3395 = vmatmul.mubr.bf16.vlgmr.msra.gmra.mrb[36].mxu0 %v2376_v48  ;;  %v7155_v0 = vrot.slane %v3542_v50, %v7738_v10 }
 0x70c   : > { %3481 = vmatmul.mubr.bf16.vlgmr.msra.gmra.mrb[36].mxu1 %v2376_v48 }
 0x75e   : > { %v3224_v2 = vpop.f32.mrb[32].mxu0  ;;  %v3310_v28 = vpop.f32.mrb[32].mxu1 }
 0x75f   : > { %v3226_v61 = vpop.f32.mrb[33].mxu0  ;;  %v3312_v49 = vpop.f32.mrb[33].mxu1 }
 0x760   : > { %v3228_v5 = vpop.f32.mrb[34].mxu0  ;;  %v3314_v8 = vpop.f32.mrb[34].mxu1 }
 0x761   : > { %v3491_v7 = vpack.c.bf16 %v3228_v5, %v3224_v2  ;;  %v3493_v14 = vpack.c.bf16 %v3314_v8, %v3310_v28  ;;  %v3230_v53 = vpop.f32.mrb[35].mxu0  ;;  %v3316_v63 = vpop.f32.mrb[35].mxu1 }
 0x762   : > { %v3492_v4 = vpack.c.bf16 %v3230_v53, %v3226_v61  ;;  %v3494_v6 = vpack.c.bf16 %v3316_v63, %v3312_v49 }
 0x763   : > { %v3548_v57 = vadd.bf16 %v7146_v59, %v3491_v7  ;;  %v3550_v56 = vadd.bf16 %v7149_v62, %v3493_v14 }
 0x764   : > { %v3549_v16 = vadd.bf16 %v7152_v15, %v3492_v4  ;;  %v3551_v13 = vadd.bf16 %v7155_v0, %v3494_v6 }
 0x765   : > { %v3552_v60 = vmax.bf16 %v7543_v26, %v3548_v57  ;;  %v3554_v11 = vmax.bf16 %v7543_v26, %v3550_v56 }
 0x766   : > { %v3553_v12 = vmax.bf16 %v7543_v26, %v3549_v16  ;;  %v3555_v17 = vmax.bf16 %v7543_v26, %v3551_v13 }
 0x767   : > { %v3569_v18 = vunpack.c.l.bf16 %v3552_v60  ;;  %v3573_v19 = vunpack.c.h.bf16 %v3552_v60  ;;  %v3571_v22 = vunpack.c.l.bf16 %v3554_v11  ;;  %v3575_v23 = vunpack.c.h.bf16 %v3554_v11 }
 0x768   : > { %v3570_v24 = vunpack.c.l.bf16 %v3553_v12  ;;  %v3574_v25 = vunpack.c.h.bf16 %v3553_v12  ;;  %v3572_v27 = vunpack.c.l.bf16 %v3555_v17  ;;  %v3576_v29 = vunpack.c.h.bf16 %v3555_v17 }
 0x769   : > { %v3577_v30 = vadd.f32 %v3573_v19, %v3569_v18  ;;  %v3591_v31 = vadd.f32 %v3575_v23, %v3571_v22 }
 0x76a   : > { %v3584_v32 = vadd.f32 %v3574_v25, %v3570_v24  ;;  %v3598_v33 = vadd.f32 %v3576_v29, %v3572_v27 }
 0x76b   : > { %v3578_v34 = vrot.slane %v3577_v30, 4  ;;  %v3592_v35 = vrot.slane %v3591_v31, 4 }
 0x76c   : > { %v3585_v36 = vrot.slane %v3584_v32, 4  ;;  %v3599_v37 = vrot.slane %v3598_v33, 4 }
 0x76d   : > { %v3579_v38 = vadd.f32 %v3578_v34, %v3577_v30  ;;  %v3593_v39 = vadd.f32 %v3592_v35, %v3591_v31 }
 0x76e   : > { %v3586_v40 = vadd.f32 %v3585_v36, %v3584_v32  ;;  %v3600_v41 = vadd.f32 %v3599_v37, %v3598_v33 }
 0x76f   : > { %v3580_v42 = vrot.slane %v3579_v38, 2  ;;  %v3594_v43 = vrot.slane %v3593_v39, 2 }
 0x770   : > { %v3587_v44 = vrot.slane %v3586_v40, 2  ;;  %v3601_v45 = vrot.slane %v3600_v41, 2 }
 0x771   : > { %v3581_v46 = vadd.f32 %v3580_v42, %v3579_v38  ;;  %v3595_v47 = vadd.f32 %v3594_v43, %v3593_v39 }
 0x772   : > { %v3588_v48 = vadd.f32 %v3587_v44, %v3586_v40  ;;  %v3602_v52 = vadd.f32 %v3601_v45, %v3600_v41 }
 0x773   : > { %v3582_v55 = vrot.slane %v3581_v46, 1  ;;  %v3596_v21 = vrot.slane %v3595_v47, 1 }
 0x774   : > { %v3589_v1 = vrot.slane %v3588_v48, 1  ;;  %v3603_v9 = vrot.slane %v3602_v52, 1 }
 0x775   : > { %v3583_v3 = vadd.f32 %v3582_v55, %v3581_v46  ;;  %v3597_v54 = vadd.f32 %v3596_v21, %v3595_v47 }
 0x776   : > { %v3590_v58 = vadd.f32 %v3589_v1, %v3588_v48  ;;  %v3604_v51 = vadd.f32 %v3603_v9, %v3602_v52 }
 0x778   : > { %v3609_v50 = vcombine.low %v3583_v3, %v3590_v58  ;;  %v3610_v2 = vcombine.low %v3597_v54, %v3604_v51 }
 0x77a   : > { %v7166_v28 = vrot.slane %v3609_v50, %v7737_v20  ;;  %v3624_v61 = vrot.slane %v3610_v2, %v7737_v20 }
 0x77c   : > { %v3625_v49 = vcombine.low %v7166_v28, %v3624_v61  ;;  %v3568_v61 = vld [vmem:[#allocation2] sm:$0xf] }
 0x77e   : > { %v3632_v2 = vrot.slane %v3625_v49, %v7737_v20  ;;  %v5125_v49 = vld [vmem:[%s7359_s17 + $0xc0] sm:$0xff] (!%p4438_p1)  }
 0x77f   : > { %4536 = vmatprep.subr.bf16.mxu1 (!%p4438_p1), %v5125_v49 }
 0x7de   : > { %v3396_v10 = vpop.f32.mrb[36].mxu0 }
 0x7df   : > { %v3482_v5 = vpop.f32.mrb[36].mxu1  ;;  %v3398_v8 = vpop.f32.mrb[37].mxu0 }
 0x7e0   : > { %v3484_v7 = vpop.f32.mrb[37].mxu1  ;;  %v3400_v14 = vpop.f32.mrb[38].mxu0 }
 0x7e1   : > { %v3556_v53 = vpack.c.bf16 %v3400_v14, %v3396_v10  ;;  %v3486_v63 = vpop.f32.mrb[38].mxu1  ;;  %v3402_v4 = vpop.f32.mrb[39].mxu0 }
 0x7e2   : > { %v3558_v6 = vpack.c.bf16 %v3486_v63, %v3482_v5  ;;  %v3557_v57 = vpack.c.bf16 %v3402_v4, %v3398_v8  ;;  %v3488_v56 = vpop.f32.mrb[39].mxu1  ;;  %v3634_v5 = vadd.f32 %v3632_v2, %v3568_v61  ;;  %v5127_v63 = vld [vmem:[%s7359_s17 + $0x80] sm:$0xff] (!%p4438_p1)   ;;  %v5128_v4 = vld [vmem:[%s7359_s17 + $0x48] sm:$0xff] (!%p4438_p1)  }
 0x7e3   : > { %v3560_v16 = vadd.bf16 %v3556_v53, %v7146_v59  ;;  %v3559_v13 = vpack.c.bf16 %v3488_v56, %v3484_v7  ;;  %v7739_v7 = vlaneseq  ;;  %v5124_v53 = vld [vmem:[%s7359_s17 + $0x40] sm:$0xff] (!%p4438_p1)   ;;  %4537 = vmatpush3.bf16.msra.mxu1 (!%p4438_p1), %v5127_v63  ;;  %v5131_v56 = vld [vmem:[%s7359_s17 + $0x88] sm:$0xff] (!%p4438_p1)  }
 0x7e4   : > { %v3562_v60 = vadd.bf16 %v3558_v6, %v7149_v62  ;;  %v3561_v11 = vadd.bf16 %v3557_v57, %v7152_v15  ;;  %4514 = vmatprep.subr.bf16.mxu0 (!%p4438_p1), %v5124_v53  ;;  %v5129_v6 = vld [vmem:[%s7359_s17 + $0xc8] sm:$0xff] (!%p4438_p1)  }
 0x7e5   : > { %v3564_v12 = vmax.bf16 %v7543_v26, %v3560_v16  ;;  %v3563_v17 = vadd.bf16 %v3559_v13, %v7155_v0  ;;  %vm3703_vm4 = vcmp.lt.s32.totalorder %v7739_v7, 512  ;;  %v5130_v57 = vld [vmem:[%s7359_s17 + $0x8] sm:$0xff] (!%p4438_p1)   ;;  %4538 = vmatprep.subr.bf16.mxu1 (!%p4438_p1), %v5129_v6  ;;  %v5132_v16 = vld [vmem:[%s7359_s17 + $0x50] sm:$0xff] (!%p4438_p1)  }
 0x7e6   : > { %v3566_v18 = vmax.bf16 %v7543_v26, %v3562_v60  ;;  %v3565_v19 = vmax.bf16 %v7543_v26, %v3561_v11  ;;  %v5133_v13 = vld [vmem:[%s7359_s17 + $0xd0] sm:$0xff] (!%p4438_p1)  }
 0x7e7   : > { %v3635_v22 = vunpack.c.l.bf16 %v3564_v12  ;;  %v3639_v23 = vunpack.c.h.bf16 %v3564_v12  ;;  %v3567_v24 = vmax.bf16 %v7543_v26, %v3563_v17  ;;  %4539 = vmatpush3.bf16.msra.mxu1 (!%p4438_p1), %v5131_v56  ;;  %v5134_v60 = vld [vmem:[%s7359_s17 + $0x10] sm:$0xff] (!%p4438_p1)   ;;  %v5136_v12 = vld [vmem:[%s7359_s17 + $0x58] sm:$0xff] (!%p4438_p1)  }
 0x7e8   : > { %v3637_v25 = vunpack.c.l.bf16 %v3566_v18  ;;  %v3641_v27 = vunpack.c.h.bf16 %v3566_v18  ;;  %v3636_v59 = vunpack.c.l.bf16 %v3565_v19  ;;  %v3640_v29 = vunpack.c.h.bf16 %v3565_v19  ;;  %4540 = vmatprep.subr.bf16.mxu1 (!%p4438_p1), %v5133_v13  ;;  %v5135_v11 = vld [vmem:[%s7359_s17 + $0x90] sm:$0xff] (!%p4438_p1)   ;;  %v5137_v17 = vld [vmem:[%s7359_s17 + $0xd8] sm:$0xff] (!%p4438_p1)  }
 0x7e9   : > { %v3643_v30 = vadd.f32 %v3639_v23, %v3635_v22  ;;  %v3638_v62 = vunpack.c.l.bf16 %v3567_v24  ;;  %v3642_v31 = vunpack.c.h.bf16 %v3567_v24  ;;  %v5138_v18 = vld [vmem:[%s7359_s17 + $0x18] sm:$0xff] (!%p4438_p1)   ;;  %v5140_v22 = vld [vmem:[%s7359_s17 + $0x60] sm:$0xff] (!%p4438_p1)  }
 0x7ea   : > { %v3657_v15 = vadd.f32 %v3641_v27, %v3637_v25  ;;  %v3650_v32 = vadd.f32 %v3640_v29, %v3636_v59  ;;  %v5139_v19 = vld [vmem:[%s7359_s17 + $0x98] sm:$0xff] (!%p4438_p1)   ;;  %v5141_v23 = vld [vmem:[%s7359_s17 + $0xe0] sm:$0xff] (!%p4438_p1)   ;;  %v5144_v27 = vld [vmem:[%s7359_s17 + $0x68] sm:$0xff] (!%p4438_p1)  }
 0x7eb   : > { %v3644_v33 = vrot.slane %v3643_v30, 4  ;;  %v3664_v34 = vadd.f32 %v3642_v31, %v3638_v62  ;;  %4541 = vmatpush3.bf16.msra.mxu1 (!%p4438_p1), %v5135_v11  ;;  %v5142_v24 = vld [vmem:[%s7359_s17 + $0x20] sm:$0xff] (!%p4438_p1)   ;;  %v5145_v59 = vld [vmem:[%s7359_s17 + $0xe8] sm:$0xff] (!%p4438_p1)   ;;  %v5148_v62 = vld [vmem:[%s7359_s17 + $0x70] sm:$0xff] (!%p4438_p1)  }
 0x7ec   : > { %v3658_v0 = vrot.slane %v3657_v15, 4  ;;  %v3651_v35 = vrot.slane %v3650_v32, 4  ;;  %4542 = vmatprep.subr.bf16.mxu1 (!%p4438_p1), %v5137_v17  ;;  %v5143_v25 = vld [vmem:[%s7359_s17 + $0xa0] sm:$0xff] (!%p4438_p1)   ;;  %v5146_v29 = vld [vmem:[%s7359_s17 + $0x28] sm:$0xff] (!%p4438_p1)   ;;  %v5149_v31 = vld [vmem:[%s7359_s17 + $0xf0] sm:$0xff] (!%p4438_p1)  }
 0x7ed   : > { %v3645_v36 = vadd.f32 %v3644_v33, %v3643_v30  ;;  %v3665_v37 = vrot.slane %v3664_v34, 4  ;;  %v5147_v30 = vld [vmem:[%s7359_s17 + $0xa8] sm:$0xff] (!%p4438_p1)   ;;  %v5152_v33 = vld [vmem:[%s7359_s17 + $0x78] sm:$0xff] (!%p4438_p1)  }
 0x7ee   : > { %v3659_v38 = vadd.f32 %v3658_v0, %v3657_v15  ;;  %v3652_v39 = vadd.f32 %v3651_v35, %v3650_v32  ;;  %v5150_v15 = vld [vmem:[%s7359_s17 + $0x30] sm:$0xff] (!%p4438_p1)   ;;  %v7740_v0 = vld [vmem:[#allocation16_spill] sm:$0xff] (!%p4438_p1) }
 0x7ef   : > { %v3646_v40 = vrot.slane %v3645_v36, 2  ;;  %v3666_v41 = vadd.f32 %v3665_v37, %v3664_v34  ;;  %4543 = vmatpush3.bf16.msra.mxu1 (!%p4438_p1), %v5139_v19  ;;  %v5151_v32 = vld [vmem:[%s7359_s17 + $0xb0] sm:$0xff] (!%p4438_p1)   ;;  %v5153_v34 = vld [vmem:[%s7359_s17 + $0xf8] sm:$0xff] (!%p4438_p1)   ;;  %v3719_v35 = vsub.s32 (!%p4438_p1), 1, %v7740_v0  ;;  %v3727_v37 = vsub.s32 (!%p4438_p1), 3, %v7740_v0 }
 0x7f0   : > { %v3660_v26 = vrot.slane %v3659_v38, 2  ;;  %v3653_v42 = vrot.slane %v3652_v39, 2  ;;  %4544 = vmatprep.subr.bf16.mxu1 (!%p4438_p1), %v5141_v23 }
 0x7f1   : > { %v3647_v43 = vadd.f32 %v3646_v40, %v3645_v36  ;;  %v3667_v44 = vrot.slane %v3666_v41, 2  ;;  %v5154_v36 = vld [vmem:[%s7359_s17 + $0x38] sm:$0xff] (!%p4438_p1)  }
 0x7f2   : > { %v3661_v45 = vadd.f32 %v3660_v26, %v3659_v38  ;;  %v3654_v46 = vadd.f32 %v3653_v42, %v3652_v39  ;;  %v5155_v38 = vld [vmem:[%s7359_s17 + $0xb8] sm:$0xff] (!%p4438_p1)   ;;  %v3723_v39 = vsub.s32 (!%p4438_p1), 2, %v7740_v0 }
 0x7f3   : > { %v3648_v47 = vrot.slane %v3647_v43, 1  ;;  %v3668_v48 = vadd.f32 %v3667_v44, %v3666_v41  ;;  %4545 = vmatpush3.bf16.msra.mxu1 (!%p4438_p1), %v5143_v25 }
 0x7f4   : > { %v3662_v52 = vrot.slane %v3661_v45, 1  ;;  %v3655_v55 = vrot.slane %v3654_v46, 1  ;;  %4546 = vmatprep.subr.bf16.mxu1 (!%p4438_p1), %v5145_v59 }
 0x7f5   : > { %v3649_v21 = vadd.f32 %v3648_v47, %v3647_v43  ;;  %v3669_v1 = vrot.slane %v3668_v48, 1  ;;  %v7741_v43 = vld [vmem:[#allocation17_spill] sm:$0xff] (!%p4438_p1) }
 0x7f6   : > { %v3663_v9 = vadd.f32 %v3662_v52, %v3661_v45  ;;  %v3656_v3 = vadd.f32 %v3655_v55, %v3654_v46 }
 0x7f7   : > { %v3670_v54 = vadd.f32 %v3669_v1, %v3668_v48  ;;  %4547 = vmatpush3.bf16.msra.mxu1 (!%p4438_p1), %v5147_v30  ;;  %v3801_v1 = vld [vmem:[%s7742_s24] sm:$0x1] (!%p4438_p1) }
 0x7f8   : > { %v3675_v58 = vcombine.low %v3649_v21, %v3656_v3  ;;  %4548 = vmatprep.subr.bf16.mxu1 (!%p4438_p1), %v5149_v31 }
 0x7f9   : > { %v3676_v51 = vcombine.low %v3663_v9, %v3670_v54 }
 0x7fa   : > { %v3683_v50 = vrot.slane %v3675_v58, %v7737_v20 }
 0x7fb   : > { %v3690_v28 = vrot.slane %v3676_v51, %v7737_v20  ;;  %4549 = vmatpush3.bf16.msra.mxu1 (!%p4438_p1), %v5151_v32 }
 0x7fc   : > { %4550 = vmatprep.subr.bf16.mxu1 (!%p4438_p1), %v5153_v34 }
 0x7fd   : > { %v3691_v10 = vcombine.low %v3683_v50, %v3690_v28  ;;  %3709 = sbr.rel (%p4438_p1) target bundleno = 2299 (0x8fb), region = 104 }
 0x7ff   : > { %v3698_v8 = vrot.slane %v3691_v10, %v7737_v20  ;;  %v5126_v20 = vld [vmem:[%s7359_s17] sm:$0xff] (!%p4438_p1)   ;;  %4551 = vmatpush3.bf16.msra.mxu1 (!%p4438_p1), %v5155_v38 }
 0x800   : > { %4515 = vmatpush3.bf16.msra.mxu0 (!%p4438_p1), %v5126_v20 }
 0x801   : > { %v3700_v14 = vadd.f32 %v3698_v8, %v3634_v5  ;;  %4516 = vmatprep.subr.bf16.mxu0 (!%p4438_p1), %v5128_v4 }
 0x803   : > { %3705 = vst.msk [vmem:[#allocation2] sm:$0xf] %vm3703_vm4, %v3700_v14 }
 0x804   : > { %4517 = vmatpush3.bf16.msra.mxu0 %v5130_v57 }
 0x805   : > { %4518 = vmatprep.subr.bf16.mxu0 %v5132_v16 }
 0x808   : > { %4519 = vmatpush3.bf16.msra.mxu0 %v5134_v60 }
 0x809   : > { %4520 = vmatprep.subr.bf16.mxu0 %v5136_v12 }
 0x80a   : > { %v3710_v40 = vld [vmem:[#allocation2] sm:$0xf] }
 0x80b   : > { %v3711_v41 = vmul.f32 0.015625, %v3710_v40 }
 0x80c   : > { %4521 = vmatpush3.bf16.msra.mxu0 %v5138_v18 }
 0x80d   : > { %4522 = vmatprep.subr.bf16.mxu0 %v5140_v22  ;;  %v3720_v26 = vrot.slane %v3711_v41, %v3719_v35  ;;  %v3728_v42 = vrot.slane %v3711_v41, %v3727_v37  ;;  %v3716_v44 = vrot.slane %v3711_v41, %v7741_v43  ;;  %v3724_v45 = vrot.slane %v3711_v41, %v3723_v39 }
 0x80f   : > { %v3734_v46 = vpack.c.bf16 %v3720_v26, %v3720_v26  ;;  %v3736_v47 = vpack.c.bf16 %v3728_v42, %v3728_v42  ;;  %v3733_v48 = vpack.c.bf16 %v3716_v44, %v3716_v44  ;;  %v3735_v52 = vpack.c.bf16 %v3724_v45, %v3724_v45 }
 0x810   : > { %4523 = vmatpush3.bf16.msra.mxu0 %v5142_v24 }
 0x811   : > { %4524 = vmatprep.subr.bf16.mxu0 %v5144_v27  ;;  %4026 = vmatprep.mubr.bf16.mxu0 %v3734_v46 }
 0x812   : > { %4066 = vmatprep.mubr.bf16.mxu1 %v3736_v47 }
 0x813   : > { %4067 = vmatmul.mubr.bf16.vlgmr.msra.gmra.mrb[0].mxu1 %v3735_v52 }
 0x814   : > { %4525 = vmatpush3.bf16.msra.mxu0 %v5146_v29 }
 0x815   : > { %4526 = vmatprep.subr.bf16.mxu0 %v5148_v62 }
 0x818   : > { %4527 = vmatpush3.bf16.msra.mxu0 %v5150_v15 }
 0x819   : > { %4528 = vmatprep.subr.bf16.mxu0 %v5152_v33 }
 0x81c   : > { %4529 = vmatpush3.bf16.msra.mxu0 %v5154_v36 }
 0x81f   : > { %4027 = vmatmul.mubr.bf16.vlgmr.msra.gmra.mrb[0].mxu0 %v3733_v48 }
 0x8e6   : > { %v4552_v21 = vpop.f32.mrb[0].mxu1 }
 0x8e7   : > { %v4553_v3 = vpop.f32.mrb[1].mxu1 }
 0x8e8   : > { %v4554_v58 = vadd.f32 %v4553_v3, %v4552_v21  ;;  %v4555_v50 = vpop.f32.mrb[2].mxu1 }
 0x8e9   : > { %v4556_v28 = vpop.f32.mrb[3].mxu1 }
 0x8f2   : > { %v4530_v55 = vpop.f32.mrb[0].mxu0 }
 0x8f3   : > { %v4531_v9 = vpop.f32.mrb[1].mxu0 }
 0x8f4   : > { %v4532_v54 = vadd.f32 %v4531_v9, %v4530_v55  ;;  %v4533_v51 = vpop.f32.mrb[2].mxu0 }
 0x8f5   : > { %v4534_v2 = vpop.f32.mrb[3].mxu0 }
 0x8f6   : > { %v4029_v61 = vadd.f32 %v4532_v54, %v3801_v1 }
 0x8f8   : > { %v4069_v10 = vadd.f32 %v4554_v58, %v4029_v61 }
 0x8fa   : > { %4075 = vst.msk [vmem:[%s5436_s3] sm:$0x1] %vm4074_vm5, %v4069_v10 }
 0x8fb PF: > { %s4471_s19 = sshll.u32 %s5238_s1, 4  ;;  %s7744_s2 = sld [smem:[#allocation111_spill]] }
 0x8fc   : > { %s4089_s21 = sshll.u32 %s5436_s3, 4  ;;  %s4077_s28 = scalar_lea.sflag [#allocation4], %s616_s25  ;;  %s4090_s21 = int_to_ptr.vmem [resolvable:$true] %s4089_s21 }
 0x8fd   : > { %s5156_s29 = scalar_lea.vmem %s4090_s21, 16  ;;  %s5257_s24 = smov [#allocation3]  }
 0x8fe   : > { %p5157_p2 = scmp.ne.s32.totalorder %s4090_s21, %s5156_s29  ;;  %s5160_s4 = sshll.u32 %s5257_s24, 4  ;;  %s5161_s4 = int_to_ptr.vmem [resolvable:$false] %s5160_s4 }
 0x8ff   : > { %s5162_s5 = scalar_lea.vmem %s5161_s4, 32  ;;  %p5163_p6 = scmp.lt.s32.totalorder %s4090_s21, %s5161_s4 }
 0x900   : > { %p5158_p4 = pnand %p5157_p2, %p5407_p3  ;;  %p5164_p7 = scmp.lt.s32.totalorder %s5162_s5, %s5156_s29 }
 0x901   : > { %s7745_s27 = smov %s7744_s2  ;;  %s7292_s23 = scalar_lea.hbm %s7744_s2, %s4471_s19 }
 0x902   : > { %p5159_p5 = pneg %p5158_p4  ;;  %p5165_p8 = por %p5164_p7, %p5163_p6 }
 0x904   : > { %p5166_p10 = pnand %p5165_p8, %p5159_p5 }
 0x906   : > { %5169 = shalt.err (!%p5166_p10)
}
 0x907   : > { %s5170_s1 = scalar_lea.hbm %s7292_s23, 16  ;;  %s5174_s19 = scalar_lea.hbm %s7745_s27, 32 }
 0x908   : > { %p5171_p11 = scmp.ne.s32.totalorder %s7292_s23, %s5170_s1  ;;  %p5175_p0 = scmp.lt.u32.totalorder %s7292_s23, %s7745_s27 }
 0x909   : > { %p5176_p1 = scmp.lt.u32.totalorder %s5174_s19, %s5170_s1  ;;  %p5178_p4 = scmp.lt.u32.totalorder %s5170_s1, %s7292_s23 }
 0x90a   : > { %p5172_p12 = pnand %p5171_p11, %p5407_p3 }
 0x90b   : > { %p5177_p2 = por %p5176_p1, %p5175_p0 }
 0x90c   : > { %p5173_p13 = pneg %p5172_p12 }
 0x90d   : > { %p5179_p5 = por %p5178_p4, %p5177_p2 }
 0x90f   : > { %p5180_p6 = pnand %p5179_p5, %p5173_p13 }
 0x911   : > { %5183 = shalt.err (!%p5180_p6)
}
 0x912   : > { %4670 = dma.vmem_to_hbm [thread:$0]  (%p5407_p3), %s4090_s21, 16, %s7292_s23, %s4077_s28  }
 0x913 PF: > { %s7746_s5 = sld [smem:[#allocation10_spill]]  ;;  %s7747_s20 = sld [smem:[#allocation6_spill]] }
 0x919   : > { %p4676_p7 = scmp.ge.s32.totalorder %s7746_s5, 2  ;;  %s4101_s29 = sand.u32 1, %s7747_s20  }
 0x91a   : > { %s4102_s24 = scalar_lea.sflag [#allocation4], %s4101_s29 }
 0x91b   : > { %p4673_p8 = pnand %p4676_p7, %p5417_p9 }
 0x91d   : > { %5217 = dma.done.wait (!%p4673_p8), %s4102_s24, 16  }
 0x91e   : > { %5219 = vsyncadd (!%p4673_p8), %s4102_s24, 4294967280  ;;  %s32_s23 = sadd.s32 1, %s7746_s5   ;;  %s7749_s1 = sld [smem:[#allocation7_spill]] }
 0x91f   : > { %p29_p10 = scmp.ge.s32.totalorder %s32_s23, 6   ;;  %s7750_s20 = sld [smem:[#allocation15_spill]] }
 0x920   : > { %s7751_s21 = sld [smem:[#allocation8_spill]]  ;;  %s7752_s3 = sld [smem:[#allocation9_spill]] }
 0x921   : > { %s7753_s22 = sld [smem:[#allocation11_spill]]  ;;  %s7754_s2 = sld [smem:[#allocation13_spill]] }
 0x922   : > { %s7755_s0 = smov %s5226_s30  ;;  %31 = sbr.rel (!%p29_p10) target bundleno = 14 (0xe), region = 139 }
 0x924   : > { %s7756_s30 = smov %s7749_s1 }
 0x926   : > { %s7757_s1 = smov %s7752_s3 }
 0x929   :  { %4106 = vsyncpa [#allocation4], 1 }
 0x92a   :  { %4108 = vsyncpa [#allocation4 + $0x1], 1 }

</bundles_post_ra>
